<compile_context>
chip_gen: v7x
topology: tpu7x:2x2x1
jax: 0.10.0
libtpu: 0.0.40
codegen_flags: <defaults>
</compile_context>

<pallas_src>
import functools

import jax
import jax.numpy as jnp
from jax.experimental import pallas as pl
from jax.experimental.pallas import tpu as pltpu


def _bottleneck_kernel(x_ref, w1_ref, b1_ref, w2_ref, b2_ref, ml_ref, mr_ref,
                       o_ref, pad_ref, *, W, HW, add, slope):
    # x_ref:   (1, HW, c1)      flattened NHWC pixels of one image
    # w1_ref:  (c1, c_)         1x1-conv weight, BN1 scale folded in
    # b1_ref:  (1, c_)          folded BN1 bias
    # w2_ref:  (9, c_, c2)      3x3-conv weight per tap, BN2 scale folded in
    # b2_ref:  (1, c2)          folded BN2 bias
    # ml_ref:  (HW, 1)          0/1 mask: 0 where pixel column w == 0
    # mr_ref:  (HW, 1)          0/1 mask: 0 where pixel column w == W-1
    # o_ref:   (1, HW, c2)
    # pad_ref: (HW + 2*W + 2, c_) VMEM scratch for zero-padded cv1 output
    x = x_ref[0]                                             # (HW, c1)

    # ---- cv1: 1x1 conv (== channel matmul) + bias + LeakyReLU(0.1) ----
    y1 = jnp.dot(x, w1_ref[...], preferred_element_type=jnp.float32)
    y1 = y1 + b1_ref[...]
    y1 = jnp.where(y1 > 0, y1, slope * y1)                   # (HW, c_) f32

    # ---- write y1 into the zero-padded scratch.  Pixel (h, w) lives at row
    #      off0 + h*W + w, with W+1 zero rows above and below, so every 3x3
    #      tap below is a static, in-bounds sublane slice of length HW. ----
    off0 = W + 1
    pad_ref[...] = jnp.zeros_like(pad_ref)
    pad_ref[pl.ds(off0, HW), :] = y1.astype(pad_ref.dtype)

    # ---- cv2: 3x3 conv (p=1) as 9 shifted matmuls, f32 accumulation.
    #      Horizontal taps that wrap across a row edge are zeroed by masks. ----
    c2 = o_ref.shape[-1]
    acc = jnp.zeros((HW, c2), jnp.float32)
    t = 0
    for dy in (-1, 0, 1):
        for dx in (-1, 0, 1):
            tap = pad_ref[pl.ds(off0 + dy * W + dx, HW), :]  # (HW, c_)
            if dx == -1:
                tap = tap * ml_ref[...]
            elif dx == 1:
                tap = tap * mr_ref[...]
            acc = acc + jnp.dot(tap, w2_ref[t],
                                preferred_element_type=jnp.float32)
            t += 1

    y2 = acc + b2_ref[...]
    y2 = jnp.where(y2 > 0, y2, slope * y2)

    # ---- residual (shortcut and c1 == c2) ----
    if add:
        y2 = y2 + x.astype(jnp.float32)

    o_ref[0] = y2.astype(o_ref.dtype)


@functools.partial(jax.jit,
                   static_argnames=("shortcut", "eps", "compute_dtype"))
def bottleneck_forward(x, w1, g1, b1, m1, v1, w2, g2, b2, m2, v2,
                       shortcut=True, eps=1e-5, compute_dtype=jnp.float32):
    """Bottleneck.forward (g=1, act=LeakyReLU(0.1), inference BN).

    x:  (N, c1, H, W) float32, NCHW
    w1: (c_, c1, 1, 1)   cv1 conv weight
    w2: (c2, c_, 3, 3)   cv2 conv weight
    g*/b*/m*/v*: BatchNorm gamma / beta / running_mean / running_var
    compute_dtype: set jnp.bfloat16 on v6e/v7x to halve matmul input bytes
                   (accumulation and the epilogue remain f32).
    """
    N, c1, H, W = x.shape
    c_mid = w1.shape[0]
    c2 = w2.shape[0]
    HW = H * W
    add = bool(shortcut) and (c1 == c2)

    # ---- fold BN (inference form) into weights + bias ----
    s1 = g1 / jnp.sqrt(v1 + eps)
    bb1 = (b1 - m1 * s1).reshape(1, c_mid).astype(jnp.float32)
    w1_mat = (w1.reshape(c_mid, c1).T * s1[None, :]).astype(compute_dtype)

    s2 = g2 / jnp.sqrt(v2 + eps)
    bb2 = (b2 - m2 * s2).reshape(1, c2).astype(jnp.float32)
    # (c2, c_, 3, 3) -> (kh, kw, c_, c2) -> (9, c_, c2), tap t = kh*3 + kw
    w2_mat = (jnp.transpose(w2, (2, 3, 1, 0)).reshape(9, c_mid, c2)
              * s2[None, None, :]).astype(compute_dtype)

    # NCHW -> flattened NHWC (pixels major, channels on lanes)
    x_flat = jnp.transpose(x, (0, 2, 3, 1)).reshape(N, HW, c1)
    x_flat = x_flat.astype(compute_dtype)

    # 0/1 column masks for the horizontal taps (kill row-edge wraparound)
    wcol = jnp.arange(HW, dtype=jnp.int32) % W
    ml = (wcol != 0).astype(compute_dtype).reshape(HW, 1)
    mr = (wcol != W - 1).astype(compute_dtype).reshape(HW, 1)

    kernel = functools.partial(_bottleneck_kernel,
                               W=W, HW=HW, add=add, slope=0.1)

    out_flat = pl.pallas_call(
        kernel,
        out_shape=jax.ShapeDtypeStruct((N, HW, c2), x.dtype),
        grid_spec=pltpu.PrefetchScalarGridSpec(
            num_scalar_prefetch=0,
            grid=(N,),
            in_specs=[
                pl.BlockSpec((1, HW, c1), lambda n: (n, 0, 0)),
                pl.BlockSpec((c1, c_mid), lambda n: (0, 0)),
                pl.BlockSpec((1, c_mid), lambda n: (0, 0)),
                pl.BlockSpec((9, c_mid, c2), lambda n: (0, 0, 0)),
                pl.BlockSpec((1, c2), lambda n: (0, 0)),
                pl.BlockSpec((HW, 1), lambda n: (0, 0)),
                pl.BlockSpec((HW, 1), lambda n: (0, 0)),
            ],
            out_specs=pl.BlockSpec((1, HW, c2), lambda n: (n, 0, 0)),
            scratch_shapes=[pltpu.VMEM((HW + 2 * W + 2, c_mid), compute_dtype)],
        ),
        compiler_params=pltpu.CompilerParams(
            dimension_semantics=("parallel",)),
    )(x_flat, w1_mat, bb1, w2_mat, bb2, ml, mr)

    # (N, HW, c2) -> NCHW
    return jnp.transpose(out_flat.reshape(N, H, W, c2), (0, 3, 1, 2))


def _reference(x, w1, g1, b1, m1, v1, w2, g2, b2, m2, v2,
               shortcut=True, eps=1e-5):
    """Pure-JAX (XLA) reference for correctness checking."""
    def conv_bn_act(inp, w, gamma, beta, mean, var, pad):
        y = jax.lax.conv_general_dilated(
            inp, w, window_strides=(1, 1),
            padding=[(pad, pad), (pad, pad)],
            dimension_numbers=("NCHW", "OIHW", "NCHW"))
        s = gamma / jnp.sqrt(var + eps)
        y = y * s[None, :, None, None] + (beta - mean * s)[None, :, None, None]
        return jnp.where(y > 0, y, 0.1 * y)

    y = conv_bn_act(x, w1, g1, b1, m1, v1, 0)
    y = conv_bn_act(y, w2, g2, b2, m2, v2, 1)
    add = shortcut and (x.shape[1] == w2.shape[0])
    return x + y if add else y


if __name__ == "__main__":
    # Small shapes consistent with the module: c1 == c2 so the shortcut path
    # is exercised; e=0.5 -> c_ = c2 // 2.
    N, c1, H, W = 2, 8, 16, 16
    c2 = 8
    c_mid = int(c2 * 0.5)

    key = jax.random.PRNGKey(0)
    kx, kw1, kw2 = jax.random.split(key, 3)
    x = jax.random.normal(kx, (N, c1, H, W), dtype=jnp.float32)
    w1 = jax.random.normal(kw1, (c_mid, c1, 1, 1), jnp.float32) / (c1 ** 0.5)
    w2 = jax.random.normal(kw2, (c2, c_mid, 3, 3), jnp.float32) / ((9 * c_mid) ** 0.5)

    # Deterministic synthetic BatchNorm parameters (inference running stats).
    g1 = jnp.linspace(0.8, 1.2, c_mid, dtype=jnp.float32)
    b1 = jnp.linspace(-0.1, 0.1, c_mid, dtype=jnp.float32)
    m1 = jnp.linspace(-0.05, 0.05, c_mid, dtype=jnp.float32)
    v1 = jnp.linspace(0.9, 1.1, c_mid, dtype=jnp.float32)
    g2 = jnp.linspace(0.7, 1.3, c2, dtype=jnp.float32)
    b2 = jnp.linspace(-0.2, 0.2, c2, dtype=jnp.float32)
    m2 = jnp.linspace(-0.1, 0.1, c2, dtype=jnp.float32)
    v2 = jnp.linspace(0.8, 1.2, c2, dtype=jnp.float32)

    out = bottleneck_forward(x, w1, g1, b1, m1, v1, w2, g2, b2, m2, v2)
    out = jax.block_until_ready(out)

    ref = _reference(x, w1, g1, b1, m1, v1, w2, g2, b2, m2, v2)
    assert out.shape == (N, c2, H, W)
    assert jnp.allclose(out, ref, atol=1e-4, rtol=1e-4), float(
        jnp.max(jnp.abs(out - ref)))

    print("KERNEL_OK")
</pallas_src>

<mosaic_0001>
module attributes {stable_mosaic.version = 11 : i64} {
  func.func @_bottleneck_kernel(%arg0: i32, %arg1: memref<1x256x8xf32, #tpu.memory_space<vmem>>, %arg2: memref<8x4xf32, #tpu.memory_space<vmem>>, %arg3: memref<1x4xf32, #tpu.memory_space<vmem>>, %arg4: memref<9x4x8xf32, #tpu.memory_space<vmem>>, %arg5: memref<1x8xf32, #tpu.memory_space<vmem>>, %arg6: memref<256x1xf32, #tpu.memory_space<vmem>>, %arg7: memref<256x1xf32, #tpu.memory_space<vmem>>, %arg8: memref<1x256x8xf32, #tpu.memory_space<vmem>>, %arg9: memref<290x4xf32, #tpu.memory_space<vmem>>) attributes {dimension_semantics = [#tpu.dimension_semantics<parallel>], iteration_bounds = array<i64: 2>, scalar_prefetch = 0 : i64, scratch_operands = 1 : i64, tpu.core_type = #tpu.core_type<tc>, window_params = [{transform_indices = @transform_0, window_bounds = array<i64: 1, 256, 8>}, {pipeline_mode = #tpu.pipeline_mode<synchronous>, transform_indices = @transform_1, window_bounds = array<i64: 8, 4>}, {pipeline_mode = #tpu.pipeline_mode<synchronous>, transform_indices = @transform_2, window_bounds = array<i64: 1, 4>}, {pipeline_mode = #tpu.pipeline_mode<synchronous>, transform_indices = @transform_3, window_bounds = array<i64: 9, 4, 8>}, {pipeline_mode = #tpu.pipeline_mode<synchronous>, transform_indices = @transform_4, window_bounds = array<i64: 1, 8>}, {pipeline_mode = #tpu.pipeline_mode<synchronous>, transform_indices = @transform_5, window_bounds = array<i64: 256, 1>}, {pipeline_mode = #tpu.pipeline_mode<synchronous>, transform_indices = @transform_6, window_bounds = array<i64: 256, 1>}, {transform_indices = @transform_7, window_bounds = array<i64: 1, 256, 8>}]} {
    %c0 = arith.constant 0 : index
    %c0_0 = arith.constant 0 : index
    %c0_1 = arith.constant 0 : index
    %0 = vector.load %arg1[%c0, %c0_0, %c0_1] : memref<1x256x8xf32, #tpu.memory_space<vmem>>, vector<1x256x8xf32>
    %1 = vector.shape_cast %0 : vector<1x256x8xf32> to vector<256x8xf32>
    %c0_2 = arith.constant 0 : index
    %c0_3 = arith.constant 0 : index
    %2 = vector.load %arg2[%c0_2, %c0_3] : memref<8x4xf32, #tpu.memory_space<vmem>>, vector<8x4xf32>
    %cst = arith.constant dense<0.000000e+00> : vector<256x4xf32>
    %3 = tpu.matmul %1, %2, %cst {dimension_numbers = #tpu.dot_dimension_numbers<[1], [0], [0], [1], [0, 0, 1, 1], [], []>} : vector<256x8xf32>, vector<8x4xf32>, vector<256x4xf32> -> vector<256x4xf32>
    %c0_4 = arith.constant 0 : index
    %c0_5 = arith.constant 0 : index
    %4 = vector.load %arg3[%c0_4, %c0_5] : memref<1x4xf32, #tpu.memory_space<vmem>>, vector<1x4xf32>
    %5 = vector.broadcast %4 : vector<1x4xf32> to vector<256x4xf32>
    %6 = arith.addf %3, %5 : vector<256x4xf32>
    %cst_6 = arith.constant 0.000000e+00 : f32
    %7 = vector.broadcast %cst_6 : f32 to vector<256x4xf32>
    %8 = arith.cmpf ogt, %6, %7 : vector<256x4xf32>
    %cst_7 = arith.constant 1.000000e-01 : f32
    %9 = vector.broadcast %cst_7 : f32 to vector<256x4xf32>
    %10 = arith.mulf %9, %6 : vector<256x4xf32>
    %11 = arith.select %8, %6, %10 : vector<256x4xi1>, vector<256x4xf32>
    %cst_8 = arith.constant 0.000000e+00 : f32
    %12 = vector.broadcast %cst_8 : f32 to vector<290x4xf32>
    %c0_9 = arith.constant 0 : index
    %c0_10 = arith.constant 0 : index
    %13 = vector.load %arg9[%c0_9, %c0_10] : memref<290x4xf32, #tpu.memory_space<vmem>>, vector<290x4xf32>
    tpu.vector_store %arg9[%c0_9, %c0_10], %12 {strides = array<i32>} : memref<290x4xf32, #tpu.memory_space<vmem>>, vector<290x4xf32>,
    %c17 = arith.constant 17 : index
    %c0_11 = arith.constant 0 : index
    %14 = vector.load %arg9[%c17, %c0_11] : memref<290x4xf32, #tpu.memory_space<vmem>>, vector<256x4xf32>
    tpu.vector_store %arg9[%c17, %c0_11], %11 {strides = array<i32>} : memref<290x4xf32, #tpu.memory_space<vmem>>, vector<256x4xf32>,
    %cst_12 = arith.constant 0.000000e+00 : f32
    %15 = vector.broadcast %cst_12 : f32 to vector<256x8xf32>
    %c0_13 = arith.constant 0 : index
    %c0_14 = arith.constant 0 : index
    %16 = vector.load %arg9[%c0_13, %c0_14] : memref<290x4xf32, #tpu.memory_space<vmem>>, vector<256x4xf32>
    %c0_15 = arith.constant 0 : index
    %c0_16 = arith.constant 0 : index
    %17 = vector.load %arg6[%c0_15, %c0_16] : memref<256x1xf32, #tpu.memory_space<vmem>>, vector<256x1xf32>
    %18 = vector.broadcast %17 : vector<256x1xf32> to vector<256x4xf32>
    %19 = arith.mulf %16, %18 : vector<256x4xf32>
    %c0_17 = arith.constant 0 : index
    %c0_18 = arith.constant 0 : index
    %c0_19 = arith.constant 0 : index
    %20 = vector.load %arg4[%c0_17, %c0_18, %c0_19] : memref<9x4x8xf32, #tpu.memory_space<vmem>>, vector<1x4x8xf32>
    %21 = vector.shape_cast %20 : vector<1x4x8xf32> to vector<4x8xf32>
    %cst_20 = arith.constant dense<0.000000e+00> : vector<256x8xf32>
    %22 = tpu.matmul %19, %21, %cst_20 {dimension_numbers = #tpu.dot_dimension_numbers<[1], [0], [0], [1], [0, 0, 1, 1], [], []>} : vector<256x4xf32>, vector<4x8xf32>, vector<256x8xf32> -> vector<256x8xf32>
    %23 = arith.addf %15, %22 : vector<256x8xf32>
    %c1 = arith.constant 1 : index
    %c0_21 = arith.constant 0 : index
    %24 = vector.load %arg9[%c1, %c0_21] : memref<290x4xf32, #tpu.memory_space<vmem>>, vector<256x4xf32>
    %c1_22 = arith.constant 1 : index
    %c0_23 = arith.constant 0 : index
    %c0_24 = arith.constant 0 : index
    %25 = vector.load %arg4[%c1_22, %c0_23, %c0_24] : memref<9x4x8xf32, #tpu.memory_space<vmem>>, vector<1x4x8xf32>
    %26 = vector.shape_cast %25 : vector<1x4x8xf32> to vector<4x8xf32>
    %cst_25 = arith.constant dense<0.000000e+00> : vector<256x8xf32>
    %27 = tpu.matmul %24, %26, %cst_25 {dimension_numbers = #tpu.dot_dimension_numbers<[1], [0], [0], [1], [0, 0, 1, 1], [], []>} : vector<256x4xf32>, vector<4x8xf32>, vector<256x8xf32> -> vector<256x8xf32>
    %28 = arith.addf %23, %27 : vector<256x8xf32>
    %c2 = arith.constant 2 : index
    %c0_26 = arith.constant 0 : index
    %29 = vector.load %arg9[%c2, %c0_26] : memref<290x4xf32, #tpu.memory_space<vmem>>, vector<256x4xf32>
    %c0_27 = arith.constant 0 : index
    %c0_28 = arith.constant 0 : index
    %30 = vector.load %arg7[%c0_27, %c0_28] : memref<256x1xf32, #tpu.memory_space<vmem>>, vector<256x1xf32>
    %31 = vector.broadcast %30 : vector<256x1xf32> to vector<256x4xf32>
    %32 = arith.mulf %29, %31 : vector<256x4xf32>
    %c2_29 = arith.constant 2 : index
    %c0_30 = arith.constant 0 : index
    %c0_31 = arith.constant 0 : index
    %33 = vector.load %arg4[%c2_29, %c0_30, %c0_31] : memref<9x4x8xf32, #tpu.memory_space<vmem>>, vector<1x4x8xf32>
    %34 = vector.shape_cast %33 : vector<1x4x8xf32> to vector<4x8xf32>
    %cst_32 = arith.constant dense<0.000000e+00> : vector<256x8xf32>
    %35 = tpu.matmul %32, %34, %cst_32 {dimension_numbers = #tpu.dot_dimension_numbers<[1], [0], [0], [1], [0, 0, 1, 1], [], []>} : vector<256x4xf32>, vector<4x8xf32>, vector<256x8xf32> -> vector<256x8xf32>
    %36 = arith.addf %28, %35 : vector<256x8xf32>
    %c16 = arith.constant 16 : index
    %c0_33 = arith.constant 0 : index
    %37 = vector.load %arg9[%c16, %c0_33] : memref<290x4xf32, #tpu.memory_space<vmem>>, vector<256x4xf32>
    %c0_34 = arith.constant 0 : index
    %c0_35 = arith.constant 0 : index
    %38 = vector.load %arg6[%c0_34, %c0_35] : memref<256x1xf32, #tpu.memory_space<vmem>>, vector<256x1xf32>
    %39 = vector.broadcast %38 : vector<256x1xf32> to vector<256x4xf32>
    %40 = arith.mulf %37, %39 : vector<256x4xf32>
    %c3 = arith.constant 3 : index
    %c0_36 = arith.constant 0 : index
    %c0_37 = arith.constant 0 : index
    %41 = vector.load %arg4[%c3, %c0_36, %c0_37] : memref<9x4x8xf32, #tpu.memory_space<vmem>>, vector<1x4x8xf32>
    %42 = vector.shape_cast %41 : vector<1x4x8xf32> to vector<4x8xf32>
    %cst_38 = arith.constant dense<0.000000e+00> : vector<256x8xf32>
    %43 = tpu.matmul %40, %42, %cst_38 {dimension_numbers = #tpu.dot_dimension_numbers<[1], [0], [0], [1], [0, 0, 1, 1], [], []>} : vector<256x4xf32>, vector<4x8xf32>, vector<256x8xf32> -> vector<256x8xf32>
    %44 = arith.addf %36, %43 : vector<256x8xf32>
    %c17_39 = arith.constant 17 : index
    %c0_40 = arith.constant 0 : index
    %45 = vector.load %arg9[%c17_39, %c0_40] : memref<290x4xf32, #tpu.memory_space<vmem>>, vector<256x4xf32>
    %c4 = arith.constant 4 : index
    %c0_41 = arith.constant 0 : index
    %c0_42 = arith.constant 0 : index
    %46 = vector.load %arg4[%c4, %c0_41, %c0_42] : memref<9x4x8xf32, #tpu.memory_space<vmem>>, vector<1x4x8xf32>
    %47 = vector.shape_cast %46 : vector<1x4x8xf32> to vector<4x8xf32>
    %cst_43 = arith.constant dense<0.000000e+00> : vector<256x8xf32>
    %48 = tpu.matmul %45, %47, %cst_43 {dimension_numbers = #tpu.dot_dimension_numbers<[1], [0], [0], [1], [0, 0, 1, 1], [], []>} : vector<256x4xf32>, vector<4x8xf32>, vector<256x8xf32> -> vector<256x8xf32>
    %49 = arith.addf %44, %48 : vector<256x8xf32>
    %c18 = arith.constant 18 : index
    %c0_44 = arith.constant 0 : index
    %50 = vector.load %arg9[%c18, %c0_44] : memref<290x4xf32, #tpu.memory_space<vmem>>, vector<256x4xf32>
    %c0_45 = arith.constant 0 : index
    %c0_46 = arith.constant 0 : index
    %51 = vector.load %arg7[%c0_45, %c0_46] : memref<256x1xf32, #tpu.memory_space<vmem>>, vector<256x1xf32>
    %52 = vector.broadcast %51 : vector<256x1xf32> to vector<256x4xf32>
    %53 = arith.mulf %50, %52 : vector<256x4xf32>
    %c5 = arith.constant 5 : index
    %c0_47 = arith.constant 0 : index
    %c0_48 = arith.constant 0 : index
    %54 = vector.load %arg4[%c5, %c0_47, %c0_48] : memref<9x4x8xf32, #tpu.memory_space<vmem>>, vector<1x4x8xf32>
    %55 = vector.shape_cast %54 : vector<1x4x8xf32> to vector<4x8xf32>
    %cst_49 = arith.constant dense<0.000000e+00> : vector<256x8xf32>
    %56 = tpu.matmul %53, %55, %cst_49 {dimension_numbers = #tpu.dot_dimension_numbers<[1], [0], [0], [1], [0, 0, 1, 1], [], []>} : vector<256x4xf32>, vector<4x8xf32>, vector<256x8xf32> -> vector<256x8xf32>
    %57 = arith.addf %49, %56 : vector<256x8xf32>
    %c32 = arith.constant 32 : index
    %c0_50 = arith.constant 0 : index
    %58 = vector.load %arg9[%c32, %c0_50] : memref<290x4xf32, #tpu.memory_space<vmem>>, vector<256x4xf32>
    %c0_51 = arith.constant 0 : index
    %c0_52 = arith.constant 0 : index
    %59 = vector.load %arg6[%c0_51, %c0_52] : memref<256x1xf32, #tpu.memory_space<vmem>>, vector<256x1xf32>
    %60 = vector.broadcast %59 : vector<256x1xf32> to vector<256x4xf32>
    %61 = arith.mulf %58, %60 : vector<256x4xf32>
    %c6 = arith.constant 6 : index
    %c0_53 = arith.constant 0 : index
    %c0_54 = arith.constant 0 : index
    %62 = vector.load %arg4[%c6, %c0_53, %c0_54] : memref<9x4x8xf32, #tpu.memory_space<vmem>>, vector<1x4x8xf32>
    %63 = vector.shape_cast %62 : vector<1x4x8xf32> to vector<4x8xf32>
    %cst_55 = arith.constant dense<0.000000e+00> : vector<256x8xf32>
    %64 = tpu.matmul %61, %63, %cst_55 {dimension_numbers = #tpu.dot_dimension_numbers<[1], [0], [0], [1], [0, 0, 1, 1], [], []>} : vector<256x4xf32>, vector<4x8xf32>, vector<256x8xf32> -> vector<256x8xf32>
    %65 = arith.addf %57, %64 : vector<256x8xf32>
    %c33 = arith.constant 33 : index
    %c0_56 = arith.constant 0 : index
    %66 = vector.load %arg9[%c33, %c0_56] : memref<290x4xf32, #tpu.memory_space<vmem>>, vector<256x4xf32>
    %c7 = arith.constant 7 : index
    %c0_57 = arith.constant 0 : index
    %c0_58 = arith.constant 0 : index
    %67 = vector.load %arg4[%c7, %c0_57, %c0_58] : memref<9x4x8xf32, #tpu.memory_space<vmem>>, vector<1x4x8xf32>
    %68 = vector.shape_cast %67 : vector<1x4x8xf32> to vector<4x8xf32>
    %cst_59 = arith.constant dense<0.000000e+00> : vector<256x8xf32>
    %69 = tpu.matmul %66, %68, %cst_59 {dimension_numbers = #tpu.dot_dimension_numbers<[1], [0], [0], [1], [0, 0, 1, 1], [], []>} : vector<256x4xf32>, vector<4x8xf32>, vector<256x8xf32> -> vector<256x8xf32>
    %70 = arith.addf %65, %69 : vector<256x8xf32>
    %c34 = arith.constant 34 : index
    %c0_60 = arith.constant 0 : index
    %71 = vector.load %arg9[%c34, %c0_60] : memref<290x4xf32, #tpu.memory_space<vmem>>, vector<256x4xf32>
    %c0_61 = arith.constant 0 : index
    %c0_62 = arith.constant 0 : index
    %72 = vector.load %arg7[%c0_61, %c0_62] : memref<256x1xf32, #tpu.memory_space<vmem>>, vector<256x1xf32>
    %73 = vector.broadcast %72 : vector<256x1xf32> to vector<256x4xf32>
    %74 = arith.mulf %71, %73 : vector<256x4xf32>
    %c8 = arith.constant 8 : index
    %c0_63 = arith.constant 0 : index
    %c0_64 = arith.constant 0 : index
    %75 = vector.load %arg4[%c8, %c0_63, %c0_64] : memref<9x4x8xf32, #tpu.memory_space<vmem>>, vector<1x4x8xf32>
    %76 = vector.shape_cast %75 : vector<1x4x8xf32> to vector<4x8xf32>
    %cst_65 = arith.constant dense<0.000000e+00> : vector<256x8xf32>
    %77 = tpu.matmul %74, %76, %cst_65 {dimension_numbers = #tpu.dot_dimension_numbers<[1], [0], [0], [1], [0, 0, 1, 1], [], []>} : vector<256x4xf32>, vector<4x8xf32>, vector<256x8xf32> -> vector<256x8xf32>
    %78 = arith.addf %70, %77 : vector<256x8xf32>
    %c0_66 = arith.constant 0 : index
    %c0_67 = arith.constant 0 : index
    %79 = vector.load %arg5[%c0_66, %c0_67] : memref<1x8xf32, #tpu.memory_space<vmem>>, vector<1x8xf32>
    %80 = vector.broadcast %79 : vector<1x8xf32> to vector<256x8xf32>
    %81 = arith.addf %78, %80 : vector<256x8xf32>
    %cst_68 = arith.constant 0.000000e+00 : f32
    %82 = vector.broadcast %cst_68 : f32 to vector<256x8xf32>
    %83 = arith.cmpf ogt, %81, %82 : vector<256x8xf32>
    %cst_69 = arith.constant 1.000000e-01 : f32
    %84 = vector.broadcast %cst_69 : f32 to vector<256x8xf32>
    %85 = arith.mulf %84, %81 : vector<256x8xf32>
    %86 = arith.select %83, %81, %85 : vector<256x8xi1>, vector<256x8xf32>
    %87 = arith.addf %86, %1 : vector<256x8xf32>
    %c0_70 = arith.constant 0 : index
    %c0_71 = arith.constant 0 : index
    %c0_72 = arith.constant 0 : index
    %88 = vector.load %arg8[%c0_70, %c0_71, %c0_72] : memref<1x256x8xf32, #tpu.memory_space<vmem>>, vector<1x256x8xf32>
    %89 = vector.shape_cast %88 : vector<1x256x8xf32> to vector<256x8xf32>
    %90 = vector.shape_cast %87 : vector<256x8xf32> to vector<1x256x8xf32>
    tpu.vector_store %arg8[%c0_70, %c0_71, %c0_72], %90 {strides = array<i32>} : memref<1x256x8xf32, #tpu.memory_space<vmem>>, vector<1x256x8xf32>,
    return
  }
  func.func @transform_0(%arg0: i32) -> (i32, i32, i32) {
    %c0_i32 = arith.constant 0 : i32
    %c0_i32_0 = arith.constant 0 : i32
    %c0_i32_1 = arith.constant 0 : i32
    return %arg0, %c0_i32, %c0_i32_0 : i32, i32, i32
  }
  func.func @transform_1(%arg0: i32) -> (i32, i32) {
    %c0_i32 = arith.constant 0 : i32
    %c0_i32_0 = arith.constant 0 : i32
    %c0_i32_1 = arith.constant 0 : i32
    return %c0_i32, %c0_i32_0 : i32, i32
  }
  func.func @transform_2(%arg0: i32) -> (i32, i32) {
    %c0_i32 = arith.constant 0 : i32
    %c0_i32_0 = arith.constant 0 : i32
    %c0_i32_1 = arith.constant 0 : i32
    return %c0_i32, %c0_i32_0 : i32, i32
  }
  func.func @transform_3(%arg0: i32) -> (i32, i32, i32) {
    %c0_i32 = arith.constant 0 : i32
    %c0_i32_0 = arith.constant 0 : i32
    %c0_i32_1 = arith.constant 0 : i32
    %c0_i32_2 = arith.constant 0 : i32
    return %c0_i32, %c0_i32_0, %c0_i32_1 : i32, i32, i32
  }
  func.func @transform_4(%arg0: i32) -> (i32, i32) {
    %c0_i32 = arith.constant 0 : i32
    %c0_i32_0 = arith.constant 0 : i32
    %c0_i32_1 = arith.constant 0 : i32
    return %c0_i32, %c0_i32_0 : i32, i32
  }
  func.func @transform_5(%arg0: i32) -> (i32, i32) {
    %c0_i32 = arith.constant 0 : i32
    %c0_i32_0 = arith.constant 0 : i32
    %c0_i32_1 = arith.constant 0 : i32
    return %c0_i32, %c0_i32_0 : i32, i32
  }
  func.func @transform_6(%arg0: i32) -> (i32, i32) {
    %c0_i32 = arith.constant 0 : i32
    %c0_i32_0 = arith.constant 0 : i32
    %c0_i32_1 = arith.constant 0 : i32
    return %c0_i32, %c0_i32_0 : i32, i32
  }
  func.func @transform_7(%arg0: i32) -> (i32, i32, i32) {
    %c0_i32 = arith.constant 0 : i32
    %c0_i32_0 = arith.constant 0 : i32
    %c0_i32_1 = arith.constant 0 : i32
    return %arg0, %c0_i32, %c0_i32_0 : i32, i32, i32
  }
}

</mosaic_0001>

<bundles_post_ra>
// kernel: bottleneck_forward.1
= control target key start
LH: loop header
LB: loop body
LE: loop exit
PB: predicated region body
PF: predicated region fallthrough
CT: control target
= control target key end

     0   :  { %s6616_s24 = smov 0   ;;  %s8416_s0 = inlined_call_operand.vmem [shape: f32[2,256,8], index: 0, kind: input, shape index: {}]   ;;  %s8417_s1 = inlined_call_operand.vmem [shape: f32[8,4], index: 1, kind: input, shape index: {}]   ;;  %s8418_s2 = inlined_call_operand.vmem [shape: f32[1,4], index: 2, kind: input, shape index: {}]   ;;  %s8419_s3 = inlined_call_operand.vmem [shape: f32[9,4,8], index: 3, kind: input, shape index: {}]   ;;  %s8420_s4 = inlined_call_operand.vmem [shape: f32[1,8], index: 4, kind: input, shape index: {}]   ;;  %s8421_s5 = inlined_call_operand.vmem [shape: f32[256,1], index: 5, kind: input, shape index: {}]   ;;  %s8422_s6 = inlined_call_operand.vmem [shape: f32[256,1], index: 6, kind: input, shape index: {}]   ;;  %s8423_s7 = inlined_call_operand.vmem [shape: f32[2,256,8], index: 7, kind: output, shape index: {}]  }
   0x1 LB: > { %s5084_s25 = sadd.s32 4294967295, %s6572_s24   ;;  %p5088_p0 = scmp.ge.s32.totalorder %s6572_s24, 1  ;;  %s6572_s24 = sphi %s6616_s24, %s17_s24  }
   0x2   : > { %p237_p1 = scmp.lt.s32.totalorder %s6572_s24, 3 }
   0x4   : > { %p238_p2 = pnand %p5088_p0, %p237_p1 }
   0x6   : > { %241 = sbr.rel (%p238_p2) target bundleno = 792 (0x318), region = 48 }
   0xd   : > { %v311_v0 = vld [vmem:[%s8417_s1] sm:$0xff]  ;;  %p269_p3 = scmp.lt.s32.totalorder %s5084_s25, 1  ;;  %v1782_v1 = vld [vmem:[%s8422_s6 + $0x10] sm:$0xff]  ;;  %v6574_v3 = vmov 0   ;;  %vm737_vm0 = vcmask 31744   ;;  %v6575_v4 = vmov 0.0  }
   0xe   : > { %v1780_v2 = vld [vmem:[%s8422_s6] sm:$0xff]  ;;  %5766 = vmatprep.subr.mxu0 %v311_v0  ;;  %6533 = vset.pattern.permute.xlu1 %v6574_v3  ;;  %738 = vst.msk [vmem:[#allocation2] sm:$0xff] %vm737_vm0, %v6575_v4  ;;  %739 = vst.msk [vmem:[#allocation2 + $0x8] sm:$0xff] %vm737_vm0, %v6575_v4  ;;  %vm319_vm1 = vcmask 64512   ;;  %v1783_v5 = vld [vmem:[%s8422_s6 + $0x18] sm:$0xff]  ;;  %vm1195_vm2 = vcmask 1043456  }
   0xf   : > { %5767 = vmatpush3.msra.mxu0 %v311_v0  ;;  %s8875_s25 = smov (!%p269_p3, %s5084_s25), 1  ;;  %6532 = vset.pattern.permute.xlu0 %v6574_v3  ;;  %740 = vst.msk [vmem:[#allocation2 + $0x10] sm:$0xff] %vm737_vm0, %v6575_v4  ;;  %741 = vst.msk [vmem:[#allocation2 + $0x18] sm:$0xff] %vm737_vm0, %v6575_v4  ;;  %v1781_v6 = vld [vmem:[%s8422_s6 + $0x8] sm:$0xff]  ;;  %v1784_v12 = vld [vmem:[%s8422_s6 + $0x20] sm:$0xff]  ;;  %vm774_vm3 = vcmask 25600  }
  0x10   : > { %1824 = vperm.xlu1 %6533, %v1782_v1   ;;  %1814 = vperm.xlu0 %6532, %v1780_v2   ;;  %742 = vst.msk [vmem:[#allocation2 + $0x20] sm:$0xff] %vm737_vm0, %v6575_v4  ;;  %743 = vst.msk [vmem:[#allocation2 + $0x28] sm:$0xff] %vm737_vm0, %v6575_v4  ;;  %s5434_s9 = sshll.u32 %s8875_s25, 8  ;;  %v1785_v10 = vld [vmem:[%s8422_s6 + $0x28] sm:$0xff]  ;;  %v1787_v14 = vld [vmem:[%s8422_s6 + $0x38] sm:$0xff] }
  0x11   : > { %744 = vst.msk [vmem:[#allocation2 + $0x30] sm:$0xff] %vm737_vm0, %v6575_v4  ;;  %745 = vst.msk [vmem:[#allocation2 + $0x38] sm:$0xff] %vm737_vm0, %v6575_v4  ;;  %s6716_s14 = scalar_lea.vmem %s8416_s0, %s5434_s9  ;;  %v1786_v16 = vld [vmem:[%s8422_s6 + $0x30] sm:$0xff]  ;;  %v1789_v18 = vld [vmem:[%s8422_s6 + $0x48] sm:$0xff]  ;;  %s8259_s30 = scalar_lea.vmem %s8423_s7, %s5434_s9 }
  0x12   : > { %746 = vst.msk [vmem:[#allocation2 + $0x40] sm:$0xff] %vm737_vm0, %v6575_v4  ;;  %747 = vst.msk [vmem:[#allocation2 + $0x48] sm:$0xff] %vm737_vm0, %v6575_v4  ;;  %v279_v7 = vld [vmem:[%s6716_s14] sm:$0xff]  ;;  %v280_v8 = vld [vmem:[%s6716_s14 + $0x8] sm:$0xff] }
  0x13   : > { %748 = vst.msk [vmem:[#allocation2 + $0x50] sm:$0xff] %vm737_vm0, %v6575_v4  ;;  %749 = vst.msk [vmem:[#allocation2 + $0x58] sm:$0xff] %vm737_vm0, %v6575_v4  ;;  %v281_v9 = vld [vmem:[%s6716_s14 + $0x10] sm:$0xff]  ;;  %5768 = vmatprep.mubr.msk.f32.mxu0 %vm319_vm1, %v279_v7  ;;  %v282_v11 = vld [vmem:[%s6716_s14 + $0x18] sm:$0xff] }
  0x14   : > { %750 = vst.msk [vmem:[#allocation2 + $0x60] sm:$0xff] %vm737_vm0, %v6575_v4  ;;  %751 = vst.msk [vmem:[#allocation2 + $0x68] sm:$0xff] %vm737_vm0, %v6575_v4  ;;  %1829 = vperm.xlu1 %6533, %v1783_v5   ;;  %5769 = vmatmul.mubr.msk.f32.vlgmr.msra.gmra.mrb[0].mxu0 %vm319_vm1, %v280_v8  ;;  %v283_v13 = vld [vmem:[%s6716_s14 + $0x20] sm:$0xff]  ;;  %v284_v15 = vld [vmem:[%s6716_s14 + $0x28] sm:$0xff] }
  0x15   : > { %752 = vst.msk [vmem:[#allocation2 + $0x70] sm:$0xff] %vm737_vm0, %v6575_v4  ;;  %753 = vst.msk [vmem:[#allocation2 + $0x78] sm:$0xff] %vm737_vm0, %v6575_v4  ;;  %1819 = vperm.xlu0 %6532, %v1781_v6   ;;  %5771 = vmatprep.mubr.msk.f32.mxu0 %vm319_vm1, %v281_v9  ;;  %v285_v17 = vld [vmem:[%s6716_s14 + $0x30] sm:$0xff]  ;;  %v286_v19 = vld [vmem:[%s6716_s14 + $0x38] sm:$0xff] }
  0x16   : > { %754 = vst.msk [vmem:[#allocation2 + $0x80] sm:$0xff] %vm737_vm0, %v6575_v4  ;;  %755 = vst.msk [vmem:[#allocation2 + $0x88] sm:$0xff] %vm737_vm0, %v6575_v4  ;;  %v1788_v20 = vld [vmem:[%s8422_s6 + $0x40] sm:$0xff]  ;;  %v1791_v22 = vld [vmem:[%s8422_s6 + $0x58] sm:$0xff] }
  0x17   : > { %756 = vst.msk [vmem:[#allocation2 + $0x90] sm:$0xff] %vm737_vm0, %v6575_v4  ;;  %757 = vst.msk [vmem:[#allocation2 + $0x98] sm:$0xff] %vm737_vm0, %v6575_v4  ;;  %v287_v21 = vld [vmem:[%s6716_s14 + $0x40] sm:$0xff]  ;;  %v288_v23 = vld [vmem:[%s6716_s14 + $0x48] sm:$0xff] }
  0x18   : > { %758 = vst.msk [vmem:[#allocation2 + $0xa0] sm:$0xff] %vm737_vm0, %v6575_v4  ;;  %759 = vst.msk [vmem:[#allocation2 + $0xa8] sm:$0xff] %vm737_vm0, %v6575_v4  ;;  %1839 = vperm.xlu1 %6533, %v1785_v10   ;;  %5772 = vmatmul.mubr.msk.f32.gmra.mrb[2].mxu0 %vm319_vm1, %v282_v11  ;;  %v1790_v24 = vld [vmem:[%s8422_s6 + $0x50] sm:$0xff]  ;;  %v1793_v26 = vld [vmem:[%s8422_s6 + $0x68] sm:$0xff] }
  0x19   : > { %760 = vst.msk [vmem:[#allocation2 + $0xb0] sm:$0xff] %vm737_vm0, %v6575_v4  ;;  %761 = vst.msk [vmem:[#allocation2 + $0xb8] sm:$0xff] %vm737_vm0, %v6575_v4  ;;  %1834 = vperm.xlu0 %6532, %v1784_v12   ;;  %5774 = vmatprep.mubr.msk.f32.mxu0 %vm319_vm1, %v283_v13  ;;  %v289_v25 = vld [vmem:[%s6716_s14 + $0x50] sm:$0xff]  ;;  %v290_v27 = vld [vmem:[%s6716_s14 + $0x58] sm:$0xff] }
  0x1a   : > { %762 = vst.msk [vmem:[#allocation2 + $0xc0] sm:$0xff] %vm737_vm0, %v6575_v4  ;;  %763 = vst.msk [vmem:[#allocation2 + $0xc8] sm:$0xff] %vm737_vm0, %v6575_v4  ;;  %v1792_v28 = vld [vmem:[%s8422_s6 + $0x60] sm:$0xff]  ;;  %v1795_v30 = vld [vmem:[%s8422_s6 + $0x78] sm:$0xff] }
  0x1b   : > { %764 = vst.msk [vmem:[#allocation2 + $0xd0] sm:$0xff] %vm737_vm0, %v6575_v4  ;;  %765 = vst.msk [vmem:[#allocation2 + $0xd8] sm:$0xff] %vm737_vm0, %v6575_v4  ;;  %v291_v29 = vld [vmem:[%s6716_s14 + $0x60] sm:$0xff]  ;;  %v292_v31 = vld [vmem:[%s6716_s14 + $0x68] sm:$0xff] }
  0x1c   : > { %766 = vst.msk [vmem:[#allocation2 + $0xe0] sm:$0xff] %vm737_vm0, %v6575_v4  ;;  %767 = vst.msk [vmem:[#allocation2 + $0xe8] sm:$0xff] %vm737_vm0, %v6575_v4  ;;  %1849 = vperm.xlu1 %6533, %v1787_v14   ;;  %5775 = vmatmul.mubr.msk.f32.gmra.mrb[4].mxu0 %vm319_vm1, %v284_v15  ;;  %v1794_v32 = vld [vmem:[%s8422_s6 + $0x70] sm:$0xff]  ;;  %v1797_v34 = vld [vmem:[%s8422_s6 + $0x88] sm:$0xff] }
  0x1d   : > { %768 = vst.msk [vmem:[#allocation2 + $0xf0] sm:$0xff] %vm737_vm0, %v6575_v4  ;;  %769 = vst.msk [vmem:[#allocation2 + $0xf8] sm:$0xff] %vm737_vm0, %v6575_v4  ;;  %1844 = vperm.xlu0 %6532, %v1786_v16   ;;  %5777 = vmatprep.mubr.msk.f32.mxu0 %vm319_vm1, %v285_v17  ;;  %v293_v33 = vld [vmem:[%s6716_s14 + $0x70] sm:$0xff]  ;;  %v294_v35 = vld [vmem:[%s6716_s14 + $0x78] sm:$0xff] }
  0x1e   : > { %770 = vst.msk [vmem:[#allocation2 + $0x100] sm:$0xff] %vm737_vm0, %v6575_v4  ;;  %771 = vst.msk [vmem:[#allocation2 + $0x108] sm:$0xff] %vm737_vm0, %v6575_v4  ;;  %v1796_v36 = vld [vmem:[%s8422_s6 + $0x80] sm:$0xff]  ;;  %v1799_v38 = vld [vmem:[%s8422_s6 + $0x98] sm:$0xff] }
  0x1f   : > { %772 = vst.msk [vmem:[#allocation2 + $0x110] sm:$0xff] %vm737_vm0, %v6575_v4  ;;  %773 = vst.msk [vmem:[#allocation2 + $0x118] sm:$0xff] %vm737_vm0, %v6575_v4  ;;  %v295_v37 = vld [vmem:[%s6716_s14 + $0x80] sm:$0xff]  ;;  %v296_v39 = vld [vmem:[%s6716_s14 + $0x88] sm:$0xff] }
  0x20   : > { %1859 = vperm.xlu1 %6533, %v1789_v18   ;;  %5778 = vmatmul.mubr.msk.f32.gmra.mrb[6].mxu0 %vm319_vm1, %v286_v19  ;;  %v1798_v40 = vld [vmem:[%s8422_s6 + $0x90] sm:$0xff]  ;;  %v1801_v42 = vld [vmem:[%s8422_s6 + $0xa8] sm:$0xff]  ;;  %v298_v43 = vld [vmem:[%s6716_s14 + $0x98] sm:$0xff]  ;;  %775 = vst.msk [vmem:[#allocation2 + $0x120] sm:$0x3] %vm774_vm3, %v6575_v4 }
  0x21   : > { %1854 = vperm.xlu0 %6532, %v1788_v20   ;;  %5780 = vmatprep.mubr.msk.f32.mxu0 %vm319_vm1, %v287_v21  ;;  %v297_v41 = vld [vmem:[%s6716_s14 + $0x90] sm:$0xff]  ;;  %v1800_v44 = vld [vmem:[%s8422_s6 + $0xa0] sm:$0xff]  ;;  %v1803_v46 = vld [vmem:[%s8422_s6 + $0xb8] sm:$0xff] }
  0x22   : > { %v299_v45 = vld [vmem:[%s6716_s14 + $0xa0] sm:$0xff]  ;;  %v300_v47 = vld [vmem:[%s6716_s14 + $0xa8] sm:$0xff]  ;;  %v1802_v48 = vld [vmem:[%s8422_s6 + $0xb0] sm:$0xff] }
  0x23   : > { %v301_v49 = vld [vmem:[%s6716_s14 + $0xb0] sm:$0xff]  ;;  %v1805_v50 = vld [vmem:[%s8422_s6 + $0xc8] sm:$0xff]  ;;  %v302_v51 = vld [vmem:[%s6716_s14 + $0xb8] sm:$0xff] }
  0x24   : > { %1869 = vperm.xlu1 %6533, %v1791_v22   ;;  %5781 = vmatmul.mubr.msk.f32.gmra.mrb[8].mxu0 %vm319_vm1, %v288_v23  ;;  %v1804_v52 = vld [vmem:[%s8422_s6 + $0xc0] sm:$0xff]  ;;  %v1807_v54 = vld [vmem:[%s8422_s6 + $0xd8] sm:$0xff]  ;;  %v304_v55 = vld [vmem:[%s6716_s14 + $0xc8] sm:$0xff] }
  0x25   : > { %1864 = vperm.xlu0 %6532, %v1790_v24   ;;  %5783 = vmatprep.mubr.msk.f32.mxu0 %vm319_vm1, %v289_v25  ;;  %v303_v53 = vld [vmem:[%s6716_s14 + $0xc0] sm:$0xff]  ;;  %v1806_v56 = vld [vmem:[%s8422_s6 + $0xd0] sm:$0xff]  ;;  %v1809_v58 = vld [vmem:[%s8422_s6 + $0xe8] sm:$0xff] }
  0x26   : > { %v305_v57 = vld [vmem:[%s6716_s14 + $0xd0] sm:$0xff]  ;;  %v306_v59 = vld [vmem:[%s6716_s14 + $0xd8] sm:$0xff]  ;;  %v1808_v60 = vld [vmem:[%s8422_s6 + $0xe0] sm:$0xff] }
  0x27   : > { %v307_v61 = vld [vmem:[%s6716_s14 + $0xe0] sm:$0xff]  ;;  %v1811_v62 = vld [vmem:[%s8422_s6 + $0xf8] sm:$0xff]  ;;  %v308_v63 = vld [vmem:[%s6716_s14 + $0xe8] sm:$0xff] }
  0x28   : > { %1879 = vperm.xlu1 %6533, %v1793_v26   ;;  %5784 = vmatmul.mubr.msk.f32.gmra.mrb[10].mxu0 %vm319_vm1, %v290_v27  ;;  %v1810_v0 = vld [vmem:[%s8422_s6 + $0xf0] sm:$0xff]  ;;  %v841_v2 = vld [vmem:[%s8421_s5 + $0x8] sm:$0xff]  ;;  %v310_v3 = vld [vmem:[%s6716_s14 + $0xf8] sm:$0xff] }
  0x29   : > { %1874 = vperm.xlu0 %6532, %v1792_v28   ;;  %5786 = vmatprep.mubr.msk.f32.mxu0 %vm319_vm1, %v291_v29  ;;  %v309_v1 = vld [vmem:[%s6716_s14 + $0xf0] sm:$0xff]  ;;  %v840_v5 = vld [vmem:[%s8421_s5] sm:$0xff]  ;;  %v843_v6 = vld [vmem:[%s8421_s5 + $0x18] sm:$0xff] }
  0x2a   : > { %v842_v7 = vld [vmem:[%s8421_s5 + $0x10] sm:$0xff]  ;;  %v845_v8 = vld [vmem:[%s8421_s5 + $0x28] sm:$0xff]  ;;  %v844_v9 = vld [vmem:[%s8421_s5 + $0x20] sm:$0xff] }
  0x2b   : > { %v847_v10 = vld [vmem:[%s8421_s5 + $0x38] sm:$0xff]  ;;  %v846_v11 = vld [vmem:[%s8421_s5 + $0x30] sm:$0xff]  ;;  %v849_v12 = vld [vmem:[%s8421_s5 + $0x48] sm:$0xff] }
  0x2c   : > { %1889 = vperm.xlu1 %6533, %v1795_v30   ;;  %5787 = vmatmul.mubr.msk.f32.gmra.mrb[12].mxu0 %vm319_vm1, %v292_v31  ;;  %v848_v13 = vld [vmem:[%s8421_s5 + $0x40] sm:$0xff]  ;;  %v851_v14 = vld [vmem:[%s8421_s5 + $0x58] sm:$0xff]  ;;  %v850_v15 = vld [vmem:[%s8421_s5 + $0x50] sm:$0xff] }
  0x2d   : > { %1884 = vperm.xlu0 %6532, %v1794_v32   ;;  %5789 = vmatprep.mubr.msk.f32.mxu0 %vm319_vm1, %v293_v33  ;;  %v853_v16 = vld [vmem:[%s8421_s5 + $0x68] sm:$0xff]  ;;  %v852_v17 = vld [vmem:[%s8421_s5 + $0x60] sm:$0xff]  ;;  %v855_v18 = vld [vmem:[%s8421_s5 + $0x78] sm:$0xff] }
  0x2e   : > { %v854_v19 = vld [vmem:[%s8421_s5 + $0x70] sm:$0xff]  ;;  %v857_v20 = vld [vmem:[%s8421_s5 + $0x88] sm:$0xff]  ;;  %v856_v21 = vld [vmem:[%s8421_s5 + $0x80] sm:$0xff] }
  0x2f   : > { %v859_v22 = vld [vmem:[%s8421_s5 + $0x98] sm:$0xff]  ;;  %v5126_v23 = vld [vmem:[%s8419_s3 + $0x4] sm:$0xf]  ;;  %v858_v24 = vld [vmem:[%s8421_s5 + $0x90] sm:$0xff] }
  0x30   : > { %1899 = vperm.xlu1 %6533, %v1797_v34   ;;  %5790 = vmatmul.mubr.msk.f32.gmra.mrb[14].mxu0 %vm319_vm1, %v294_v35  ;;  %v1065_v25 = vld [vmem:[#allocation2 + $0x1] sm:$0xff]  ;;  %v1066_v26 = vld [vmem:[#allocation2 + $0x9] sm:$0xff]  ;;  %v863_v4 = vld [vmem:[%s8421_s5 + $0xb8] sm:$0xff] }
  0x31   : > { %1894 = vperm.xlu0 %6532, %v1796_v36   ;;  %5792 = vmatprep.mubr.msk.f32.mxu0 %vm319_vm1, %v295_v37  ;;  %v861_v27 = vld [vmem:[%s8421_s5 + $0xa8] sm:$0xff]  ;;  %v5261_v28 = vld [vmem:[%s8419_s3 + $0x10] sm:$0xf]  ;;  %v860_v29 = vld [vmem:[%s8421_s5 + $0xa0] sm:$0xff] }
  0x32   : > { %5816 = vmatprep.subr.msk.mxu0 %vm1195_vm2, %v5126_v23  ;;  %6016 = vmatprep.subr.msk.mxu1 %vm1195_vm2, %v5261_v28  ;;  %v862_v30 = vld [vmem:[%s8421_s5 + $0xb0] sm:$0xff]  ;;  %v865_v31 = vld [vmem:[%s8421_s5 + $0xc8] sm:$0xff]  ;;  %v864_v32 = vld [vmem:[%s8421_s5 + $0xc0] sm:$0xff] }
  0x33   : > { %5817 = vmatpush3.msk.msra.mxu0 %vm1195_vm2, %v5126_v23  ;;  %6017 = vmatpush3.msk.msra.mxu1 %vm1195_vm2, %v5261_v28  ;;  %v6963_v33 = vld [vmem:[%s8419_s3 + $0x14] sm:$0xf]  ;;  %v867_v34 = vld [vmem:[%s8421_s5 + $0xd8] sm:$0xff]  ;;  %v869_v36 = vld [vmem:[%s8421_s5 + $0xe8] sm:$0xff] }
  0x34   : > { %1909 = vperm.xlu1 %6533, %v1799_v38   ;;  %5793 = vmatmul.mubr.msk.f32.gmra.mrb[16].mxu0 %vm319_vm1, %v296_v39  ;;  %v866_v35 = vld [vmem:[%s8421_s5 + $0xd0] sm:$0xff]  ;;  %v868_v37 = vld [vmem:[%s8421_s5 + $0xe0] sm:$0xff]  ;;  %v871_v38 = vld [vmem:[%s8421_s5 + $0xf8] sm:$0xff] }
  0x35   : > { %1904 = vperm.xlu0 %6532, %v1798_v40   ;;  %5795 = vmatprep.mubr.msk.f32.mxu0 %vm319_vm1, %v297_v41  ;;  %v870_v39 = vld [vmem:[%s8421_s5 + $0xf0] sm:$0xff] }
  0x36   : > { %6066 = vmatprep.subr.msk.mxu1 %vm1195_vm2, %v6963_v33 }
  0x38   : > { %1919 = vperm.xlu1 %6533, %v1801_v42   ;;  %5796 = vmatmul.mubr.msk.f32.gmra.mrb[18].mxu0 %vm319_vm1, %v298_v43 }
  0x39   : > { %1914 = vperm.xlu0 %6532, %v1800_v44   ;;  %5798 = vmatprep.mubr.msk.f32.mxu0 %vm319_vm1, %v299_v45 }
  0x3c   : > { %1929 = vperm.xlu1 %6533, %v1803_v46   ;;  %5799 = vmatmul.mubr.msk.f32.gmra.mrb[20].mxu0 %vm319_vm1, %v300_v47 }
  0x3d   : > { %1924 = vperm.xlu0 %6532, %v1802_v48   ;;  %5801 = vmatprep.mubr.msk.f32.mxu0 %vm319_vm1, %v301_v49 }
  0x40   : > { %1939 = vperm.xlu1 %6533, %v1805_v50   ;;  %5802 = vmatmul.mubr.msk.f32.gmra.mrb[22].mxu0 %vm319_vm1, %v302_v51 }
  0x41   : > { %1934 = vperm.xlu0 %6532, %v1804_v52   ;;  %5804 = vmatprep.mubr.msk.f32.mxu0 %vm319_vm1, %v303_v53 }
  0x44   : > { %1949 = vperm.xlu1 %6533, %v1807_v54   ;;  %5805 = vmatmul.mubr.msk.f32.gmra.mrb[24].mxu0 %vm319_vm1, %v304_v55 }
  0x45   : > { %1944 = vperm.xlu0 %6532, %v1806_v56   ;;  %5807 = vmatprep.mubr.msk.f32.mxu0 %vm319_vm1, %v305_v57 }
  0x48   : > { %1959 = vperm.xlu1 %6533, %v1809_v58   ;;  %5808 = vmatmul.mubr.msk.f32.gmra.mrb[26].mxu0 %vm319_vm1, %v306_v59 }
  0x49   : > { %1954 = vperm.xlu0 %6532, %v1808_v60   ;;  %5810 = vmatprep.mubr.msk.f32.mxu0 %vm319_vm1, %v307_v61  ;;  %v1064_v60 = vld [vmem:[%s8419_s3] sm:$0xf] }
  0x4a   : > { %5866 = vmatprep.subr.msk.mxu0 %vm1195_vm2, %v1064_v60 }
  0x4c   : > { %1969 = vperm.xlu1 %6533, %v1811_v62   ;;  %5811 = vmatmul.mubr.msk.f32.gmra.mrb[28].mxu0 %vm319_vm1, %v308_v63 }
  0x4d   : > { %1964 = vperm.xlu0 %6532, %v1810_v0   ;;  %5813 = vmatprep.mubr.msk.f32.mxu0 %vm319_vm1, %v309_v1 }
  0x50   : > { %879 = vperm.xlu1 %6533, %v841_v2   ;;  %5814 = vmatmul.mubr.msk.f32.gmra.mrb[30].mxu0 %vm319_vm1, %v310_v3 }
  0x51   : > { %874 = vperm.xlu0 %6532, %v840_v5   ;;  %5818 = vmatprep.mubr.msk.f32.mxu0 %vm737_vm0, %v1065_v25 }
  0x54   : > { %889 = vperm.xlu1 %6533, %v843_v6   ;;  %5819 = vmatmul.mubr.msk.f32.vlgmr.msra.gmra.mrb[32].mxu0 %vm737_vm0, %v1066_v26 }
  0x55   : > { %884 = vperm.xlu0 %6532, %v842_v7   ;;  %5867 = vmatpush3.msk.msra.mxu0 %vm1195_vm2, %v1064_v60 }
  0x58   : > { %899 = vperm.xlu1 %6533, %v845_v8  }
  0x59   : > { %894 = vperm.xlu0 %6532, %v844_v9  }
  0x5c   : > { %909 = vperm.xlu1 %6533, %v847_v10  }
  0x5d   : > { %904 = vperm.xlu0 %6532, %v846_v11  }
  0x60   : > { %919 = vperm.xlu1 %6533, %v849_v12  }
  0x61   : > { %914 = vperm.xlu0 %6532, %v848_v13  }
  0x64   : > { %929 = vperm.xlu1 %6533, %v851_v14   ;;  %v7065_v14 = vld [vmem:[%s8418_s2] ss:$0 sm:$0xff] }
  0x65   : > { %924 = vperm.xlu0 %6532, %v850_v15  }
  0x68   : > { %939 = vperm.xlu1 %6533, %v853_v16  }
  0x69   : > { %934 = vperm.xlu0 %6532, %v852_v17  }
  0x6c   : > { %949 = vperm.xlu1 %6533, %v855_v18  }
  0x6d   : > { %944 = vperm.xlu0 %6532, %v854_v19  }
  0x70   : > { %959 = vperm.xlu1 %6533, %v857_v20  }
  0x71   : > { %954 = vperm.xlu0 %6532, %v856_v21  }
  0x74   : > { %969 = vperm.xlu1 %6533, %v859_v22  }
  0x75   : > { %964 = vperm.xlu0 %6532, %v858_v24  }
  0x78   : > { %979 = vperm.xlu1 %6533, %v861_v27  }
  0x79   : > { %974 = vperm.xlu0 %6532, %v860_v29  }
  0x7c   : > { %989 = vperm.xlu1 %6533, %v863_v4  }
  0x7d   : > { %984 = vperm.xlu0 %6532, %v862_v30  }
  0x80   : > { %999 = vperm.xlu1 %6533, %v865_v31  }
  0x81   : > { %994 = vperm.xlu0 %6532, %v864_v32  }
  0x84   : > { %1009 = vperm.xlu1 %6533, %v867_v34  }
  0x85   : > { %1004 = vperm.xlu0 %6532, %v866_v35  }
  0x88   : > { %1019 = vperm.xlu1 %6533, %v869_v36  }
  0x89   : > { %1014 = vperm.xlu0 %6532, %v868_v37  }
  0x8c   : > { %1029 = vperm.xlu1 %6533, %v871_v38  }
  0x8d   : > { %1024 = vperm.xlu0 %6532, %v870_v39  }
  0x8f   : > { %v6985_v40 = vpop.permute.xlu1 %1824  ;;  %v6987_v41 = vpop.permute.xlu0 %1814 }
  0x90   : > { %8573 = vst [vmem:[#allocation3_spill] sm:$0xff] %v6987_v41 }
  0x93   : > { %v6989_v42 = vpop.permute.xlu1 %1829 }
  0x94   : > { %v6991_v43 = vpop.permute.xlu0 %1819 }
  0x97   : > { %v6993_v44 = vpop.permute.xlu1 %1839 }
  0x98   : > { %v6995_v45 = vpop.permute.xlu0 %1834 }
  0x9b   : > { %v6997_v46 = vpop.permute.xlu1 %1849 }
  0x9c   : > { %v6999_v47 = vpop.permute.xlu0 %1844 }
  0x9f   : > { %v7001_v48 = vpop.permute.xlu1 %1859 }
  0xa0   : > { %v7003_v49 = vpop.permute.xlu0 %1854 }
  0xa3   : > { %v7005_v50 = vpop.permute.xlu1 %1869 }
  0xa4   : > { %v7007_v51 = vpop.permute.xlu0 %1864 }
  0xa7   : > { %v7009_v52 = vpop.permute.xlu1 %1879 }
  0xa8   : > { %8574 = vst [vmem:[#allocation4_spill] sm:$0xff] %v7009_v52  ;;  %v7011_v53 = vpop.permute.xlu0 %1874 }
  0xa9   : > { %8575 = vst [vmem:[#allocation5_spill] sm:$0xff] %v7011_v53 }
  0xab   : > { %v7013_v54 = vpop.permute.xlu1 %1889 }
  0xac   : > { %8576 = vst [vmem:[#allocation6_spill] sm:$0xff] %v7013_v54  ;;  %v7015_v55 = vpop.permute.xlu0 %1884 }
  0xad   : > { %8577 = vst [vmem:[#allocation7_spill] sm:$0xff] %v7015_v55 }
  0xaf   : > { %v7017_v56 = vpop.permute.xlu1 %1899 }
  0xb0   : > { %8578 = vst [vmem:[#allocation8_spill] sm:$0xff] %v7017_v56  ;;  %v7019_v57 = vpop.permute.xlu0 %1894 }
  0xb1   : > { %8579 = vst [vmem:[#allocation9_spill] sm:$0xff] %v7019_v57 }
  0xb3   : > { %v7021_v58 = vpop.permute.xlu1 %1909 }
  0xb4   : > { %8580 = vst [vmem:[#allocation10_spill] sm:$0xff] %v7021_v58  ;;  %v7023_v59 = vpop.permute.xlu0 %1904 }
  0xb5   : > { %8581 = vst [vmem:[#allocation11_spill] sm:$0xff] %v7023_v59 }
  0xb7   : > { %v7028_v61 = vpop.permute.xlu1 %1919 }
  0xb8   : > { %8582 = vst [vmem:[#allocation12_spill] sm:$0xff] %v7028_v61  ;;  %v7031_v62 = vpop.permute.xlu0 %1914 }
  0xb9   : > { %8583 = vst [vmem:[#allocation13_spill] sm:$0xff] %v7031_v62 }
  0xbb   : > { %v7034_v63 = vpop.permute.xlu1 %1929 }
  0xbc   : > { %8584 = vst [vmem:[#allocation14_spill] sm:$0xff] %v7034_v63  ;;  %v7036_v0 = vpop.permute.xlu0 %1924 }
  0xbd   : > { %8585 = vst [vmem:[#allocation15_spill] sm:$0xff] %v7036_v0 }
  0xbf   : > { %v7038_v1 = vpop.permute.xlu1 %1939 }
  0xc0   : > { %8586 = vst [vmem:[#allocation16_spill] sm:$0xff] %v7038_v1  ;;  %v7040_v2 = vpop.permute.xlu0 %1934 }
  0xc1   : > { %8587 = vst [vmem:[#allocation17_spill] sm:$0xff] %v7040_v2 }
  0xc3   : > { %v7042_v3 = vpop.permute.xlu1 %1949 }
  0xc4   : > { %8588 = vst [vmem:[#allocation18_spill] sm:$0xff] %v7042_v3  ;;  %v7044_v5 = vpop.permute.xlu0 %1944 }
  0xc5   : > { %8589 = vst [vmem:[#allocation19_spill] sm:$0xff] %v7044_v5 }
  0xc7   : > { %v7046_v6 = vpop.permute.xlu1 %1959 }
  0xc8   : > { %8590 = vst [vmem:[#allocation20_spill] sm:$0xff] %v7046_v6  ;;  %v7048_v7 = vpop.permute.xlu0 %1954 }
  0xc9   : > { %8591 = vst [vmem:[#allocation21_spill] sm:$0xff] %v7048_v7 }
  0xcb   : > { %v7050_v8 = vpop.permute.xlu1 %1969 }
  0xcc   : > { %8592 = vst [vmem:[#allocation22_spill] sm:$0xff] %v7050_v8  ;;  %v7052_v9 = vpop.permute.xlu0 %1964 }
  0xcd   : > { %8593 = vst [vmem:[#allocation23_spill] sm:$0xff] %v7052_v9 }
  0xcf   : > { %v7054_v10 = vpop.permute.xlu1 %879 }
  0xd0   : > { %v7056_v11 = vpop.permute.xlu0 %874 }
  0xd3   : > { %v7058_v12 = vpop.permute.xlu1 %889 }
  0xd4   : > { %v7060_v13 = vpop.permute.xlu0 %884 }
  0xd5   : > { %8594 = vst [vmem:[#allocation24_spill] sm:$0xff] %v7060_v13 }
  0xd7   : > { %v7067_v15 = vpop.permute.xlu1 %899 }
  0xd8   : > { %8595 = vst [vmem:[#allocation25_spill] sm:$0xff] %v7067_v15  ;;  %v7069_v16 = vpop.permute.xlu0 %894 }
  0xd9   : > { %8596 = vst [vmem:[#allocation26_spill] sm:$0xff] %v7069_v16 }
  0xdb   : > { %v7073_v24 = vpop.permute.xlu1 %909 }
  0xdc   : > { %8597 = vst [vmem:[#allocation27_spill] sm:$0xff] %v7073_v24  ;;  %v7076_v28 = vpop.permute.xlu0 %904 }
  0xdd   : > { %8598 = vst [vmem:[#allocation28_spill] sm:$0xff] %v7076_v28 }
  0xdf   : > { %v7084_v39 = vpop.permute.xlu1 %919 }
  0xe0   : > { %8599 = vst [vmem:[#allocation29_spill] sm:$0xff] %v7084_v39 }
  0xe7   : > { %v5770_v17 = vpop.f32.mrb[0].mxu0 }
  0xe8   : > { %v488_v18 = vadd.f32 %v5770_v17, %v7065_v14  ;;  %v482_v19 = vpop.f32.mrb[1].mxu0  ;;  %v7087_v17 = vpop.permute.xlu0 %914 }
  0xe9   : > { %v483_v20 = vadd.f32 %v7065_v14, %v482_v19  ;;  %8600 = vst [vmem:[#allocation30_spill] sm:$0xff] %v7087_v17 }
  0xea   : > { %vm642_vm4 = vcmp.gt.f32.partialorder %v488_v18, 0.0  ;;  %v674_v21 = vmul.f32 0.1, %v488_v18 }
  0xeb   : > { %vm641_vm5 = vcmp.gt.f32.partialorder %v483_v20, 0.0  ;;  %v673_v22 = vmul.f32 0.1, %v483_v20  ;;  %v5773_v23 = vpop.f32.mrb[2].mxu0 }
  0xec   : > { %v706_v25 = vsel %vm642_vm4, %v488_v18, %v674_v21  ;;  %v498_v26 = vadd.f32 %v5773_v23, %v7065_v14  ;;  %v492_v27 = vpop.f32.mrb[3].mxu0  ;;  %v7093_v23 = vld [vmem:[%s8419_s3 + $0x18] sm:$0xf] }
  0xed   : > { %777 = vst.msk [vmem:[#allocation2 + $0x19] sm:$0xff] %vm737_vm0, %v706_v25  ;;  %v705_v29 = vsel %vm641_vm5, %v483_v20, %v673_v22  ;;  %v493_v4 = vadd.f32 %v7065_v14, %v492_v27 }
  0xee   : > { %776 = vst.msk [vmem:[#allocation2 + $0x11] sm:$0xff] %vm737_vm0, %v705_v29  ;;  %vm644_vm6 = vcmp.gt.f32.partialorder %v498_v26, 0.0  ;;  %v676_v30 = vmul.f32 0.1, %v498_v26 }
  0xef   : > { %vm643_vm7 = vcmp.gt.f32.partialorder %v493_v4, 0.0  ;;  %v675_v31 = vmul.f32 0.1, %v493_v4  ;;  %v5776_v32 = vpop.f32.mrb[4].mxu0 }
  0xf0   : > { %v708_v34 = vsel %vm644_vm6, %v498_v26, %v676_v30  ;;  %v508_v35 = vadd.f32 %v5776_v32, %v7065_v14  ;;  %v502_v36 = vpop.f32.mrb[5].mxu0 }
  0xf1   : > { %779 = vst.msk [vmem:[#allocation2 + $0x29] sm:$0xff] %vm737_vm0, %v708_v34  ;;  %v707_v37 = vsel %vm643_vm7, %v493_v4, %v675_v31  ;;  %v503_v38 = vadd.f32 %v7065_v14, %v502_v36 }
  0xf2   : > { %778 = vst.msk [vmem:[#allocation2 + $0x21] sm:$0xff] %vm737_vm0, %v707_v37  ;;  %vm646_vm8 = vcmp.gt.f32.partialorder %v508_v35, 0.0  ;;  %v678_v60 = vmul.f32 0.1, %v508_v35 }
  0xf3   : > { %vm645_vm9 = vcmp.gt.f32.partialorder %v503_v38, 0.0  ;;  %v677_v18 = vmul.f32 0.1, %v503_v38  ;;  %v5779_v19 = vpop.f32.mrb[6].mxu0 }
  0xf4   : > { %v710_v20 = vsel %vm646_vm8, %v508_v35, %v678_v60  ;;  %v518_v21 = vadd.f32 %v5779_v19, %v7065_v14  ;;  %v512_v22 = vpop.f32.mrb[7].mxu0  ;;  %v1068_v34 = vld [vmem:[#allocation2 + $0x19] sm:$0xff]  ;;  %v7115_v35 = vld [vmem:[%s8419_s3 + $0x8] sm:$0xf] }
  0xf5   : > { %781 = vst.msk [vmem:[#allocation2 + $0x39] sm:$0xff] %vm737_vm0, %v710_v20  ;;  %v709_v25 = vsel %vm645_vm9, %v503_v38, %v677_v18  ;;  %v7096_v26 = vld [vmem:[#allocation2 + $0x18] sm:$0xff]  ;;  %v7098_v27 = vld [vmem:[#allocation2 + $0x10] sm:$0xff]  ;;  %v513_v29 = vadd.f32 %v7065_v14, %v512_v22  ;;  %v7119_v38 = vpop.permute.xlu1 %929  ;;  %v7124_v20 = vpop.permute.xlu0 %924  ;;  %5916 = vmatprep.subr.msk.mxu0 %vm1195_vm2, %v7115_v35 }
  0xf6   : > { %v1067_v4 = vld [vmem:[#allocation2 + $0x11] sm:$0xff]  ;;  %780 = vst.msk [vmem:[#allocation2 + $0x31] sm:$0xff] %vm737_vm0, %v709_v25  ;;  %v7104_v30 = vmul.f32 %v7096_v26, %v7054_v10  ;;  %v7108_v31 = vmul.f32 %v7098_v27, %v7056_v11  ;;  %vm648_vm10 = vcmp.gt.f32.partialorder %v518_v21, 0.0  ;;  %v680_v32 = vmul.f32 0.1, %v518_v21  ;;  %8603 = vst [vmem:[#allocation33_spill] sm:$0xff] %v7119_v38 }
  0xf7   : > { %5821 = vmatprep.mubr.msk.f32.mxu0 %vm737_vm0, %v1067_v4  ;;  %6018 = vmatprep.mubr.msk.f32.mxu1 %vm737_vm0, %v1067_v4  ;;  %vm647_vm11 = vcmp.gt.f32.partialorder %v513_v29, 0.0  ;;  %v679_v36 = vmul.f32 0.1, %v513_v29  ;;  %v5782_v37 = vpop.f32.mrb[8].mxu0  ;;  %8604 = vst [vmem:[#allocation34_spill] sm:$0xff] %v7124_v20 }
  0xf8   : > { %8601 = vst [vmem:[#allocation31_spill] sm:$0xff] %v7104_v30  ;;  %8602 = vst [vmem:[#allocation32_spill] sm:$0xff] %v7108_v31  ;;  %5822 = vmatmul.mubr.msk.f32.gmra.mrb[34].mxu0 %vm737_vm0, %v1068_v34  ;;  %6019 = vmatmul.mubr.msk.f32.vlgmr.msra.gmra.mrb[0].mxu1 %vm737_vm0, %v1068_v34  ;;  %v712_v60 = vsel %vm648_vm10, %v518_v21, %v680_v32  ;;  %v528_v18 = vadd.f32 %v5782_v37, %v7065_v14  ;;  %v522_v19 = vpop.f32.mrb[9].mxu0  ;;  %v1070_v37 = vld [vmem:[#allocation2 + $0x29] sm:$0xff] }
  0xf9   : > { %6067 = vmatpush3.msk.msra.mxu1 %vm1195_vm2, %v6963_v33  ;;  %v7128_v22 = vld [vmem:[#allocation2 + $0x28] sm:$0xff]  ;;  %v7130_v25 = vld [vmem:[#allocation2 + $0x20] sm:$0xff]  ;;  %783 = vst.msk [vmem:[#allocation2 + $0x49] sm:$0xff] %vm737_vm0, %v712_v60  ;;  %v711_v4 = vsel %vm647_vm11, %v513_v29, %v679_v36  ;;  %v523_v21 = vadd.f32 %v7065_v14, %v522_v19  ;;  %v7154_v9 = vpop.permute.xlu1 %939 }
  0xfa   : > { %v1069_v32 = vld [vmem:[#allocation2 + $0x21] sm:$0xff]  ;;  %6116 = vmatprep.subr.msk.mxu1 %vm1195_vm2, %v7093_v23  ;;  %782 = vst.msk [vmem:[#allocation2 + $0x41] sm:$0xff] %vm737_vm0, %v711_v4  ;;  %v7139_v33 = vmul.f32 %v7128_v22, %v7058_v12  ;;  %v7143_v34 = vmul.f32 %v7130_v25, %v7060_v13  ;;  %vm650_vm12 = vcmp.gt.f32.partialorder %v528_v18, 0.0  ;;  %v682_v29 = vmul.f32 0.1, %v528_v18  ;;  %8607 = vst [vmem:[#allocation37_spill] sm:$0xff] %v7154_v9 }
  0xfb   : > { %5824 = vmatprep.mubr.msk.f32.mxu0 %vm737_vm0, %v1069_v32  ;;  %vm649_vm13 = vcmp.gt.f32.partialorder %v523_v21, 0.0  ;;  %v681_v36 = vmul.f32 0.1, %v523_v21  ;;  %6021 = vmatprep.mubr.msk.f32.mxu1 %vm737_vm0, %v1069_v32  ;;  %v5785_v60 = vpop.f32.mrb[10].mxu0 }
  0xfc   : > { %8605 = vst [vmem:[#allocation35_spill] sm:$0xff] %v7139_v33  ;;  %8606 = vst [vmem:[#allocation36_spill] sm:$0xff] %v7143_v34  ;;  %5825 = vmatmul.mubr.msk.f32.gmra.mrb[36].mxu0 %vm737_vm0, %v1070_v37  ;;  %6022 = vmatmul.mubr.msk.f32.gmra.mrb[2].mxu1 %vm737_vm0, %v1070_v37  ;;  %v714_v33 = vsel %vm650_vm12, %v528_v18, %v682_v29  ;;  %v538_v30 = vadd.f32 %v5785_v60, %v7065_v14  ;;  %v532_v31 = vpop.f32.mrb[11].mxu0  ;;  %v1072_v18 = vld [vmem:[#allocation2 + $0x39] sm:$0xff] }
  0xfd   : > { %v7149_v19 = vld [vmem:[#allocation2 + $0x38] sm:$0xff]  ;;  %v7151_v4 = vld [vmem:[#allocation2 + $0x30] sm:$0xff]  ;;  %v713_v34 = vsel %vm649_vm13, %v523_v21, %v681_v36  ;;  %785 = vst.msk [vmem:[#allocation2 + $0x59] sm:$0xff] %vm737_vm0, %v714_v33  ;;  %v7167_v21 = vpop.permute.xlu0 %934  ;;  %v533_v36 = vadd.f32 %v7065_v14, %v532_v31 }
  0xfe   : > { %v1071_v8 = vld [vmem:[#allocation2 + $0x31] sm:$0xff]  ;;  %784 = vst.msk [vmem:[#allocation2 + $0x51] sm:$0xff] %vm737_vm0, %v713_v34  ;;  %v7160_v32 = vmul.f32 %v7149_v19, %v7067_v15  ;;  %v7164_v37 = vmul.f32 %v7151_v4, %v7069_v16  ;;  %8610 = vst [vmem:[#allocation40_spill] sm:$0xff] %v7167_v21  ;;  %vm652_vm14 = vcmp.gt.f32.partialorder %v538_v30, 0.0  ;;  %v684_v29 = vmul.f32 0.1, %v538_v30 }
  0xff   : > { %5827 = vmatprep.mubr.msk.f32.mxu0 %vm737_vm0, %v1071_v8  ;;  %6024 = vmatprep.mubr.msk.f32.mxu1 %vm737_vm0, %v1071_v8  ;;  %v5788_v33 = vpop.f32.mrb[12].mxu0  ;;  %vm651_vm15 = vcmp.gt.f32.partialorder %v533_v36, 0.0  ;;  %v683_v7 = vmul.f32 0.1, %v533_v36 }
 0x100   : > { %8608 = vst [vmem:[#allocation38_spill] sm:$0xff] %v7160_v32  ;;  %8609 = vst [vmem:[#allocation39_spill] sm:$0xff] %v7164_v37  ;;  %5828 = vmatmul.mubr.msk.f32.gmra.mrb[38].mxu0 %vm737_vm0, %v1072_v18  ;;  %v548_v34 = vadd.f32 %v5788_v33, %v7065_v14  ;;  %6025 = vmatmul.mubr.msk.f32.gmra.mrb[4].mxu1 %vm737_vm0, %v1072_v18  ;;  %v542_v60 = vpop.f32.mrb[13].mxu0  ;;  %v716_v6 = vsel %vm652_vm14, %v538_v30, %v684_v29  ;;  %v1074_v33 = vld [vmem:[#allocation2 + $0x49] sm:$0xff] }
 0x101   : > { %v7174_v32 = vld [vmem:[#allocation2 + $0x48] sm:$0xff]  ;;  %v7176_v37 = vld [vmem:[#allocation2 + $0x40] sm:$0xff]  ;;  %v543_v3 = vadd.f32 %v7065_v14, %v542_v60  ;;  %787 = vst.msk [vmem:[#allocation2 + $0x69] sm:$0xff] %vm737_vm0, %v716_v6  ;;  %v715_v5 = vsel %vm651_vm15, %v533_v36, %v683_v7  ;;  %v7191_v6 = vpop.permute.xlu1 %949  ;;  %v7196_v1 = vpop.permute.xlu0 %944 }
 0x102   : > { %v1073_v31 = vld [vmem:[#allocation2 + $0x41] sm:$0xff]  ;;  %v7182_v8 = vmul.f32 %v7174_v32, %v7073_v24  ;;  %v7186_v18 = vmul.f32 %v7176_v37, %v7076_v28  ;;  %vm654_vm3 = vcmp.gt.f32.partialorder %v548_v34, 0.0  ;;  %v686_v30 = vmul.f32 0.1, %v548_v34  ;;  %8613 = vst [vmem:[#allocation43_spill] sm:$0xff] %v7191_v6  ;;  %786 = vst.msk [vmem:[#allocation2 + $0x61] sm:$0xff] %vm737_vm0, %v715_v5 }
 0x103   : > { %5830 = vmatprep.mubr.msk.f32.mxu0 %vm737_vm0, %v1073_v31  ;;  %vm653_vm4 = vcmp.gt.f32.partialorder %v543_v3, 0.0  ;;  %6027 = vmatprep.mubr.msk.f32.mxu1 %vm737_vm0, %v1073_v31  ;;  %v5791_v29 = vpop.f32.mrb[14].mxu0  ;;  %v685_v60 = vmul.f32 0.1, %v543_v3  ;;  %8614 = vst [vmem:[#allocation44_spill] sm:$0xff] %v7196_v1 }
 0x104   : > { %8611 = vst [vmem:[#allocation41_spill] sm:$0xff] %v7182_v8  ;;  %8612 = vst [vmem:[#allocation42_spill] sm:$0xff] %v7186_v18  ;;  %5831 = vmatmul.mubr.msk.f32.gmra.mrb[40].mxu0 %vm737_vm0, %v1074_v33  ;;  %v558_v8 = vadd.f32 %v5791_v29, %v7065_v14  ;;  %6028 = vmatmul.mubr.msk.f32.gmra.mrb[6].mxu1 %vm737_vm0, %v1074_v33  ;;  %v552_v18 = vpop.f32.mrb[15].mxu0  ;;  %v718_v31 = vsel %vm654_vm3, %v548_v34, %v686_v30  ;;  %v1076_v33 = vld [vmem:[#allocation2 + $0x59] sm:$0xff] }
 0x105   : > { %v7198_v7 = vld [vmem:[#allocation2 + $0x58] sm:$0xff]  ;;  %v7200_v36 = vld [vmem:[#allocation2 + $0x50] sm:$0xff]  ;;  %v553_v2 = vadd.f32 %v7065_v14, %v552_v18  ;;  %789 = vst.msk [vmem:[#allocation2 + $0x79] sm:$0xff] %vm737_vm0, %v718_v31  ;;  %v717_v5 = vsel %vm653_vm4, %v543_v3, %v685_v60 }
 0x106   : > { %v1075_v63 = vld [vmem:[#allocation2 + $0x51] sm:$0xff]  ;;  %v7207_v29 = vmul.f32 %v7198_v7, %v7084_v39  ;;  %788 = vst.msk [vmem:[#allocation2 + $0x71] sm:$0xff] %vm737_vm0, %v717_v5  ;;  %v7213_v0 = vmul.f32 %v7200_v36, %v7087_v17  ;;  %vm656_vm5 = vcmp.gt.f32.partialorder %v558_v8, 0.0  ;;  %v688_v34 = vmul.f32 0.1, %v558_v8 }
 0x107   : > { %5833 = vmatprep.mubr.msk.f32.mxu0 %vm737_vm0, %v1075_v63  ;;  %vm655_vm6 = vcmp.gt.f32.partialorder %v553_v2, 0.0  ;;  %6030 = vmatprep.mubr.msk.f32.mxu1 %vm737_vm0, %v1075_v63  ;;  %v5794_v18 = vpop.f32.mrb[16].mxu0  ;;  %v687_v3 = vmul.f32 0.1, %v553_v2  ;;  %v7223_v63 = vpop.permute.xlu0 %954 }
 0x108   : > { %8615 = vst [vmem:[#allocation45_spill] sm:$0xff] %v7207_v29  ;;  %8616 = vst [vmem:[#allocation46_spill] sm:$0xff] %v7213_v0  ;;  %5834 = vmatmul.mubr.msk.f32.gmra.mrb[42].mxu0 %vm737_vm0, %v1076_v33  ;;  %v568_v30 = vadd.f32 %v5794_v18, %v7065_v14  ;;  %6031 = vmatmul.mubr.msk.f32.gmra.mrb[8].mxu1 %vm737_vm0, %v1076_v33  ;;  %v562_v60 = vpop.f32.mrb[17].mxu0  ;;  %v720_v31 = vsel %vm656_vm5, %v558_v8, %v688_v34  ;;  %v7220_v29 = vpop.permute.xlu1 %959 }
 0x109   : > { %v563_v5 = vadd.f32 %v7065_v14, %v562_v60  ;;  %8617 = vst [vmem:[#allocation47_spill] sm:$0xff] %v7220_v29  ;;  %791 = vst.msk [vmem:[#allocation2 + $0x89] sm:$0xff] %vm737_vm0, %v720_v31  ;;  %v719_v0 = vsel %vm655_vm6, %v553_v2, %v687_v3  ;;  %v7225_v62 = vld [vmem:[#allocation2 + $0x68] sm:$0xff]  ;;  %v7227_v58 = vld [vmem:[#allocation2 + $0x60] sm:$0xff] }
 0x10a   : > { %vm658_vm7 = vcmp.gt.f32.partialorder %v568_v30, 0.0  ;;  %v690_v61 = vmul.f32 0.1, %v568_v30  ;;  %8618 = vst [vmem:[#allocation48_spill] sm:$0xff] %v7223_v63  ;;  %8619 = vst [vmem:[#allocation49_spill] sm:$0xff] %v7225_v62  ;;  %v1077_v8 = vld [vmem:[#allocation2 + $0x61] sm:$0xff]  ;;  %v7232_v34 = vmul.f32 %v7225_v62, %v7119_v38  ;;  %v7236_v2 = vmul.f32 %v7227_v58, %v7124_v20 }
 0x10b   : > { %790 = vst.msk [vmem:[#allocation2 + $0x81] sm:$0xff] %vm737_vm0, %v719_v0  ;;  %vm657_vm8 = vcmp.gt.f32.partialorder %v563_v5, 0.0  ;;  %v689_v33 = vmul.f32 0.1, %v563_v5  ;;  %5836 = vmatprep.mubr.msk.f32.mxu0 %vm737_vm0, %v1077_v8  ;;  %v5797_v18 = vpop.f32.mrb[18].mxu0  ;;  %6033 = vmatprep.mubr.msk.f32.mxu1 %vm737_vm0, %v1077_v8  ;;  %v1078_v31 = vld [vmem:[#allocation2 + $0x69] sm:$0xff] }
 0x10c   : > { %8620 = vst [vmem:[#allocation50_spill] sm:$0xff] %v7232_v34  ;;  %8621 = vst [vmem:[#allocation51_spill] sm:$0xff] %v7236_v2  ;;  %v722_v3 = vsel %vm658_vm7, %v568_v30, %v690_v61  ;;  %v572_v0 = vpop.f32.mrb[19].mxu0  ;;  %v578_v34 = vadd.f32 %v5797_v18, %v7065_v14  ;;  %5837 = vmatmul.mubr.msk.f32.gmra.mrb[44].mxu0 %vm737_vm0, %v1078_v31  ;;  %6034 = vmatmul.mubr.msk.f32.gmra.mrb[10].mxu1 %vm737_vm0, %v1078_v31  ;;  %v7262_v31 = vpop.permute.xlu0 %964 }
 0x10d   : > { %v721_v60 = vsel %vm657_vm8, %v563_v5, %v689_v33  ;;  %v7240_v59 = vld [vmem:[#allocation2 + $0x78] sm:$0xff]  ;;  %v7242_v56 = vld [vmem:[#allocation2 + $0x70] sm:$0xff]  ;;  %793 = vst.msk [vmem:[#allocation2 + $0x99] sm:$0xff] %vm737_vm0, %v722_v3  ;;  %v573_v61 = vadd.f32 %v7065_v14, %v572_v0  ;;  %v7259_v3 = vpop.permute.xlu1 %969  ;;  %8627 = vst [vmem:[#allocation57_spill] sm:$0xff] %v7262_v31 }
 0x10e   : > { %8622 = vst [vmem:[#allocation52_spill] sm:$0xff] %v7240_v59  ;;  %8623 = vst [vmem:[#allocation53_spill] sm:$0xff] %v7242_v56  ;;  %v1079_v30 = vld [vmem:[#allocation2 + $0x71] sm:$0xff]  ;;  %v7252_v5 = vmul.f32 %v7240_v59, %v7154_v9  ;;  %v7256_v33 = vmul.f32 %v7242_v56, %v7167_v21  ;;  %vm660_vm9 = vcmp.gt.f32.partialorder %v578_v34, 0.0  ;;  %v692_v18 = vmul.f32 0.1, %v578_v34 }
 0x10f   : > { %792 = vst.msk [vmem:[#allocation2 + $0x91] sm:$0xff] %vm737_vm0, %v721_v60  ;;  %5839 = vmatprep.mubr.msk.f32.mxu0 %vm737_vm0, %v1079_v30  ;;  %v5800_v8 = vpop.f32.mrb[20].mxu0  ;;  %8626 = vst [vmem:[#allocation56_spill] sm:$0xff] %v7259_v3  ;;  %vm659_vm10 = vcmp.gt.f32.partialorder %v573_v61, 0.0  ;;  %v691_v60 = vmul.f32 0.1, %v573_v61  ;;  %6036 = vmatprep.mubr.msk.f32.mxu1 %vm737_vm0, %v1079_v30 }
 0x110   : > { %8624 = vst [vmem:[#allocation54_spill] sm:$0xff] %v7252_v5  ;;  %8625 = vst [vmem:[#allocation55_spill] sm:$0xff] %v7256_v33  ;;  %v588_v0 = vadd.f32 %v5800_v8, %v7065_v14  ;;  %v1080_v5 = vld [vmem:[#allocation2 + $0x79] sm:$0xff]  ;;  %v582_v2 = vpop.f32.mrb[21].mxu0  ;;  %v724_v54 = vsel %vm660_vm9, %v578_v34, %v692_v18 }
 0x111   : > { %v723_v55 = vsel %vm659_vm10, %v573_v61, %v691_v60  ;;  %5840 = vmatmul.mubr.msk.f32.gmra.mrb[46].mxu0 %vm737_vm0, %v1080_v5  ;;  %6037 = vmatmul.mubr.msk.f32.gmra.mrb[12].mxu1 %vm737_vm0, %v1080_v5  ;;  %v583_v52 = vadd.f32 %v7065_v14, %v582_v2  ;;  %795 = vst.msk [vmem:[#allocation2 + $0xa9] sm:$0xff] %vm737_vm0, %v724_v54  ;;  %v1082_v61 = vld [vmem:[#allocation2 + $0x89] sm:$0xff] }
 0x112   : > { %v7265_v57 = vld [vmem:[#allocation2 + $0x88] sm:$0xff]  ;;  %v7267_v33 = vld [vmem:[#allocation2 + $0x80] sm:$0xff]  ;;  %794 = vst.msk [vmem:[#allocation2 + $0xa1] sm:$0xff] %vm737_vm0, %v723_v55  ;;  %vm662_vm11 = vcmp.gt.f32.partialorder %v588_v0, 0.0  ;;  %v694_v5 = vmul.f32 0.1, %v588_v0 }
 0x113   : > { %8628 = vst [vmem:[#allocation58_spill] sm:$0xff] %v7265_v57  ;;  %8629 = vst [vmem:[#allocation59_spill] sm:$0xff] %v7267_v33  ;;  %v1081_v59 = vld [vmem:[#allocation2 + $0x81] sm:$0xff]  ;;  %v7276_v30 = vmul.f32 %v7265_v57, %v7191_v6  ;;  %v7280_v8 = vmul.f32 %v7267_v33, %v7196_v1  ;;  %v5803_v34 = vpop.f32.mrb[22].mxu0  ;;  %vm661_vm12 = vcmp.gt.f32.partialorder %v583_v52, 0.0  ;;  %v7294_v6 = vpop.permute.xlu0 %974 }
 0x114   : > { %5842 = vmatprep.mubr.msk.f32.mxu0 %vm737_vm0, %v1081_v59  ;;  %v693_v2 = vmul.f32 0.1, %v583_v52  ;;  %6039 = vmatprep.mubr.msk.f32.mxu1 %vm737_vm0, %v1081_v59  ;;  %v598_v18 = vadd.f32 %v5803_v34, %v7065_v14  ;;  %v592_v60 = vpop.f32.mrb[23].mxu0  ;;  %v726_v57 = vsel %vm662_vm11, %v588_v0, %v694_v5  ;;  %8636 = vst [vmem:[#allocation66_spill] sm:$0xff] %v7294_v6 }
 0x115   : > { %8630 = vst [vmem:[#allocation60_spill] sm:$0xff] %v7276_v30  ;;  %8631 = vst [vmem:[#allocation61_spill] sm:$0xff] %v7280_v8  ;;  %v7291_v8 = vpop.permute.xlu1 %979  ;;  %5843 = vmatmul.mubr.msk.f32.gmra.mrb[48].mxu0 %vm737_vm0, %v1082_v61  ;;  %6040 = vmatmul.mubr.msk.f32.gmra.mrb[14].mxu1 %vm737_vm0, %v1082_v61 }
 0x116   : > { %v7284_v54 = vld [vmem:[#allocation2 + $0x98] sm:$0xff]  ;;  %v7286_v55 = vld [vmem:[#allocation2 + $0x90] sm:$0xff]  ;;  %8635 = vst [vmem:[#allocation65_spill] sm:$0xff] %v7291_v8  ;;  %v725_v33 = vsel %vm661_vm12, %v583_v52, %v693_v2  ;;  %797 = vst.msk [vmem:[#allocation2 + $0xb9] sm:$0xff] %vm737_vm0, %v726_v57  ;;  %vm664_vm13 = vcmp.gt.f32.partialorder %v598_v18, 0.0  ;;  %v593_v57 = vadd.f32 %v7065_v14, %v592_v60 }
 0x117   : > { %8632 = vst [vmem:[#allocation62_spill] sm:$0xff] %v7284_v54  ;;  %8633 = vst [vmem:[#allocation63_spill] sm:$0xff] %v7286_v55  ;;  %v7289_v30 = vld [vmem:[#allocation2 + $0x91] sm:$0xff]  ;;  %v7300_v59 = vmul.f32 %v7284_v54, %v7220_v29  ;;  %v7304_v34 = vmul.f32 %v7286_v55, %v7223_v63  ;;  %v696_v53 = vmul.f32 0.1, %v598_v18  ;;  %v5806_v52 = vpop.f32.mrb[24].mxu0 }
 0x118   : > { %8634 = vst [vmem:[#allocation64_spill] sm:$0xff] %v7289_v30  ;;  %796 = vst.msk [vmem:[#allocation2 + $0xb1] sm:$0xff] %vm737_vm0, %v725_v33  ;;  %5845 = vmatprep.mubr.msk.f32.mxu0 %vm737_vm0, %v7289_v30  ;;  %6042 = vmatprep.mubr.msk.f32.mxu1 %vm737_vm0, %v7289_v30  ;;  %v608_v33 = vadd.f32 %v5806_v52, %v7065_v14  ;;  %v602_v0 = vpop.f32.mrb[25].mxu0  ;;  %v7313_v2 = vld [vmem:[#allocation2 + $0x99] sm:$0xff]  ;;  %vm663_vm14 = vcmp.gt.f32.partialorder %v593_v57, 0.0 }
 0x119   : > { %8637 = vst [vmem:[#allocation67_spill] sm:$0xff] %v7300_v59  ;;  %8638 = vst [vmem:[#allocation68_spill] sm:$0xff] %v7304_v34  ;;  %v728_v5 = vsel %vm664_vm13, %v598_v18, %v696_v53  ;;  %v603_v59 = vadd.f32 %v7065_v14, %v602_v0  ;;  %v7316_v34 = vld [vmem:[#allocation2 + $0xa8] sm:$0xff]  ;;  %v7318_v61 = vld [vmem:[#allocation2 + $0xa0] sm:$0xff]  ;;  %v695_v54 = vmul.f32 0.1, %v593_v57  ;;  %5846 = vmatmul.mubr.msk.f32.gmra.mrb[50].mxu0 %vm737_vm0, %v7313_v2  ;;  %6043 = vmatmul.mubr.msk.f32.gmra.mrb[16].mxu1 %vm737_vm0, %v7313_v2  ;;  %v7335_v0 = vpop.permute.xlu1 %989 }
 0x11a   : > { %8639 = vst [vmem:[#allocation69_spill] sm:$0xff] %v7313_v2  ;;  %8640 = vst [vmem:[#allocation70_spill] sm:$0xff] %v7316_v34  ;;  %v7325_v60 = vmul.f32 %v7316_v34, %v7259_v3  ;;  %v7329_v53 = vmul.f32 %v7318_v61, %v7262_v31  ;;  %vm666_vm15 = vcmp.gt.f32.partialorder %v608_v33, 0.0  ;;  %v7333_v18 = vld [vmem:[#allocation2 + $0xa1] sm:$0xff]  ;;  %v698_v30 = vmul.f32 0.1, %v608_v33 }
 0x11b   : > { %8641 = vst [vmem:[#allocation71_spill] sm:$0xff] %v7318_v61  ;;  %799 = vst.msk [vmem:[#allocation2 + $0xc9] sm:$0xff] %vm737_vm0, %v728_v5  ;;  %v5809_v52 = vpop.f32.mrb[26].mxu0  ;;  %v727_v5 = vsel %vm663_vm14, %v593_v57, %v695_v54  ;;  %vm665_vm3 = vcmp.gt.f32.partialorder %v603_v59, 0.0  ;;  %v697_v55 = vmul.f32 0.1, %v603_v59  ;;  %5848 = vmatprep.mubr.msk.f32.mxu0 %vm737_vm0, %v7333_v18  ;;  %6045 = vmatprep.mubr.msk.f32.mxu1 %vm737_vm0, %v7333_v18 }
 0x11c   : > { %8642 = vst [vmem:[#allocation72_spill] sm:$0xff] %v7325_v60  ;;  %8643 = vst [vmem:[#allocation73_spill] sm:$0xff] %v7329_v53  ;;  %v612_v60 = vpop.f32.mrb[27].mxu0  ;;  %v7341_v53 = vpop.permute.xlu0 %984  ;;  %v618_v2 = vadd.f32 %v5809_v52, %v7065_v14  ;;  %v7345_v34 = vld [vmem:[#allocation2 + $0xa9] sm:$0xff]  ;;  %v730_v3 = vsel %vm666_vm15, %v608_v33, %v698_v30 }
 0x11d   : > { %8644 = vst [vmem:[#allocation74_spill] sm:$0xff] %v7333_v18  ;;  %8645 = vst [vmem:[#allocation75_spill] sm:$0xff] %v7335_v0  ;;  %v613_v54 = vadd.f32 %v7065_v14, %v612_v60  ;;  %v729_v31 = vsel %vm665_vm3, %v603_v59, %v697_v55  ;;  %5849 = vmatmul.mubr.msk.f32.gmra.mrb[52].mxu0 %vm737_vm0, %v7345_v34  ;;  %6046 = vmatmul.mubr.msk.f32.gmra.mrb[18].mxu1 %vm737_vm0, %v7345_v34 }
 0x11e   : > { %8646 = vst [vmem:[#allocation76_spill] sm:$0xff] %v7341_v53  ;;  %798 = vst.msk [vmem:[#allocation2 + $0xc1] sm:$0xff] %vm737_vm0, %v727_v5  ;;  %vm668_vm4 = vcmp.gt.f32.partialorder %v618_v2, 0.0  ;;  %v700_v55 = vmul.f32 0.1, %v618_v2 }
 0x11f   : > { %8647 = vst [vmem:[#allocation77_spill] sm:$0xff] %v7345_v34  ;;  %v7348_v57 = vld [vmem:[#allocation2 + $0xb8] sm:$0xff]  ;;  %v7350_v61 = vld [vmem:[#allocation2 + $0xb0] sm:$0xff]  ;;  %801 = vst.msk [vmem:[#allocation2 + $0xd9] sm:$0xff] %vm737_vm0, %v730_v3  ;;  %v5812_v30 = vpop.f32.mrb[28].mxu0  ;;  %vm667_vm5 = vcmp.gt.f32.partialorder %v613_v54, 0.0  ;;  %v7379_v34 = vpop.permute.xlu1 %999 }
 0x120   : > { %8648 = vst [vmem:[#allocation78_spill] sm:$0xff] %v7348_v57  ;;  %8649 = vst [vmem:[#allocation79_spill] sm:$0xff] %v7350_v61  ;;  %v7355_v18 = vld [vmem:[#allocation2 + $0xb1] sm:$0xff]  ;;  %v7361_v52 = vmul.f32 %v7348_v57, %v7291_v8  ;;  %v7365_v60 = vmul.f32 %v7350_v61, %v7294_v6  ;;  %v699_v59 = vmul.f32 0.1, %v613_v54  ;;  %v628_v3 = vadd.f32 %v5812_v30, %v7065_v14  ;;  %v622_v33 = vpop.f32.mrb[29].mxu0  ;;  %v7381_v57 = vpop.permute.xlu0 %994 }
 0x121   : > { %8650 = vst [vmem:[#allocation80_spill] sm:$0xff] %v7355_v18  ;;  %800 = vst.msk [vmem:[#allocation2 + $0xd1] sm:$0xff] %vm737_vm0, %v729_v31  ;;  %5851 = vmatprep.mubr.msk.f32.mxu0 %vm737_vm0, %v7355_v18  ;;  %6048 = vmatprep.mubr.msk.f32.mxu1 %vm737_vm0, %v7355_v18  ;;  %v7374_v31 = vld [vmem:[#allocation2 + $0xb9] sm:$0xff]  ;;  %v732_v5 = vsel %vm668_vm4, %v618_v2, %v700_v55 }
 0x122   : > { %8651 = vst [vmem:[#allocation81_spill] sm:$0xff] %v7361_v52  ;;  %8652 = vst [vmem:[#allocation82_spill] sm:$0xff] %v7365_v60  ;;  %v731_v52 = vsel %vm667_vm5, %v613_v54, %v699_v59  ;;  %5852 = vmatmul.mubr.msk.f32.gmra.mrb[54].mxu0 %vm737_vm0, %v7374_v31  ;;  %v623_v60 = vadd.f32 %v7065_v14, %v622_v33  ;;  %vm670_vm6 = vcmp.gt.f32.partialorder %v628_v3, 0.0  ;;  %v702_v30 = vmul.f32 0.1, %v628_v3 }
 0x123   : > { %8653 = vst [vmem:[#allocation83_spill] sm:$0xff] %v7374_v31  ;;  %8654 = vst [vmem:[#allocation84_spill] sm:$0xff] %v7379_v34  ;;  %6049 = vmatmul.mubr.msk.f32.gmra.mrb[20].mxu1 %vm737_vm0, %v7374_v31  ;;  %v5815_v2 = vpop.f32.mrb[30].mxu0  ;;  %v7404_v31 = vld [vmem:[#allocation2 + $0xc9] sm:$0xff] }
 0x124   : > { %8655 = vst [vmem:[#allocation85_spill] sm:$0xff] %v7381_v57  ;;  %803 = vst.msk [vmem:[#allocation2 + $0xe9] sm:$0xff] %vm737_vm0, %v732_v5  ;;  %vm669_vm7 = vcmp.gt.f32.partialorder %v623_v60, 0.0  ;;  %v701_v59 = vmul.f32 0.1, %v623_v60  ;;  %v638_v18 = vadd.f32 %v5815_v2, %v7065_v14  ;;  %v632_v61 = vpop.f32.mrb[31].mxu0  ;;  %v734_v2 = vsel %vm670_vm6, %v628_v3, %v702_v30  ;;  %v7430_v30 = vpop.permute.xlu1 %1009 }
 0x125   : > { %802 = vst.msk [vmem:[#allocation2 + $0xe1] sm:$0xff] %vm737_vm0, %v731_v52  ;;  %v7387_v54 = vld [vmem:[#allocation2 + $0xc8] sm:$0xff]  ;;  %v7389_v55 = vld [vmem:[#allocation2 + $0xc0] sm:$0xff]  ;;  %8661 = vst [vmem:[#allocation91_spill] sm:$0xff] %v7404_v31  ;;  %v633_v3 = vadd.f32 %v7065_v14, %v632_v61 }
 0x126   : > { %8656 = vst [vmem:[#allocation86_spill] sm:$0xff] %v7387_v54  ;;  %8657 = vst [vmem:[#allocation87_spill] sm:$0xff] %v7389_v55  ;;  %v7391_v33 = vld [vmem:[#allocation2 + $0xc1] sm:$0xff]  ;;  %v7396_v5 = vmul.f32 %v7387_v54, %v7335_v0  ;;  %v7400_v52 = vmul.f32 %v7389_v55, %v7341_v53  ;;  %v733_v29 = vsel %vm669_vm7, %v623_v60, %v701_v59  ;;  %vm672_vm8 = vcmp.gt.f32.partialorder %v638_v18, 0.0  ;;  %v7438_v59 = vld [vmem:[#allocation2 + $0xd9] sm:$0xff] }
 0x127   : > { %8658 = vst [vmem:[#allocation88_spill] sm:$0xff] %v7391_v33  ;;  %5854 = vmatprep.mubr.msk.f32.mxu0 %vm737_vm0, %v7391_v33  ;;  %6051 = vmatprep.mubr.msk.f32.mxu1 %vm737_vm0, %v7391_v33  ;;  %805 = vst.msk [vmem:[#allocation2 + $0xf9] sm:$0xff] %vm737_vm0, %v734_v2  ;;  %v704_v60 = vmul.f32 0.1, %v638_v18  ;;  %vm671_vm9 = vcmp.gt.f32.partialorder %v633_v3, 0.0 }
 0x128   : > { %8659 = vst [vmem:[#allocation89_spill] sm:$0xff] %v7396_v5  ;;  %8660 = vst [vmem:[#allocation90_spill] sm:$0xff] %v7400_v52  ;;  %v7406_v8 = vld [vmem:[#allocation2 + $0xd8] sm:$0xff]  ;;  %v7408_v6 = vld [vmem:[#allocation2 + $0xd0] sm:$0xff]  ;;  %5855 = vmatmul.mubr.msk.f32.gmra.mrb[56].mxu0 %vm737_vm0, %v7404_v31  ;;  %6052 = vmatmul.mubr.msk.f32.gmra.mrb[22].mxu1 %vm737_vm0, %v7404_v31  ;;  %v703_v31 = vmul.f32 0.1, %v633_v3 }
 0x129   : > { %8662 = vst [vmem:[#allocation92_spill] sm:$0xff] %v7406_v8  ;;  %v7413_v5 = vld [vmem:[#allocation2 + $0xd1] sm:$0xff]  ;;  %804 = vst.msk [vmem:[#allocation2 + $0xf1] sm:$0xff] %vm737_vm0, %v733_v29  ;;  %v7419_v52 = vmul.f32 %v7406_v8, %v7379_v34  ;;  %v7423_v54 = vmul.f32 %v7408_v6, %v7381_v57  ;;  %v7432_v29 = vpop.permute.xlu0 %1004 }
 0x12a   : > { %8663 = vst [vmem:[#allocation93_spill] sm:$0xff] %v7413_v5  ;;  %8666 = vst [vmem:[#allocation96_spill] sm:$0xff] %v7430_v30  ;;  %5857 = vmatprep.mubr.msk.f32.mxu0 %vm737_vm0, %v7413_v5  ;;  %6054 = vmatprep.mubr.msk.f32.mxu1 %vm737_vm0, %v7413_v5  ;;  %v735_v33 = vsel %vm671_vm9, %v633_v3, %v703_v31 }
 0x12b   : > { %8664 = vst [vmem:[#allocation94_spill] sm:$0xff] %v7419_v52  ;;  %8665 = vst [vmem:[#allocation95_spill] sm:$0xff] %v7423_v54  ;;  %v736_v54 = vsel %vm672_vm8, %v638_v18, %v704_v60  ;;  %v808_v18 = vld [vmem:[#allocation2] sm:$0xff] }
 0x12c   : > { %8667 = vst [vmem:[#allocation97_spill] sm:$0xff] %v7432_v29  ;;  %8668 = vst [vmem:[#allocation98_spill] sm:$0xff] %v7438_v59  ;;  %v7440_v2 = vld [vmem:[#allocation2 + $0xe8] sm:$0xff]  ;;  %v7442_v52 = vld [vmem:[#allocation2 + $0xe0] sm:$0xff]  ;;  %5858 = vmatmul.mubr.msk.f32.gmra.mrb[58].mxu0 %vm737_vm0, %v7438_v59  ;;  %6055 = vmatmul.mubr.msk.f32.gmra.mrb[24].mxu1 %vm737_vm0, %v7438_v59 }
 0x12d   : > { %8669 = vst [vmem:[#allocation99_spill] sm:$0xff] %v7440_v2  ;;  %8670 = vst [vmem:[#allocation100_spill] sm:$0xff] %v7442_v52  ;;  %v7444_v14 = vld [vmem:[#allocation2 + $0xe1] sm:$0xff]  ;;  %v7449_v61 = vmul.f32 %v7440_v2, %v7430_v30  ;;  %v7453_v5 = vmul.f32 %v7442_v52, %v7432_v29  ;;  %v7472_v31 = vpop.permute.xlu0 %1014  ;;  %v1032_v2 = vmul.f32 %v7056_v11, %v808_v18 }
 0x12e   : > { %8671 = vst [vmem:[#allocation101_spill] sm:$0xff] %v7444_v14  ;;  %807 = vst.msk [vmem:[#allocation2 + $0x109] sm:$0xff] %vm737_vm0, %v736_v54  ;;  %5860 = vmatprep.mubr.msk.f32.mxu0 %vm737_vm0, %v7444_v14  ;;  %6057 = vmatprep.mubr.msk.f32.mxu1 %vm737_vm0, %v7444_v14  ;;  %v7464_v54 = vld [vmem:[#allocation2 + $0xe9] sm:$0xff] }
 0x12f   : > { %8672 = vst [vmem:[#allocation102_spill] sm:$0xff] %v7449_v61  ;;  %8673 = vst [vmem:[#allocation103_spill] sm:$0xff] %v7453_v5  ;;  %v7470_v5 = vpop.permute.xlu1 %1019  ;;  %v809_v14 = vld [vmem:[#allocation2 + $0x8] sm:$0xff] }
 0x130   : > { %806 = vst.msk [vmem:[#allocation2 + $0x101] sm:$0xff] %vm737_vm0, %v735_v33  ;;  %8674 = vst [vmem:[#allocation104_spill] sm:$0xff] %v7464_v54  ;;  %v7466_v60 = vld [vmem:[#allocation2 + $0xf8] sm:$0xff]  ;;  %v7468_v61 = vld [vmem:[#allocation2 + $0xf0] sm:$0xff]  ;;  %5861 = vmatmul.mubr.msk.f32.gmra.mrb[60].mxu0 %vm737_vm0, %v7464_v54  ;;  %6058 = vmatmul.mubr.msk.f32.gmra.mrb[26].mxu1 %vm737_vm0, %v7464_v54 }
 0x131   : > { %8675 = vst [vmem:[#allocation105_spill] sm:$0xff] %v7466_v60  ;;  %8676 = vst [vmem:[#allocation106_spill] sm:$0xff] %v7468_v61  ;;  %v7474_v3 = vld [vmem:[#allocation2 + $0xf1] sm:$0xff]  ;;  %v7478_v59 = vmul.f32 %v7466_v60, %v7470_v5  ;;  %v7482_v33 = vmul.f32 %v7468_v61, %v7472_v31  ;;  %v1033_v60 = vmul.f32 %v7054_v10, %v809_v14 }
 0x132   : > { %8677 = vst [vmem:[#allocation107_spill] sm:$0xff] %v7470_v5  ;;  %8678 = vst [vmem:[#allocation108_spill] sm:$0xff] %v7472_v31  ;;  %5863 = vmatprep.mubr.msk.f32.mxu0 %vm737_vm0, %v7474_v3  ;;  %6060 = vmatprep.mubr.msk.f32.mxu1 %vm737_vm0, %v7474_v3 }
 0x133   : > { %8679 = vst [vmem:[#allocation109_spill] sm:$0xff] %v7474_v3  ;;  %8680 = vst [vmem:[#allocation110_spill] sm:$0xff] %v7478_v59  ;;  %v7493_v59 = vld [vmem:[#allocation2 + $0xf9] sm:$0xff]  ;;  %v1034_v3 = vmul.f32 %v7098_v27, %v7060_v13  ;;  %v7524_v27 = vld [vmem:[#allocation2 + $0x22] sm:$0xff] }
 0x134   : > { %8681 = vst [vmem:[#allocation111_spill] sm:$0xff] %v7482_v33  ;;  %8682 = vst [vmem:[#allocation112_spill] sm:$0xff] %v7493_v59  ;;  %5864 = vmatmul.mubr.msk.f32.gmra.mrb[62].mxu0 %vm737_vm0, %v7493_v59  ;;  %6061 = vmatmul.mubr.msk.f32.gmra.mrb[28].mxu1 %vm737_vm0, %v7493_v59  ;;  %v7503_v33 = vld [vmem:[#allocation2 + $0x12] sm:$0xff]  ;;  %v7514_v59 = vld [vmem:[#allocation2 + $0x1a] sm:$0xff] }
 0x135   : > { %5868 = vmatprep.mubr.msk.f32.mxu0 %vm737_vm0, %v1032_v2  ;;  %v7510_v14 = vld [vmem:[#allocation2 + $0x109] sm:$0xff]  ;;  %v3206_v54 = vmul.f32 %v7503_v33, %v6987_v41  ;;  %v3207_v13 = vmul.f32 %v7514_v59, %v6991_v43 }
 0x136   : > { %8684 = vst [vmem:[#allocation114_spill] sm:$0xff] %v7510_v14  ;;  %v7519_v2 = vld [vmem:[%s8419_s3 + $0xc] sm:$0xf] }
 0x137   : > { %v7501_v18 = vld [vmem:[#allocation2 + $0x101] sm:$0xff] }
 0x138   : > { %8683 = vst [vmem:[#allocation113_spill] sm:$0xff] %v7501_v18  ;;  %6063 = vmatprep.mubr.msk.f32.mxu1 %vm737_vm0, %v7501_v18  ;;  %5869 = vmatmul.mubr.msk.f32.vlgmr.msra.gmra.mrb[32].mxu0 %vm737_vm0, %v1033_v60  ;;  %v1035_v60 = vmul.f32 %v7096_v26, %v7058_v12  ;;  %v1036_v18 = vmul.f32 %v7130_v25, %v7069_v16  ;;  %v7540_v26 = vld [vmem:[#allocation2 + $0x2a] sm:$0xff] }
 0x139   : > { %6064 = vmatmul.mubr.msk.f32.gmra.mrb[30].mxu1 %vm737_vm0, %v7510_v14  ;;  %5871 = vmatprep.mubr.msk.f32.mxu0 %vm737_vm0, %v1034_v3  ;;  %v3208_v3 = vmul.f32 %v7524_v27, %v6985_v40  ;;  %v1037_v14 = vmul.f32 %v7128_v22, %v7067_v15  ;;  %v3209_v16 = vmul.f32 %v7540_v26, %v6989_v42  ;;  %v7581_v15 = vld [vmem:[#allocation2 + $0x4a] sm:$0xff] }
 0x13a   : > { %6068 = vmatprep.mubr.msk.f32.mxu1 %vm737_vm0, %v3206_v54  ;;  %5917 = vmatpush3.msk.msra.mxu0 %vm1195_vm2, %v7115_v35  ;;  %v7545_v35 = vld [vmem:[%s8419_s3 + $0x1c] sm:$0xf]  ;;  %v7549_v54 = vld [vmem:[#allocation2 + $0x32] sm:$0xff] }
 0x13b   : > { %5966 = vmatprep.subr.msk.mxu0 %vm1195_vm2, %v7519_v2 }
 0x13c   : > { %5872 = vmatmul.mubr.msk.f32.gmra.mrb[34].mxu0 %vm737_vm0, %v1035_v60  ;;  %v1038_v60 = vmul.f32 %v7151_v4, %v7076_v28  ;;  %v1040_v28 = vmul.f32 %v7176_v37, %v7087_v17  ;;  %v1042_v17 = vmul.f32 %v7200_v36, %v7124_v20  ;;  %v1044_v20 = vmul.f32 %v7227_v58, %v7167_v21 }
 0x13d   : > { %6069 = vmatmul.mubr.msk.f32.vlgmr.msra.gmra.mrb[0].mxu1 %vm737_vm0, %v3207_v13  ;;  %5874 = vmatprep.mubr.msk.f32.mxu0 %vm737_vm0, %v1036_v18  ;;  %v3210_v13 = vmul.f32 %v7549_v54, %v6995_v45  ;;  %v7565_v18 = vld [vmem:[#allocation2 + $0x3a] sm:$0xff]  ;;  %v1046_v21 = vmul.f32 %v7242_v56, %v7196_v1  ;;  %v8693_v1 = vld [vmem:[#allocation59_spill] sm:$0xff] }
 0x13e   : > { %6117 = vmatpush3.msk.msra.mxu1 %vm1195_vm2, %v7093_v23  ;;  %6071 = vmatprep.mubr.msk.f32.mxu1 %vm737_vm0, %v3208_v3  ;;  %v7569_v23 = vld [vmem:[#allocation2 + $0x42] sm:$0xff]  ;;  %v1039_v3 = vmul.f32 %v7149_v19, %v7073_v24  ;;  %v7597_v24 = vld [vmem:[#allocation2 + $0x5a] sm:$0xff] }
 0x13f   : > { %6166 = vmatprep.subr.msk.mxu1 %vm1195_vm2, %v7545_v35 }
 0x140   : > { %5875 = vmatmul.mubr.msk.f32.gmra.mrb[36].mxu0 %vm737_vm0, %v1037_v14  ;;  %v3211_v14 = vmul.f32 %v7565_v18, %v6993_v44 }
 0x141   : > { %6072 = vmatmul.mubr.msk.f32.gmra.mrb[2].mxu1 %vm737_vm0, %v3209_v16  ;;  %5877 = vmatprep.mubr.msk.f32.mxu0 %vm737_vm0, %v1038_v60  ;;  %v3212_v16 = vmul.f32 %v7569_v23, %v6999_v47  ;;  %v7585_v60 = vld [vmem:[#allocation2 + $0x52] sm:$0xff] }
 0x142   : > { %6074 = vmatprep.mubr.msk.f32.mxu1 %vm737_vm0, %v3210_v13  ;;  %v1041_v13 = vmul.f32 %v7174_v32, %v7084_v39  ;;  %v7613_v39 = vld [vmem:[#allocation2 + $0x6a] sm:$0xff] }
 0x143   : > { %8686 = vst [vmem:[#allocation116_spill] sm:$0xff] %v7613_v39 }
 0x144   : > { %5878 = vmatmul.mubr.msk.f32.gmra.mrb[38].mxu0 %vm737_vm0, %v1039_v3  ;;  %v3213_v3 = vmul.f32 %v7581_v15, %v6997_v46 }
 0x145   : > { %6075 = vmatmul.mubr.msk.f32.gmra.mrb[4].mxu1 %vm737_vm0, %v3211_v14  ;;  %5880 = vmatprep.mubr.msk.f32.mxu0 %vm737_vm0, %v1040_v28  ;;  %v3214_v14 = vmul.f32 %v7585_v60, %v7003_v49  ;;  %v7601_v28 = vld [vmem:[#allocation2 + $0x62] sm:$0xff] }
 0x146   : > { %6077 = vmatprep.mubr.msk.f32.mxu1 %vm737_vm0, %v3212_v16  ;;  %8685 = vst [vmem:[#allocation115_spill] sm:$0xff] %v7601_v28  ;;  %v1043_v16 = vmul.f32 %v7198_v7, %v7119_v38  ;;  %v8688_v38 = vld [vmem:[#allocation5_spill] sm:$0xff] }
 0x148   : > { %5881 = vmatmul.mubr.msk.f32.gmra.mrb[40].mxu0 %vm737_vm0, %v1041_v13  ;;  %v3215_v13 = vmul.f32 %v7597_v24, %v7001_v48 }
 0x149   : > { %6078 = vmatmul.mubr.msk.f32.gmra.mrb[6].mxu1 %vm737_vm0, %v3213_v3  ;;  %5883 = vmatprep.mubr.msk.f32.mxu0 %vm737_vm0, %v1042_v17  ;;  %v3216_v3 = vmul.f32 %v7601_v28, %v7007_v51  ;;  %v7617_v17 = vld [vmem:[#allocation2 + $0x72] sm:$0xff]  ;;  %v7629_v28 = vld [vmem:[#allocation2 + $0x7a] sm:$0xff] }
 0x14a   : > { %6080 = vmatprep.mubr.msk.f32.mxu1 %vm737_vm0, %v3214_v14  ;;  %8687 = vst [vmem:[#allocation117_spill] sm:$0xff] %v7617_v17  ;;  %v1045_v14 = vmul.f32 %v7225_v62, %v7154_v9  ;;  %8689 = vst [vmem:[#allocation118_spill] sm:$0xff] %v7629_v28  ;;  %v8692_v9 = vld [vmem:[#allocation52_spill] sm:$0xff] }
 0x14c   : > { %5884 = vmatmul.mubr.msk.f32.gmra.mrb[42].mxu0 %vm737_vm0, %v1043_v16  ;;  %v3217_v16 = vmul.f32 %v7613_v39, %v7005_v50  ;;  %v1048_v39 = vmul.f32 %v8693_v1, %v7223_v63  ;;  %v8700_v63 = vld [vmem:[#allocation57_spill] sm:$0xff] }
 0x14d   : > { %6081 = vmatmul.mubr.msk.f32.gmra.mrb[8].mxu1 %vm737_vm0, %v3215_v13  ;;  %5886 = vmatprep.mubr.msk.f32.mxu0 %vm737_vm0, %v1044_v20  ;;  %v3218_v13 = vmul.f32 %v7617_v17, %v8688_v38  ;;  %v7633_v20 = vld [vmem:[#allocation2 + $0x82] sm:$0xff]  ;;  %v7645_v38 = vld [vmem:[#allocation2 + $0x8a] sm:$0xff] }
 0x14e   : > { %6083 = vmatprep.mubr.msk.f32.mxu1 %vm737_vm0, %v3216_v3  ;;  %8690 = vst [vmem:[#allocation119_spill] sm:$0xff] %v7633_v20  ;;  %v8691_v3 = vld [vmem:[#allocation43_spill] sm:$0xff]  ;;  %8696 = vst [vmem:[#allocation120_spill] sm:$0xff] %v7645_v38 }
 0x14f   : > { %v1047_v62 = vmul.f32 %v8692_v9, %v8691_v3  ;;  %v8695_v17 = vld [vmem:[#allocation7_spill] sm:$0xff]  ;;  %v8699_v3 = vld [vmem:[#allocation58_spill] sm:$0xff] }
 0x150   : > { %5887 = vmatmul.mubr.msk.f32.gmra.mrb[44].mxu0 %vm737_vm0, %v1045_v14  ;;  %v8694_v14 = vld [vmem:[#allocation4_spill] sm:$0xff] }
 0x151   : > { %6084 = vmatmul.mubr.msk.f32.gmra.mrb[10].mxu1 %vm737_vm0, %v3217_v16  ;;  %5889 = vmatprep.mubr.msk.f32.mxu0 %vm737_vm0, %v1046_v21  ;;  %v3219_v56 = vmul.f32 %v7629_v28, %v8694_v14  ;;  %v3220_v16 = vmul.f32 %v7633_v20, %v8695_v17  ;;  %v7649_v21 = vld [vmem:[#allocation2 + $0x92] sm:$0xff]  ;;  %v8701_v28 = vld [vmem:[#allocation63_spill] sm:$0xff]  ;;  %v7661_v17 = vld [vmem:[#allocation2 + $0x9a] sm:$0xff] }
 0x152   : > { %6086 = vmatprep.mubr.msk.f32.mxu1 %vm737_vm0, %v3218_v13  ;;  %8697 = vst [vmem:[#allocation121_spill] sm:$0xff] %v7649_v21  ;;  %v8698_v13 = vld [vmem:[#allocation47_spill] sm:$0xff]  ;;  %v1050_v1 = vmul.f32 %v8701_v28, %v8700_v63  ;;  %v8703_v20 = vld [vmem:[#allocation9_spill] sm:$0xff]  ;;  %8704 = vst [vmem:[#allocation122_spill] sm:$0xff] %v7661_v17 }
 0x153   : > { %v1049_v9 = vmul.f32 %v8699_v3, %v8698_v13  ;;  %v8707_v13 = vld [vmem:[#allocation62_spill] sm:$0xff] }
 0x154   : > { %5890 = vmatmul.mubr.msk.f32.gmra.mrb[46].mxu0 %vm737_vm0, %v1047_v62  ;;  %v8702_v62 = vld [vmem:[#allocation6_spill] sm:$0xff] }
 0x155   : > { %6087 = vmatmul.mubr.msk.f32.gmra.mrb[12].mxu1 %vm737_vm0, %v3219_v56  ;;  %5892 = vmatprep.mubr.msk.f32.mxu0 %vm737_vm0, %v1048_v39  ;;  %v3221_v14 = vmul.f32 %v7645_v38, %v8702_v62  ;;  %v3222_v56 = vmul.f32 %v7649_v21, %v8703_v20  ;;  %v7665_v39 = vld [vmem:[#allocation2 + $0xa2] sm:$0xff]  ;;  %v7677_v20 = vld [vmem:[#allocation2 + $0xaa] sm:$0xff] }
 0x156   : > { %6089 = vmatprep.mubr.msk.f32.mxu1 %vm737_vm0, %v3220_v16  ;;  %8705 = vst [vmem:[#allocation123_spill] sm:$0xff] %v7665_v39  ;;  %v8706_v16 = vld [vmem:[#allocation56_spill] sm:$0xff]  ;;  %v8708_v63 = vld [vmem:[#allocation66_spill] sm:$0xff]  ;;  %v8709_v38 = vld [vmem:[#allocation71_spill] sm:$0xff] }
 0x157   : > { %v1051_v3 = vmul.f32 %v8707_v13, %v8706_v16  ;;  %v1052_v28 = vmul.f32 %v8709_v38, %v8708_v63  ;;  %v8711_v21 = vld [vmem:[#allocation11_spill] sm:$0xff]  ;;  %v8715_v16 = vld [vmem:[#allocation70_spill] sm:$0xff] }
 0x158   : > { %5893 = vmatmul.mubr.msk.f32.gmra.mrb[48].mxu0 %vm737_vm0, %v1049_v9  ;;  %v8710_v9 = vld [vmem:[#allocation8_spill] sm:$0xff]  ;;  %v8716_v63 = vld [vmem:[#allocation79_spill] sm:$0xff] }
 0x159   : > { %6090 = vmatmul.mubr.msk.f32.gmra.mrb[14].mxu1 %vm737_vm0, %v3221_v14  ;;  %5895 = vmatprep.mubr.msk.f32.mxu0 %vm737_vm0, %v1050_v1  ;;  %v3223_v62 = vmul.f32 %v7661_v17, %v8710_v9  ;;  %v3224_v14 = vmul.f32 %v7665_v39, %v8711_v21  ;;  %8712 = vst [vmem:[#allocation8_spill] sm:$0xff] %v7677_v20  ;;  %v7681_v1 = vld [vmem:[#allocation2 + $0xb2] sm:$0xff]  ;;  %v7693_v21 = vld [vmem:[#allocation2 + $0xba] sm:$0xff] }
 0x15a   : > { %6092 = vmatprep.mubr.msk.f32.mxu1 %vm737_vm0, %v3222_v56  ;;  %8713 = vst [vmem:[#allocation124_spill] sm:$0xff] %v7681_v1  ;;  %v8714_v56 = vld [vmem:[#allocation65_spill] sm:$0xff]  ;;  %v1054_v17 = vmul.f32 %v8716_v63, %v7341_v53  ;;  %8719 = vst [vmem:[#allocation70_spill] sm:$0xff] %v7693_v21  ;;  %v1056_v53 = vmul.f32 %v7389_v55, %v7381_v57  ;;  %v7709_v63 = vld [vmem:[#allocation2 + $0xca] sm:$0xff]  ;;  %v1058_v57 = vmul.f32 %v7408_v6, %v7432_v29 }
 0x15b   : > { %v1053_v13 = vmul.f32 %v8715_v16, %v8714_v56  ;;  %v8718_v39 = vld [vmem:[#allocation13_spill] sm:$0xff]  ;;  %v1060_v29 = vmul.f32 %v7442_v52, %v7472_v31  ;;  %v8736_v31 = vld [vmem:[#allocation99_spill] sm:$0xff]  ;;  %v8737_v52 = vld [vmem:[#allocation18_spill] sm:$0xff] }
 0x15c   : > { %5896 = vmatmul.mubr.msk.f32.gmra.mrb[50].mxu0 %vm737_vm0, %v1051_v3  ;;  %v8717_v3 = vld [vmem:[#allocation10_spill] sm:$0xff] }
 0x15d   : > { %6093 = vmatmul.mubr.msk.f32.gmra.mrb[16].mxu1 %vm737_vm0, %v3223_v62  ;;  %5898 = vmatprep.mubr.msk.f32.mxu0 %vm737_vm0, %v1052_v28  ;;  %v3225_v38 = vmul.f32 %v7677_v20, %v8717_v3  ;;  %v3226_v62 = vmul.f32 %v7681_v1, %v8718_v39  ;;  %v7697_v28 = vld [vmem:[#allocation2 + $0xc2] sm:$0xff]  ;;  %v7725_v55 = vld [vmem:[#allocation2 + $0xda] sm:$0xff] }
 0x15e   : > { %6095 = vmatprep.mubr.msk.f32.mxu1 %vm737_vm0, %v3224_v14  ;;  %8720 = vst [vmem:[#allocation10_spill] sm:$0xff] %v7697_v28  ;;  %v8721_v14 = vld [vmem:[#allocation78_spill] sm:$0xff]  ;;  %v8723_v1 = vld [vmem:[#allocation15_spill] sm:$0xff] }
 0x15f   : > { %v1055_v56 = vmul.f32 %v8721_v14, %v7335_v0  ;;  %8724 = vst [vmem:[#allocation78_spill] sm:$0xff] %v7709_v63 }
 0x160   : > { %5899 = vmatmul.mubr.msk.f32.gmra.mrb[52].mxu0 %vm737_vm0, %v1053_v13  ;;  %v8722_v13 = vld [vmem:[#allocation12_spill] sm:$0xff] }
 0x161   : > { %6096 = vmatmul.mubr.msk.f32.gmra.mrb[18].mxu1 %vm737_vm0, %v3225_v38  ;;  %5901 = vmatprep.mubr.msk.f32.mxu0 %vm737_vm0, %v1054_v17  ;;  %v3227_v20 = vmul.f32 %v7693_v21, %v8722_v13  ;;  %v3228_v38 = vmul.f32 %v7697_v28, %v8723_v1  ;;  %v7713_v17 = vld [vmem:[#allocation2 + $0xd2] sm:$0xff] }
 0x162   : > { %6098 = vmatprep.mubr.msk.f32.mxu1 %vm737_vm0, %v3226_v62  ;;  %8725 = vst [vmem:[#allocation12_spill] sm:$0xff] %v7713_v17  ;;  %v8726_v62 = vld [vmem:[#allocation86_spill] sm:$0xff]  ;;  %v8728_v28 = vld [vmem:[#allocation17_spill] sm:$0xff] }
 0x163   : > { %v1057_v0 = vmul.f32 %v8726_v62, %v7379_v34  ;;  %8729 = vst [vmem:[#allocation86_spill] sm:$0xff] %v7725_v55 }
 0x164   : > { %5902 = vmatmul.mubr.msk.f32.gmra.mrb[54].mxu0 %vm737_vm0, %v1055_v56  ;;  %v8727_v56 = vld [vmem:[#allocation14_spill] sm:$0xff] }
 0x165   : > { %6099 = vmatmul.mubr.msk.f32.gmra.mrb[20].mxu1 %vm737_vm0, %v3227_v20  ;;  %5904 = vmatprep.mubr.msk.f32.mxu0 %vm737_vm0, %v1056_v53  ;;  %v3229_v21 = vmul.f32 %v7709_v63, %v8727_v56  ;;  %v3230_v20 = vmul.f32 %v7713_v17, %v8728_v28  ;;  %v7729_v53 = vld [vmem:[#allocation2 + $0xe2] sm:$0xff]  ;;  %v7738_v17 = vpop.permute.xlu0 %1024  ;;  %v7743_v63 = vld [vmem:[#allocation2 + $0xea] sm:$0xff] }
 0x166   : > { %6101 = vmatprep.mubr.msk.f32.mxu1 %vm737_vm0, %v3228_v38  ;;  %8730 = vst [vmem:[#allocation125_spill] sm:$0xff] %v7729_v53  ;;  %v1059_v38 = vmul.f32 %v7406_v8, %v7430_v30  ;;  %8732 = vst [vmem:[#allocation126_spill] sm:$0xff] %v7738_v17  ;;  %v1061_v30 = vmul.f32 %v8736_v31, %v7470_v5  ;;  %v7761_v8 = vld [vmem:[#allocation2 + $0xfa] sm:$0xff]  ;;  %v1749_v31 = vld [vmem:[#allocation2 + $0xa] sm:$0xff] }
 0x167   : > { %8734 = vst [vmem:[#allocation127_spill] sm:$0xff] %v7743_v63  ;;  %v8740_v5 = vld [vmem:[#allocation105_spill] sm:$0xff] }
 0x168   : > { %5905 = vmatmul.mubr.msk.f32.gmra.mrb[56].mxu0 %vm737_vm0, %v1057_v0  ;;  %v8731_v0 = vld [vmem:[#allocation16_spill] sm:$0xff] }
 0x169   : > { %6102 = vmatmul.mubr.msk.f32.gmra.mrb[22].mxu1 %vm737_vm0, %v3229_v21  ;;  %5907 = vmatprep.mubr.msk.f32.mxu0 %vm737_vm0, %v1058_v57  ;;  %v3231_v34 = vmul.f32 %v7725_v55, %v8731_v0  ;;  %v8733_v21 = vld [vmem:[#allocation19_spill] sm:$0xff]  ;;  %v7752_v55 = vpop.permute.xlu1 %1029 }
 0x16a   : > { %6104 = vmatprep.mubr.msk.f32.mxu1 %vm737_vm0, %v3230_v20  ;;  %v3232_v57 = vmul.f32 %v7729_v53, %v8733_v21  ;;  %v7747_v20 = vld [vmem:[#allocation2 + $0xf2] sm:$0xff]  ;;  %v3233_v53 = vmul.f32 %v7743_v63, %v8737_v52  ;;  %v1748_v21 = vld [vmem:[#allocation2 + $0x2] sm:$0xff] }
 0x16b   : > { %8735 = vst [vmem:[#allocation128_spill] sm:$0xff] %v7747_v20  ;;  %v1972_v63 = vmul.f32 %v6987_v41, %v1748_v21  ;;  %v8744_v21 = vld [vmem:[#allocation22_spill] sm:$0xff]  ;;  %v1974_v41 = vmul.f32 %v7503_v33, %v6985_v40 }
 0x16c   : > { %5908 = vmatmul.mubr.msk.f32.gmra.mrb[58].mxu0 %vm737_vm0, %v1059_v38  ;;  %v1062_v38 = vmul.f32 %v7468_v61, %v7738_v17  ;;  %v1063_v17 = vmul.f32 %v8740_v5, %v7752_v55  ;;  %v8741_v61 = vld [vmem:[#allocation20_spill] sm:$0xff] }
 0x16d   : > { %6105 = vmatmul.mubr.msk.f32.gmra.mrb[24].mxu1 %vm737_vm0, %v3231_v34  ;;  %5910 = vmatprep.mubr.msk.f32.mxu0 %vm737_vm0, %v1060_v29  ;;  %v8738_v34 = vld [vmem:[#allocation21_spill] sm:$0xff] }
 0x16e   : > { %6107 = vmatprep.mubr.msk.f32.mxu1 %vm737_vm0, %v3232_v57  ;;  %v3234_v29 = vmul.f32 %v7747_v20, %v8738_v34  ;;  %v7765_v57 = vld [vmem:[#allocation2 + $0x102] sm:$0xff]  ;;  %v7776_v34 = vld [vmem:[#allocation2 + $0x10a] sm:$0xff] }
 0x16f   : > { %8739 = vst [vmem:[#allocation18_spill] sm:$0xff] %v7765_v57  ;;  %v8742_v20 = vld [vmem:[#allocation23_spill] sm:$0xff]  ;;  %8743 = vst [vmem:[#allocation105_spill] sm:$0xff] %v7776_v34 }
 0x170   : > { %5911 = vmatmul.mubr.msk.f32.gmra.mrb[60].mxu0 %vm737_vm0, %v1061_v30  ;;  %v3235_v30 = vmul.f32 %v7761_v8, %v8741_v61 }
 0x171   : > { %6108 = vmatmul.mubr.msk.f32.gmra.mrb[26].mxu1 %vm737_vm0, %v3233_v53  ;;  %5913 = vmatprep.mubr.msk.f32.mxu0 %vm737_vm0, %v1062_v38  ;;  %v3236_v53 = vmul.f32 %v7765_v57, %v8742_v20  ;;  %v1973_v38 = vmul.f32 %v6991_v43, %v1749_v31  ;;  %v3629_v31 = vmul.f32 %v7128_v22, %v7054_v10  ;;  %v8778_v57 = vld [vmem:[#allocation48_spill] sm:$0xff] }
 0x172   : > { %6110 = vmatprep.mubr.msk.f32.mxu1 %vm737_vm0, %v3234_v29  ;;  %v3237_v29 = vmul.f32 %v7776_v34, %v8744_v21  ;;  %v1977_v10 = vmul.f32 %v7540_v26, %v6993_v44  ;;  %v3631_v22 = vmul.f32 %v7149_v19, %v7058_v12  ;;  %v1979_v12 = vmul.f32 %v7565_v18, %v6997_v46  ;;  %v8747_v19 = vld [vmem:[#allocation25_spill] sm:$0xff] }
 0x174   : > { %5914 = vmatmul.mubr.msk.f32.gmra.mrb[62].mxu0 %vm737_vm0, %v1063_v17  ;;  %v3628_v17 = vmul.f32 %v7130_v25, %v7056_v11  ;;  %v1976_v11 = vmul.f32 %v7524_v27, %v6995_v45  ;;  %v8745_v25 = vld [vmem:[#allocation24_spill] sm:$0xff] }
 0x175   : > { %6111 = vmatmul.mubr.msk.f32.gmra.mrb[28].mxu1 %vm737_vm0, %v3235_v30  ;;  %5918 = vmatprep.mubr.msk.f32.mxu0 %vm737_vm0, %v1972_v63  ;;  %v1975_v63 = vmul.f32 %v7514_v59, %v6989_v42  ;;  %v3630_v33 = vmul.f32 %v7151_v4, %v8745_v25  ;;  %v1978_v4 = vmul.f32 %v7549_v54, %v6999_v47  ;;  %v8746_v59 = vld [vmem:[#allocation26_spill] sm:$0xff]  ;;  %v8752_v25 = vld [vmem:[#allocation49_spill] sm:$0xff] }
 0x176   : > { %6113 = vmatprep.mubr.msk.f32.mxu1 %vm737_vm0, %v3236_v53  ;;  %v1980_v30 = vmul.f32 %v7569_v23, %v7003_v49  ;;  %v8748_v53 = vld [vmem:[#allocation28_spill] sm:$0xff] }
 0x178   : > { %5919 = vmatmul.mubr.msk.f32.vlgmr.msra.gmra.mrb[32].mxu0 %vm737_vm0, %v1973_v38  ;;  %v1981_v38 = vmul.f32 %v7581_v15, %v7001_v48 }
 0x179   : > { %6114 = vmatmul.mubr.msk.f32.gmra.mrb[30].mxu1 %vm737_vm0, %v3237_v29  ;;  %5921 = vmatprep.mubr.msk.f32.mxu0 %vm737_vm0, %v1974_v41  ;;  %v7806_v41 = vld [vmem:[%s8419_s3 + $0x20] sm:$0xf]  ;;  %v8749_v29 = vld [vmem:[#allocation27_spill] sm:$0xff] }
 0x17a   : > { %6118 = vmatprep.mubr.msk.f32.mxu1 %vm737_vm0, %v3628_v17  ;;  %5967 = vmatpush3.msk.msra.mxu0 %vm1195_vm2, %v7519_v2  ;;  %v3632_v2 = vmul.f32 %v7176_v37, %v8746_v59  ;;  %v3634_v37 = vmul.f32 %v7200_v36, %v8748_v53  ;;  %v1982_v17 = vmul.f32 %v7585_v60, %v7007_v51  ;;  %v8756_v59 = vld [vmem:[#allocation53_spill] sm:$0xff] }
 0x17c   : > { %5922 = vmatmul.mubr.msk.f32.gmra.mrb[34].mxu0 %vm737_vm0, %v1975_v63  ;;  %v8750_v63 = vld [vmem:[#allocation30_spill] sm:$0xff] }
 0x17d   : > { %6119 = vmatmul.mubr.msk.f32.vlgmr.msra.gmra.mrb[0].mxu1 %vm737_vm0, %v3629_v31  ;;  %5924 = vmatprep.mubr.msk.f32.mxu0 %vm737_vm0, %v1976_v11  ;;  %v3636_v36 = vmul.f32 %v7227_v58, %v8750_v63  ;;  %v1983_v31 = vmul.f32 %v7597_v24, %v7005_v50  ;;  %v8751_v11 = vld [vmem:[#allocation29_spill] sm:$0xff] }
 0x17e   : > { %6167 = vmatpush3.msk.msra.mxu1 %vm1195_vm2, %v7545_v35  ;;  %6121 = vmatprep.mubr.msk.f32.mxu1 %vm737_vm0, %v3630_v33  ;;  %v3633_v35 = vmul.f32 %v7174_v32, %v8747_v19  ;;  %v3635_v32 = vmul.f32 %v7198_v7, %v8749_v29  ;;  %v3637_v7 = vmul.f32 %v8752_v25, %v8751_v11  ;;  %v8753_v33 = vld [vmem:[#allocation5_spill] sm:$0xff] }
 0x17f   : > { %6216 = vmatprep.subr.msk.mxu1 %vm1195_vm2, %v7806_v41  ;;  %v8767_v25 = vld [vmem:[#allocation37_spill] sm:$0xff] }
 0x180   : > { %5925 = vmatmul.mubr.msk.f32.gmra.mrb[36].mxu0 %vm737_vm0, %v1977_v10  ;;  %v8754_v10 = vld [vmem:[#allocation115_spill] sm:$0xff] }
 0x181   : > { %6122 = vmatmul.mubr.msk.f32.gmra.mrb[2].mxu1 %vm737_vm0, %v3631_v22  ;;  %5927 = vmatprep.mubr.msk.f32.mxu0 %vm737_vm0, %v1978_v4  ;;  %v1984_v22 = vmul.f32 %v8754_v10, %v8753_v33  ;;  %v8755_v4 = vld [vmem:[#allocation34_spill] sm:$0xff] }
 0x182   : > { %6124 = vmatprep.mubr.msk.f32.mxu1 %vm737_vm0, %v3632_v2  ;;  %v3638_v58 = vmul.f32 %v8756_v59, %v8755_v4  ;;  %v8757_v2 = vld [vmem:[#allocation4_spill] sm:$0xff]  ;;  %v8769_v4 = vld [vmem:[#allocation9_spill] sm:$0xff]  ;;  %v8770_v59 = vld [vmem:[#allocation119_spill] sm:$0xff] }
 0x184   : > { %5928 = vmatmul.mubr.msk.f32.gmra.mrb[38].mxu0 %vm737_vm0, %v1979_v12  ;;  %v8758_v12 = vld [vmem:[#allocation116_spill] sm:$0xff] }
 0x185   : > { %6125 = vmatmul.mubr.msk.f32.gmra.mrb[4].mxu1 %vm737_vm0, %v3633_v35  ;;  %5930 = vmatprep.mubr.msk.f32.mxu0 %vm737_vm0, %v1980_v30  ;;  %v1985_v19 = vmul.f32 %v8758_v12, %v8757_v2  ;;  %v8759_v35 = vld [vmem:[#allocation33_spill] sm:$0xff]  ;;  %v8760_v30 = vld [vmem:[#allocation52_spill] sm:$0xff] }
 0x186   : > { %6127 = vmatprep.mubr.msk.f32.mxu1 %vm737_vm0, %v3634_v37  ;;  %v3639_v53 = vmul.f32 %v8760_v30, %v8759_v35  ;;  %v8761_v37 = vld [vmem:[#allocation7_spill] sm:$0xff]  ;;  %v8771_v35 = vld [vmem:[#allocation44_spill] sm:$0xff] }
 0x187   : > { %v8772_v30 = vld [vmem:[#allocation63_spill] sm:$0xff] }
 0x188   : > { %5931 = vmatmul.mubr.msk.f32.gmra.mrb[40].mxu0 %vm737_vm0, %v1981_v38  ;;  %v8762_v38 = vld [vmem:[#allocation117_spill] sm:$0xff] }
 0x189   : > { %6128 = vmatmul.mubr.msk.f32.gmra.mrb[6].mxu1 %vm737_vm0, %v3635_v32  ;;  %5933 = vmatprep.mubr.msk.f32.mxu0 %vm737_vm0, %v1982_v17  ;;  %v1986_v29 = vmul.f32 %v8762_v38, %v8761_v37  ;;  %v8763_v32 = vld [vmem:[#allocation40_spill] sm:$0xff]  ;;  %v8764_v17 = vld [vmem:[#allocation59_spill] sm:$0xff] }
 0x18a   : > { %6130 = vmatprep.mubr.msk.f32.mxu1 %vm737_vm0, %v3636_v36  ;;  %v3640_v63 = vmul.f32 %v8764_v17, %v8763_v32  ;;  %v8765_v36 = vld [vmem:[#allocation6_spill] sm:$0xff]  ;;  %v3642_v32 = vmul.f32 %v8772_v30, %v8771_v35 }
 0x18b   : > { %v8775_v17 = vld [vmem:[#allocation62_spill] sm:$0xff] }
 0x18c   : > { %5934 = vmatmul.mubr.msk.f32.gmra.mrb[42].mxu0 %vm737_vm0, %v1983_v31  ;;  %v8766_v31 = vld [vmem:[#allocation118_spill] sm:$0xff] }
 0x18d   : > { %6131 = vmatmul.mubr.msk.f32.gmra.mrb[8].mxu1 %vm737_vm0, %v3637_v7  ;;  %5936 = vmatprep.mubr.msk.f32.mxu0 %vm737_vm0, %v1984_v22  ;;  %v1987_v11 = vmul.f32 %v8766_v31, %v8765_v36  ;;  %v8768_v7 = vld [vmem:[#allocation58_spill] sm:$0xff] }
 0x18e   : > { %6133 = vmatprep.mubr.msk.f32.mxu1 %vm737_vm0, %v3638_v58  ;;  %v3641_v22 = vmul.f32 %v8768_v7, %v8767_v25  ;;  %v1988_v58 = vmul.f32 %v8770_v59, %v8769_v4  ;;  %v8776_v25 = vld [vmem:[#allocation11_spill] sm:$0xff]  ;;  %v8777_v7 = vld [vmem:[#allocation121_spill] sm:$0xff] }
 0x18f   : > { %v1990_v34 = vmul.f32 %v8777_v7, %v8776_v25  ;;  %v8779_v4 = vld [vmem:[#allocation71_spill] sm:$0xff] }
 0x190   : > { %5937 = vmatmul.mubr.msk.f32.gmra.mrb[44].mxu0 %vm737_vm0, %v1985_v19  ;;  %v8773_v19 = vld [vmem:[#allocation120_spill] sm:$0xff]  ;;  %v3644_v35 = vmul.f32 %v8779_v4, %v8778_v57  ;;  %v8784_v25 = vld [vmem:[#allocation79_spill] sm:$0xff] }
 0x191   : > { %6134 = vmatmul.mubr.msk.f32.gmra.mrb[10].mxu1 %vm737_vm0, %v3639_v53  ;;  %5939 = vmatprep.mubr.msk.f32.mxu0 %vm737_vm0, %v1986_v29  ;;  %v1989_v53 = vmul.f32 %v8773_v19, %v8710_v9  ;;  %v8774_v29 = vld [vmem:[#allocation43_spill] sm:$0xff] }
 0x192   : > { %6136 = vmatprep.mubr.msk.f32.mxu1 %vm737_vm0, %v3640_v63  ;;  %v3643_v63 = vmul.f32 %v8775_v17, %v8774_v29  ;;  %v8783_v17 = vld [vmem:[#allocation57_spill] sm:$0xff] }
 0x193   : > { %v3646_v57 = vmul.f32 %v8784_v25, %v8783_v17  ;;  %v8792_v17 = vld [vmem:[#allocation10_spill] sm:$0xff] }
 0x194   : > { %5940 = vmatmul.mubr.msk.f32.gmra.mrb[46].mxu0 %vm737_vm0, %v1987_v11  ;;  %v8780_v11 = vld [vmem:[#allocation122_spill] sm:$0xff] }
 0x195   : > { %6137 = vmatmul.mubr.msk.f32.gmra.mrb[12].mxu1 %vm737_vm0, %v3641_v22  ;;  %5942 = vmatprep.mubr.msk.f32.mxu0 %vm737_vm0, %v1988_v58  ;;  %v1991_v22 = vmul.f32 %v8780_v11, %v8717_v3  ;;  %v8781_v58 = vld [vmem:[#allocation47_spill] sm:$0xff] }
 0x196   : > { %6139 = vmatprep.mubr.msk.f32.mxu1 %vm737_vm0, %v3642_v32  ;;  %v3645_v30 = vmul.f32 %v8715_v16, %v8781_v58  ;;  %v8782_v32 = vld [vmem:[#allocation123_spill] sm:$0xff]  ;;  %v8788_v58 = vld [vmem:[#allocation66_spill] sm:$0xff] }
 0x197   : > { %v1992_v29 = vmul.f32 %v8782_v32, %v8718_v39  ;;  %v8789_v39 = vld [vmem:[#allocation87_spill] sm:$0xff] }
 0x198   : > { %5943 = vmatmul.mubr.msk.f32.gmra.mrb[48].mxu0 %vm737_vm0, %v1989_v53  ;;  %v8786_v53 = vld [vmem:[#allocation56_spill] sm:$0xff]  ;;  %v3648_v25 = vmul.f32 %v8789_v39, %v8788_v58 }
 0x199   : > { %6140 = vmatmul.mubr.msk.f32.gmra.mrb[14].mxu1 %vm737_vm0, %v3643_v63  ;;  %5945 = vmatprep.mubr.msk.f32.mxu0 %vm737_vm0, %v1990_v34  ;;  %v8785_v34 = vld [vmem:[#allocation8_spill] sm:$0xff]  ;;  %v3647_v16 = vmul.f32 %v8721_v14, %v8786_v53 }
 0x19a   : > { %6142 = vmatprep.mubr.msk.f32.mxu1 %vm737_vm0, %v3644_v35  ;;  %v1993_v4 = vmul.f32 %v8785_v34, %v8722_v13  ;;  %v8787_v63 = vld [vmem:[#allocation124_spill] sm:$0xff] }
 0x19b   : > { %v1994_v35 = vmul.f32 %v8787_v63, %v8723_v1  ;;  %v8793_v53 = vld [vmem:[#allocation76_spill] sm:$0xff] }
 0x19c   : > { %5946 = vmatmul.mubr.msk.f32.gmra.mrb[50].mxu0 %vm737_vm0, %v1991_v22  ;;  %v8790_v22 = vld [vmem:[#allocation70_spill] sm:$0xff]  ;;  %v3650_v39 = vmul.f32 %v7408_v6, %v8793_v53  ;;  %v8796_v58 = vld [vmem:[#allocation92_spill] sm:$0xff]  ;;  %v8803_v53 = vld [vmem:[#allocation99_spill] sm:$0xff] }
 0x19d   : > { %6143 = vmatmul.mubr.msk.f32.gmra.mrb[16].mxu1 %vm737_vm0, %v3645_v30  ;;  %5948 = vmatprep.mubr.msk.f32.mxu0 %vm737_vm0, %v1992_v29  ;;  %v1995_v30 = vmul.f32 %v8790_v22, %v8727_v56  ;;  %v8791_v29 = vld [vmem:[#allocation65_spill] sm:$0xff]  ;;  %v8800_v1 = vld [vmem:[#allocation100_spill] sm:$0xff] }
 0x19e   : > { %6145 = vmatprep.mubr.msk.f32.mxu1 %vm737_vm0, %v3646_v57  ;;  %v3649_v14 = vmul.f32 %v8726_v62, %v8791_v29  ;;  %v1996_v57 = vmul.f32 %v8792_v17, %v8728_v28  ;;  %v8798_v29 = vld [vmem:[#allocation12_spill] sm:$0xff]  ;;  %v8799_v56 = vld [vmem:[#allocation85_spill] sm:$0xff] }
 0x19f   : > { %v3652_v6 = vmul.f32 %v8800_v1, %v8799_v56  ;;  %v7956_v56 = vld [vmem:[#allocation2 + $0x100] sm:$0xff] }
 0x1a0   : > { %5949 = vmatmul.mubr.msk.f32.gmra.mrb[52].mxu0 %vm737_vm0, %v1993_v4  ;;  %v8794_v4 = vld [vmem:[#allocation78_spill] sm:$0xff] }
 0x1a1   : > { %6146 = vmatmul.mubr.msk.f32.gmra.mrb[18].mxu1 %vm737_vm0, %v3647_v16  ;;  %5951 = vmatprep.mubr.msk.f32.mxu0 %vm737_vm0, %v1994_v35  ;;  %v1997_v16 = vmul.f32 %v8794_v4, %v8731_v0  ;;  %v8795_v35 = vld [vmem:[#allocation75_spill] sm:$0xff]  ;;  %v8806_v0 = vld [vmem:[#allocation97_spill] sm:$0xff] }
 0x1a2   : > { %6148 = vmatprep.mubr.msk.f32.mxu1 %vm737_vm0, %v3648_v25  ;;  %v3651_v62 = vmul.f32 %v8796_v58, %v8795_v35  ;;  %v8797_v25 = vld [vmem:[#allocation19_spill] sm:$0xff]  ;;  %v8804_v35 = vld [vmem:[#allocation21_spill] sm:$0xff] }
 0x1a3   : > { %v1998_v28 = vmul.f32 %v8798_v29, %v8797_v25  ;;  %v8805_v58 = vld [vmem:[#allocation125_spill] sm:$0xff]  ;;  %v8807_v29 = vld [vmem:[#allocation106_spill] sm:$0xff] }
 0x1a4   : > { %5952 = vmatmul.mubr.msk.f32.gmra.mrb[54].mxu0 %vm737_vm0, %v1995_v30  ;;  %v8801_v30 = vld [vmem:[#allocation86_spill] sm:$0xff]  ;;  %v2000_v25 = vmul.f32 %v8805_v58, %v8804_v35  ;;  %v3654_v1 = vmul.f32 %v8807_v29, %v8806_v0  ;;  %v7967_v0 = vld [vmem:[#allocation2 + $0x108] sm:$0xff]  ;;  %v8811_v29 = vld [vmem:[#allocation108_spill] sm:$0xff] }
 0x1a5   : > { %6149 = vmatmul.mubr.msk.f32.gmra.mrb[20].mxu1 %vm737_vm0, %v3649_v14  ;;  %5954 = vmatprep.mubr.msk.f32.mxu0 %vm737_vm0, %v1996_v57  ;;  %v1999_v14 = vmul.f32 %v8801_v30, %v8737_v52  ;;  %v8802_v57 = vld [vmem:[#allocation84_spill] sm:$0xff] }
 0x1a6   : > { %6151 = vmatprep.mubr.msk.f32.mxu1 %vm737_vm0, %v3650_v39  ;;  %v3653_v39 = vmul.f32 %v8803_v53, %v8802_v57  ;;  %v8810_v57 = vld [vmem:[#allocation128_spill] sm:$0xff] }
 0x1a7   : > { %v2002_v53 = vmul.f32 %v8810_v57, %v8742_v20  ;;  %v8813_v20 = vld [vmem:[#allocation126_spill] sm:$0xff] }
 0x1a8   : > { %5955 = vmatmul.mubr.msk.f32.gmra.mrb[56].mxu0 %vm737_vm0, %v1997_v16 }
 0x1a9   : > { %6152 = vmatmul.mubr.msk.f32.gmra.mrb[22].mxu1 %vm737_vm0, %v3651_v62  ;;  %5957 = vmatprep.mubr.msk.f32.mxu0 %vm737_vm0, %v1998_v28  ;;  %v8808_v28 = vld [vmem:[#allocation127_spill] sm:$0xff]  ;;  %v8809_v62 = vld [vmem:[#allocation96_spill] sm:$0xff] }
 0x1aa   : > { %6154 = vmatprep.mubr.msk.f32.mxu1 %vm737_vm0, %v3652_v6  ;;  %v2001_v16 = vmul.f32 %v8808_v28, %v8741_v61  ;;  %v3655_v6 = vmul.f32 %v8740_v5, %v8809_v62  ;;  %v2003_v5 = vmul.f32 %v7761_v8, %v8744_v21  ;;  %v3627_v62 = vld [vmem:[#allocation2 + $0x118] sm:$0xff] }
 0x1ac   : > { %5958 = vmatmul.mubr.msk.f32.gmra.mrb[58].mxu0 %vm737_vm0, %v1999_v14  ;;  %v3656_v14 = vmul.f32 %v7956_v56, %v8811_v29  ;;  %v8816_v29 = vld [vmem:[#allocation36_spill] sm:$0xff] }
 0x1ad   : > { %6155 = vmatmul.mubr.msk.f32.gmra.mrb[24].mxu1 %vm737_vm0, %v3653_v39  ;;  %5960 = vmatprep.mubr.msk.f32.mxu0 %vm737_vm0, %v2000_v25  ;;  %v3626_v39 = vld [vmem:[#allocation2 + $0x110] sm:$0xff]  ;;  %v8812_v25 = vld [vmem:[#allocation107_spill] sm:$0xff] }
 0x1ae   : > { %6157 = vmatprep.mubr.msk.f32.mxu1 %vm737_vm0, %v3654_v1  ;;  %v3657_v1 = vmul.f32 %v7967_v0, %v8812_v25  ;;  %v3658_v61 = vmul.f32 %v3626_v39, %v8813_v20  ;;  %v8817_v39 = vld [vmem:[#allocation35_spill] sm:$0xff]  ;;  %v4020_v25 = vld [vmem:[#allocation2 + $0x31] sm:$0xff] }
 0x1b0   : > { %5961 = vmatmul.mubr.msk.f32.gmra.mrb[60].mxu0 %vm737_vm0, %v2001_v16  ;;  %v8814_v16 = vld [vmem:[#allocation32_spill] sm:$0xff] }
 0x1b1   : > { %6158 = vmatmul.mubr.msk.f32.gmra.mrb[26].mxu1 %vm737_vm0, %v3655_v6  ;;  %5963 = vmatprep.mubr.msk.f32.mxu0 %vm737_vm0, %v2002_v53  ;;  %v3659_v6 = vmul.f32 %v3627_v62, %v7752_v55  ;;  %v8815_v53 = vld [vmem:[#allocation31_spill] sm:$0xff]  ;;  %v4021_v62 = vld [vmem:[#allocation2 + $0x39] sm:$0xff] }
 0x1b2   : > { %6160 = vmatprep.mubr.msk.f32.mxu1 %vm737_vm0, %v3656_v14  ;;  %v4018_v14 = vld [vmem:[#allocation2 + $0x21] sm:$0xff] }
 0x1b4   : > { %5964 = vmatmul.mubr.msk.f32.gmra.mrb[62].mxu0 %vm737_vm0, %v2003_v5  ;;  %v4019_v5 = vld [vmem:[#allocation2 + $0x29] sm:$0xff] }
 0x1b5   : > { %6161 = vmatmul.mubr.msk.f32.gmra.mrb[28].mxu1 %vm737_vm0, %v3657_v1  ;;  %5968 = vmatprep.mubr.msk.f32.mxu0 %vm737_vm0, %v8814_v16  ;;  %v8819_v1 = vld [vmem:[#allocation38_spill] sm:$0xff] }
 0x1b6   : > { %6163 = vmatprep.mubr.msk.f32.mxu1 %vm737_vm0, %v3658_v61  ;;  %v8818_v61 = vld [vmem:[#allocation39_spill] sm:$0xff]  ;;  %v8820_v16 = vld [vmem:[#allocation42_spill] sm:$0xff] }
 0x1b8   : > { %5969 = vmatmul.mubr.msk.f32.vlgmr.msra.gmra.mrb[32].mxu0 %vm737_vm0, %v8815_v53  ;;  %v8821_v53 = vld [vmem:[#allocation41_spill] sm:$0xff] }
 0x1b9   : > { %6164 = vmatmul.mubr.msk.f32.gmra.mrb[30].mxu1 %vm737_vm0, %v3659_v6  ;;  %5971 = vmatprep.mubr.msk.f32.mxu0 %vm737_vm0, %v8816_v29  ;;  %v4022_v6 = vld [vmem:[#allocation2 + $0x41] sm:$0xff]  ;;  %v4023_v29 = vld [vmem:[#allocation2 + $0x49] sm:$0xff] }
 0x1ba   : > { %6168 = vmatprep.mubr.msk.f32.mxu1 %vm737_vm0, %v4018_v14  ;;  %v4024_v14 = vld [vmem:[#allocation2 + $0x51] sm:$0xff] }
 0x1bc   : > { %5972 = vmatmul.mubr.msk.f32.gmra.mrb[34].mxu0 %vm737_vm0, %v8817_v39  ;;  %v8823_v39 = vld [vmem:[#allocation45_spill] sm:$0xff] }
 0x1bd   : > { %6169 = vmatmul.mubr.msk.f32.vlgmr.msra.gmra.mrb[0].mxu1 %vm737_vm0, %v4019_v5  ;;  %5974 = vmatprep.mubr.msk.f32.mxu0 %vm737_vm0, %v8818_v61  ;;  %v4025_v5 = vld [vmem:[#allocation2 + $0x59] sm:$0xff]  ;;  %v8824_v61 = vld [vmem:[#allocation51_spill] sm:$0xff] }
 0x1be   : > { %6217 = vmatpush3.msk.msra.mxu1 %vm1195_vm2, %v7806_v41  ;;  %6171 = vmatprep.mubr.msk.f32.mxu1 %vm737_vm0, %v4020_v25  ;;  %v8822_v41 = vld [vmem:[#allocation46_spill] sm:$0xff] }
 0x1bf   : > { %v4026_v25 = vld [vmem:[#allocation2 + $0x61] sm:$0xff] }
 0x1c0   : > { %5975 = vmatmul.mubr.msk.f32.gmra.mrb[36].mxu0 %vm737_vm0, %v8819_v1  ;;  %v8825_v1 = vld [vmem:[#allocation50_spill] sm:$0xff] }
 0x1c1   : > { %6172 = vmatmul.mubr.msk.f32.gmra.mrb[2].mxu1 %vm737_vm0, %v4021_v62  ;;  %5977 = vmatprep.mubr.msk.f32.mxu0 %vm737_vm0, %v8820_v16  ;;  %v4027_v62 = vld [vmem:[#allocation2 + $0x69] sm:$0xff] }
 0x1c2   : > { %6174 = vmatprep.mubr.msk.f32.mxu1 %vm737_vm0, %v4022_v6  ;;  %v8826_v16 = vld [vmem:[#allocation55_spill] sm:$0xff]  ;;  %v4028_v6 = vld [vmem:[#allocation2 + $0x71] sm:$0xff] }
 0x1c4   : > { %5978 = vmatmul.mubr.msk.f32.gmra.mrb[38].mxu0 %vm737_vm0, %v8821_v53  ;;  %v8827_v53 = vld [vmem:[#allocation54_spill] sm:$0xff] }
 0x1c5   : > { %6175 = vmatmul.mubr.msk.f32.gmra.mrb[4].mxu1 %vm737_vm0, %v4023_v29  ;;  %5980 = vmatprep.mubr.msk.f32.mxu0 %vm737_vm0, %v8822_v41  ;;  %v4029_v29 = vld [vmem:[#allocation2 + $0x79] sm:$0xff] }
 0x1c6   : > { %6177 = vmatprep.mubr.msk.f32.mxu1 %vm737_vm0, %v4024_v14  ;;  %v8828_v41 = vld [vmem:[#allocation61_spill] sm:$0xff]  ;;  %v4030_v14 = vld [vmem:[#allocation2 + $0x81] sm:$0xff] }
 0x1c8   : > { %5981 = vmatmul.mubr.msk.f32.gmra.mrb[40].mxu0 %vm737_vm0, %v8823_v39  ;;  %v8829_v39 = vld [vmem:[#allocation60_spill] sm:$0xff] }
 0x1c9   : > { %6178 = vmatmul.mubr.msk.f32.gmra.mrb[6].mxu1 %vm737_vm0, %v4025_v5  ;;  %5983 = vmatprep.mubr.msk.f32.mxu0 %vm737_vm0, %v8824_v61  ;;  %v4031_v5 = vld [vmem:[#allocation2 + $0x89] sm:$0xff] }
 0x1ca   : > { %6180 = vmatprep.mubr.msk.f32.mxu1 %vm737_vm0, %v4026_v25  ;;  %v8830_v61 = vld [vmem:[#allocation68_spill] sm:$0xff] }
 0x1cb   : > { %v8831_v25 = vld [vmem:[#allocation64_spill] sm:$0xff] }
 0x1cc   : > { %5984 = vmatmul.mubr.msk.f32.gmra.mrb[42].mxu0 %vm737_vm0, %v8825_v1  ;;  %v8832_v1 = vld [vmem:[#allocation67_spill] sm:$0xff] }
 0x1cd   : > { %6181 = vmatmul.mubr.msk.f32.gmra.mrb[8].mxu1 %vm737_vm0, %v4027_v62  ;;  %5986 = vmatprep.mubr.msk.f32.mxu0 %vm737_vm0, %v8826_v16  ;;  %v8833_v62 = vld [vmem:[#allocation69_spill] sm:$0xff] }
 0x1ce   : > { %6183 = vmatprep.mubr.msk.f32.mxu1 %vm737_vm0, %v4028_v6  ;;  %v8834_v16 = vld [vmem:[#allocation73_spill] sm:$0xff]  ;;  %v8835_v6 = vld [vmem:[#allocation74_spill] sm:$0xff] }
 0x1d0   : > { %5987 = vmatmul.mubr.msk.f32.gmra.mrb[44].mxu0 %vm737_vm0, %v8827_v53  ;;  %v8836_v53 = vld [vmem:[#allocation72_spill] sm:$0xff] }
 0x1d1   : > { %6184 = vmatmul.mubr.msk.f32.gmra.mrb[10].mxu1 %vm737_vm0, %v4029_v29  ;;  %5989 = vmatprep.mubr.msk.f32.mxu0 %vm737_vm0, %v8828_v41  ;;  %v8837_v29 = vld [vmem:[#allocation77_spill] sm:$0xff]  ;;  %v8838_v41 = vld [vmem:[#allocation82_spill] sm:$0xff] }
 0x1d2   : > { %6186 = vmatprep.mubr.msk.f32.mxu1 %vm737_vm0, %v4030_v14  ;;  %v8839_v14 = vld [vmem:[#allocation80_spill] sm:$0xff] }
 0x1d4   : > { %5990 = vmatmul.mubr.msk.f32.gmra.mrb[46].mxu0 %vm737_vm0, %v8829_v39  ;;  %v8840_v39 = vld [vmem:[#allocation81_spill] sm:$0xff] }
 0x1d5   : > { %6187 = vmatmul.mubr.msk.f32.gmra.mrb[12].mxu1 %vm737_vm0, %v4031_v5  ;;  %5992 = vmatprep.mubr.msk.f32.mxu0 %vm737_vm0, %v8830_v61  ;;  %v8841_v5 = vld [vmem:[#allocation83_spill] sm:$0xff]  ;;  %v8842_v61 = vld [vmem:[#allocation90_spill] sm:$0xff] }
 0x1d6   : > { %6189 = vmatprep.mubr.msk.f32.mxu1 %vm737_vm0, %v8831_v25  ;;  %v8843_v25 = vld [vmem:[#allocation88_spill] sm:$0xff] }
 0x1d8   : > { %5993 = vmatmul.mubr.msk.f32.gmra.mrb[48].mxu0 %vm737_vm0, %v8832_v1  ;;  %v8844_v1 = vld [vmem:[#allocation89_spill] sm:$0xff] }
 0x1d9   : > { %6190 = vmatmul.mubr.msk.f32.gmra.mrb[14].mxu1 %vm737_vm0, %v8833_v62  ;;  %5995 = vmatprep.mubr.msk.f32.mxu0 %vm737_vm0, %v8834_v16  ;;  %v8845_v62 = vld [vmem:[#allocation91_spill] sm:$0xff] }
 0x1da   : > { %6192 = vmatprep.mubr.msk.f32.mxu1 %vm737_vm0, %v8835_v6  ;;  %v8846_v16 = vld [vmem:[#allocation95_spill] sm:$0xff]  ;;  %v8847_v6 = vld [vmem:[#allocation93_spill] sm:$0xff] }
 0x1dc   : > { %5996 = vmatmul.mubr.msk.f32.gmra.mrb[50].mxu0 %vm737_vm0, %v8836_v53  ;;  %v8848_v53 = vld [vmem:[#allocation94_spill] sm:$0xff] }
 0x1dd   : > { %6193 = vmatmul.mubr.msk.f32.gmra.mrb[16].mxu1 %vm737_vm0, %v8837_v29  ;;  %5998 = vmatprep.mubr.msk.f32.mxu0 %vm737_vm0, %v8838_v41  ;;  %v8849_v29 = vld [vmem:[#allocation98_spill] sm:$0xff]  ;;  %v8850_v41 = vld [vmem:[#allocation103_spill] sm:$0xff] }
 0x1de   : > { %6195 = vmatprep.mubr.msk.f32.mxu1 %vm737_vm0, %v8839_v14  ;;  %v8851_v14 = vld [vmem:[#allocation101_spill] sm:$0xff] }
 0x1e0   : > { %5999 = vmatmul.mubr.msk.f32.gmra.mrb[52].mxu0 %vm737_vm0, %v8840_v39  ;;  %v8852_v39 = vld [vmem:[#allocation102_spill] sm:$0xff] }
 0x1e1   : > { %6196 = vmatmul.mubr.msk.f32.gmra.mrb[18].mxu1 %vm737_vm0, %v8841_v5  ;;  %6001 = vmatprep.mubr.msk.f32.mxu0 %vm737_vm0, %v8842_v61  ;;  %v8853_v5 = vld [vmem:[#allocation104_spill] sm:$0xff]  ;;  %v8854_v61 = vld [vmem:[#allocation111_spill] sm:$0xff] }
 0x1e2   : > { %6198 = vmatprep.mubr.msk.f32.mxu1 %vm737_vm0, %v8843_v25  ;;  %v8855_v25 = vld [vmem:[#allocation109_spill] sm:$0xff] }
 0x1e4   : > { %6002 = vmatmul.mubr.msk.f32.gmra.mrb[54].mxu0 %vm737_vm0, %v8844_v1  ;;  %v2424_v1 = vmul.f32 %v7956_v56, %v8813_v20  ;;  %v4049_v20 = vld [vmem:[#allocation2 + $0x119] sm:$0xff]  ;;  %v8860_v56 = vld [vmem:[#allocation3_spill] sm:$0xff] }
 0x1e5   : > { %6199 = vmatmul.mubr.msk.f32.gmra.mrb[20].mxu1 %vm737_vm0, %v8845_v62  ;;  %6004 = vmatprep.mubr.msk.f32.mxu0 %vm737_vm0, %v8846_v16  ;;  %v8856_v62 = vld [vmem:[#allocation110_spill] sm:$0xff]  ;;  %v8857_v16 = vld [vmem:[#allocation112_spill] sm:$0xff] }
 0x1e6   : > { %6201 = vmatprep.mubr.msk.f32.mxu1 %vm737_vm0, %v8847_v6  ;;  %v2425_v6 = vmul.f32 %v7967_v0, %v7752_v55  ;;  %v4441_v55 = vmul.f32 %v7540_v26, %v6991_v43  ;;  %v4442_v0 = vmul.f32 %v7549_v54, %v6985_v40  ;;  %v4445_v43 = vmul.f32 %v7581_v15, %v6993_v44  ;;  %v8861_v15 = vld [vmem:[#allocation9_spill] sm:$0xff]  ;;  %v8862_v54 = vld [vmem:[#allocation11_spill] sm:$0xff] }
 0x1e7   : > { %v4446_v40 = vmul.f32 %v7585_v60, %v6999_v47  ;;  %v4449_v44 = vmul.f32 %v8758_v12, %v7001_v48  ;;  %v4450_v47 = vmul.f32 %v8762_v38, %v7007_v51  ;;  %v4453_v48 = vmul.f32 %v8773_v19, %v8757_v2  ;;  %v8863_v60 = vld [vmem:[#allocation13_spill] sm:$0xff]  ;;  %v8865_v2 = vld [vmem:[#allocation12_spill] sm:$0xff] }
 0x1e8   : > { %6005 = vmatmul.mubr.msk.f32.gmra.mrb[56].mxu0 %vm737_vm0, %v8848_v53  ;;  %v8858_v53 = vld [vmem:[#allocation113_spill] sm:$0xff]  ;;  %v4454_v51 = vmul.f32 %v8777_v7, %v8761_v37  ;;  %v4457_v26 = vmul.f32 %v8785_v34, %v8710_v9  ;;  %v4461_v9 = vmul.f32 %v8794_v4, %v8722_v13  ;;  %v8866_v37 = vld [vmem:[#allocation14_spill] sm:$0xff]  ;;  %v4467_v7 = vmul.f32 %v7761_v8, %v8737_v52 }
 0x1e9   : > { %6202 = vmatmul.mubr.msk.f32.gmra.mrb[22].mxu1 %vm737_vm0, %v8849_v29  ;;  %6007 = vmatprep.mubr.msk.f32.mxu0 %vm737_vm0, %v8850_v41  ;;  %v4048_v29 = vld [vmem:[#allocation2 + $0x111] sm:$0xff]  ;;  %v8859_v41 = vld [vmem:[#allocation114_spill] sm:$0xff] }
 0x1ea   : > { %6204 = vmatprep.mubr.msk.f32.mxu1 %vm737_vm0, %v8851_v14  ;;  %v4440_v14 = vmul.f32 %v7524_v27, %v8860_v56  ;;  %v4444_v27 = vmul.f32 %v7569_v23, %v6995_v45  ;;  %v4448_v45 = vmul.f32 %v8754_v10, %v7003_v49  ;;  %v4452_v49 = vmul.f32 %v8770_v59, %v8753_v33  ;;  %v8864_v10 = vld [vmem:[#allocation15_spill] sm:$0xff]  ;;  %v8867_v38 = vld [vmem:[#allocation17_spill] sm:$0xff] }
 0x1eb   : > { %v4459_v23 = vmul.f32 %v8790_v22, %v8717_v3  ;;  %v4460_v33 = vmul.f32 %v8792_v17, %v8863_v60  ;;  %v4462_v12 = vmul.f32 %v8865_v2, %v8864_v10  ;;  %v4463_v3 = vmul.f32 %v8801_v30, %v8866_v37  ;;  %v8869_v59 = vld [vmem:[#allocation19_spill] sm:$0xff]  ;;  %v4438_v34 = vld [vmem:[#allocation2 + $0x112] sm:$0xff]  ;;  %v4439_v4 = vld [vmem:[#allocation2 + $0x11a] sm:$0xff] }
 0x1ec   : > { %6008 = vmatmul.mubr.msk.f32.gmra.mrb[58].mxu0 %vm737_vm0, %v8852_v39  ;;  %v4443_v39 = vmul.f32 %v7565_v18, %v6989_v42  ;;  %v4447_v42 = vmul.f32 %v7597_v24, %v6997_v46  ;;  %v4451_v46 = vmul.f32 %v8766_v31, %v7005_v50  ;;  %v4455_v50 = vmul.f32 %v8780_v11, %v8765_v36  ;;  %v8868_v31 = vld [vmem:[#allocation16_spill] sm:$0xff]  ;;  %v8870_v11 = vld [vmem:[#allocation18_spill] sm:$0xff]  ;;  %v8872_v22 = vld [vmem:[#allocation105_spill] sm:$0xff] }
 0x1ed   : > { %6205 = vmatmul.mubr.msk.f32.gmra.mrb[24].mxu1 %vm737_vm0, %v8853_v5  ;;  %6010 = vmatprep.mubr.msk.f32.mxu0 %vm737_vm0, %v8854_v61  ;;  %v4456_v24 = vmul.f32 %v8782_v32, %v8861_v15  ;;  %v4458_v18 = vmul.f32 %v8787_v63, %v8862_v54  ;;  %v4464_v36 = vmul.f32 %v8805_v58, %v8867_v38  ;;  %v8871_v63 = vld [vmem:[#allocation20_spill] sm:$0xff]  ;;  %v8873_v30 = vld [vmem:[#allocation23_spill] sm:$0xff]  ;;  %v8250_v15 = vld [vmem:[%s8420_s4] ss:$0 sm:$0xff] }
 0x1ee   : > { %6207 = vmatprep.mubr.msk.f32.mxu1 %vm737_vm0, %v8855_v25  ;;  %v4465_v13 = vmul.f32 %v8808_v28, %v8868_v31  ;;  %v4466_v19 = vmul.f32 %v8810_v57, %v8869_v59  ;;  %v4468_v32 = vmul.f32 %v8870_v11, %v8804_v35  ;;  %v4469_v17 = vmul.f32 %v8872_v22, %v8871_v63  ;;  %v6534_v38 = vld [vmem:[%s6716_s14 + $0x8] sm:$0xff] }
 0x1ef   : > { %v4470_v58 = vmul.f32 %v4438_v34, %v8873_v30  ;;  %v4471_v8 = vmul.f32 %v4439_v4, %v8744_v21  ;;  %v6536_v30 = vld [vmem:[%s6716_s14 + $0x18] sm:$0xff] }
 0x1f0   : > { %6011 = vmatmul.mubr.msk.f32.gmra.mrb[60].mxu0 %vm737_vm0, %v8856_v62 }
 0x1f1   : > { %6208 = vmatmul.mubr.msk.f32.gmra.mrb[26].mxu1 %vm737_vm0, %v8857_v16  ;;  %6013 = vmatprep.mubr.msk.f32.mxu0 %vm737_vm0, %v2424_v1 }
 0x1f2   : > { %6210 = vmatprep.mubr.msk.f32.mxu1 %vm737_vm0, %v8858_v53 }
 0x1f4   : > { %6014 = vmatmul.mubr.msk.f32.gmra.mrb[62].mxu0 %vm737_vm0, %v2425_v6 }
 0x1f5   : > { %6211 = vmatmul.mubr.msk.f32.gmra.mrb[28].mxu1 %vm737_vm0, %v8859_v41 }
 0x1f6   : > { %6213 = vmatprep.mubr.msk.f32.mxu1 %vm737_vm0, %v4048_v29 }
 0x1f9   : > { %6214 = vmatmul.mubr.msk.f32.gmra.mrb[30].mxu1 %vm737_vm0, %v4049_v20 }
 0x1fa   : > { %6218 = vmatprep.mubr.msk.f32.mxu1 %vm737_vm0, %v4440_v14 }
 0x1fd   : > { %6219 = vmatmul.mubr.msk.f32.vlgmr.msra.gmra.mrb[0].mxu1 %vm737_vm0, %v4441_v55 }
 0x1fe   : > { %6221 = vmatprep.mubr.msk.f32.mxu1 %vm737_vm0, %v4442_v0 }
 0x201   : > { %6222 = vmatmul.mubr.msk.f32.gmra.mrb[2].mxu1 %vm737_vm0, %v4443_v39 }
 0x202   : > { %6224 = vmatprep.mubr.msk.f32.mxu1 %vm737_vm0, %v4444_v27 }
 0x205   : > { %6225 = vmatmul.mubr.msk.f32.gmra.mrb[4].mxu1 %vm737_vm0, %v4445_v43 }
 0x206   : > { %6227 = vmatprep.mubr.msk.f32.mxu1 %vm737_vm0, %v4446_v40 }
 0x209   : > { %6228 = vmatmul.mubr.msk.f32.gmra.mrb[6].mxu1 %vm737_vm0, %v4447_v42 }
 0x20a   : > { %6230 = vmatprep.mubr.msk.f32.mxu1 %vm737_vm0, %v4448_v45 }
 0x20d   : > { %6231 = vmatmul.mubr.msk.f32.gmra.mrb[8].mxu1 %vm737_vm0, %v4449_v44 }
 0x20e   : > { %6233 = vmatprep.mubr.msk.f32.mxu1 %vm737_vm0, %v4450_v47 }
 0x211   : > { %6234 = vmatmul.mubr.msk.f32.gmra.mrb[10].mxu1 %vm737_vm0, %v4451_v46 }
 0x212   : > { %6236 = vmatprep.mubr.msk.f32.mxu1 %vm737_vm0, %v4452_v49 }
 0x215   : > { %6237 = vmatmul.mubr.msk.f32.gmra.mrb[12].mxu1 %vm737_vm0, %v4453_v48 }
 0x216   : > { %6239 = vmatprep.mubr.msk.f32.mxu1 %vm737_vm0, %v4454_v51 }
 0x219   : > { %6240 = vmatmul.mubr.msk.f32.gmra.mrb[14].mxu1 %vm737_vm0, %v4455_v50 }
 0x21a   : > { %6242 = vmatprep.mubr.msk.f32.mxu1 %vm737_vm0, %v4456_v24 }
 0x21d   : > { %6243 = vmatmul.mubr.msk.f32.gmra.mrb[16].mxu1 %vm737_vm0, %v4457_v26 }
 0x21e   : > { %6245 = vmatprep.mubr.msk.f32.mxu1 %vm737_vm0, %v4458_v18 }
 0x221   : > { %6246 = vmatmul.mubr.msk.f32.gmra.mrb[18].mxu1 %vm737_vm0, %v4459_v23 }
 0x222   : > { %6248 = vmatprep.mubr.msk.f32.mxu1 %vm737_vm0, %v4460_v33 }
 0x225   : > { %6249 = vmatmul.mubr.msk.f32.gmra.mrb[20].mxu1 %vm737_vm0, %v4461_v9 }
 0x226   : > { %6251 = vmatprep.mubr.msk.f32.mxu1 %vm737_vm0, %v4462_v12 }
 0x229   : > { %6252 = vmatmul.mubr.msk.f32.gmra.mrb[22].mxu1 %vm737_vm0, %v4463_v3 }
 0x22a   : > { %6254 = vmatprep.mubr.msk.f32.mxu1 %vm737_vm0, %v4464_v36 }
 0x22d   : > { %6255 = vmatmul.mubr.msk.f32.gmra.mrb[24].mxu1 %vm737_vm0, %v4465_v13 }
 0x22e   : > { %6257 = vmatprep.mubr.msk.f32.mxu1 %vm737_vm0, %v4466_v19  ;;  %v6535_v19 = vld [vmem:[%s6716_s14] sm:$0xff] }
 0x231   : > { %6258 = vmatmul.mubr.msk.f32.gmra.mrb[26].mxu1 %vm737_vm0, %v4467_v7 }
 0x232   : > { %6260 = vmatprep.mubr.msk.f32.mxu1 %vm737_vm0, %v4468_v32 }
 0x235   : > { %6261 = vmatmul.mubr.msk.f32.gmra.mrb[28].mxu1 %vm737_vm0, %v4469_v17 }
 0x236   : > { %6263 = vmatprep.mubr.msk.f32.mxu1 %vm737_vm0, %v4470_v58 }
 0x239   : > { %6264 = vmatmul.mubr.msk.f32.gmra.mrb[30].mxu1 %vm737_vm0, %v4471_v8 }
 0x28b   : > { %v5970_v52 = vpop.f32.mrb[32].mxu0 }
 0x28c   : > { %v2593_v35 = vpop.f32.mrb[33].mxu0 }
 0x28f   : > { %v5973_v28 = vpop.f32.mrb[34].mxu0 }
 0x290   : > { %v2603_v57 = vpop.f32.mrb[35].mxu0 }
 0x293   : > { %v5976_v5 = vpop.f32.mrb[36].mxu0 }
 0x294   : > { %v2613_v61 = vpop.f32.mrb[37].mxu0 }
 0x297   : > { %v8195_v25 = vpop.f32.mrb[38].mxu0 }
 0x298   : > { %v8197_v1 = vpop.f32.mrb[39].mxu0 }
 0x29b   : > { %v8199_v62 = vpop.f32.mrb[40].mxu0 }
 0x29c   : > { %v8201_v16 = vpop.f32.mrb[41].mxu0 }
 0x29f   : > { %v8203_v6 = vpop.f32.mrb[42].mxu0 }
 0x2a0   : > { %v8205_v53 = vpop.f32.mrb[43].mxu0 }
 0x2a3   : > { %v8207_v21 = vpop.f32.mrb[44].mxu0 }
 0x2a4   : > { %v8209_v29 = vpop.f32.mrb[45].mxu0 }
 0x2a7   : > { %v8211_v41 = vpop.f32.mrb[46].mxu0 }
 0x2a8   : > { %v8213_v20 = vpop.f32.mrb[47].mxu0 }
 0x2ab   : > { %v8215_v56 = vpop.f32.mrb[48].mxu0 }
 0x2ac   : > { %v8217_v14 = vpop.f32.mrb[49].mxu0 }
 0x2af   : > { %v8219_v55 = vpop.f32.mrb[50].mxu0 }
 0x2b0   : > { %v8221_v0 = vpop.f32.mrb[51].mxu0 }
 0x2b3   : > { %v8223_v39 = vpop.f32.mrb[52].mxu0 }
 0x2b4   : > { %v8225_v27 = vpop.f32.mrb[53].mxu0 }
 0x2b7   : > { %v8227_v43 = vpop.f32.mrb[54].mxu0 }
 0x2b8   : > { %v8229_v40 = vpop.f32.mrb[55].mxu0 }
 0x2bb   : > { %v8231_v42 = vpop.f32.mrb[56].mxu0 }
 0x2bc   : > { %v8233_v45 = vpop.f32.mrb[57].mxu0 }
 0x2bf   : > { %v8235_v44 = vpop.f32.mrb[58].mxu0 }
 0x2c0   : > { %v8237_v47 = vpop.f32.mrb[59].mxu0 }
 0x2c3   : > { %v8239_v46 = vpop.f32.mrb[60].mxu0 }
 0x2c4   : > { %v8241_v49 = vpop.f32.mrb[61].mxu0 }
 0x2c7   : > { %v8243_v48 = vpop.f32.mrb[62].mxu0 }
 0x2c8   : > { %v8245_v51 = vpop.f32.mrb[63].mxu0 }
 0x2d0   : > { %v6220_v50 = vpop.f32.mrb[0].mxu1 }
 0x2d1   : > { %v6266_v24 = vadd.f32 %v6220_v50, %v5970_v52  ;;  %v4639_v26 = vpop.f32.mrb[1].mxu1 }
 0x2d2   : > { %v6267_v54 = vadd.f32 %v4639_v26, %v2593_v35 }
 0x2d3   : > { %v4838_v18 = vadd.f32 %v6266_v24, %v8250_v15 }
 0x2d4   : > { %v4837_v23 = vadd.f32 %v6267_v54, %v8250_v15  ;;  %v6223_v60 = vpop.f32.mrb[2].mxu1 }
 0x2d5   : > { %vm4870_vm0 = vcmp.gt.f32.partialorder %v4838_v18, 0.0  ;;  %v4902_v33 = vmul.f32 0.1, %v4838_v18  ;;  %v6268_v9 = vadd.f32 %v6223_v60, %v5973_v28  ;;  %v4649_v10 = vpop.f32.mrb[3].mxu1  ;;  %v6537_v28 = vld [vmem:[%s6716_s14 + $0x10] sm:$0xff] }
 0x2d6   : > { %vm4869_vm2 = vcmp.gt.f32.partialorder %v4837_v23, 0.0  ;;  %v4901_v2 = vmul.f32 0.1, %v4837_v23  ;;  %v6269_v12 = vadd.f32 %v4649_v10, %v2603_v57  ;;  %v6539_v10 = vld [vmem:[%s6716_s14 + $0x20] sm:$0xff] }
 0x2d7   : > { %v4934_v37 = vsel %vm4870_vm0, %v4838_v18, %v4902_v33  ;;  %v4840_v3 = vadd.f32 %v6268_v9, %v8250_v15 }
 0x2d8   : > { %v4966_v36 = vadd.f32 %v6534_v38, %v4934_v37  ;;  %v4933_v31 = vsel %vm4869_vm2, %v4837_v23, %v4901_v2  ;;  %v4839_v13 = vadd.f32 %v6269_v12, %v8250_v15  ;;  %v6226_v59 = vpop.f32.mrb[4].mxu1  ;;  %v6538_v23 = vld [vmem:[%s6716_s14 + $0x28] sm:$0xff] }
 0x2d9   : > { %v4965_v7 = vadd.f32 %v6535_v19, %v4933_v31  ;;  %vm4872_vm10 = vcmp.gt.f32.partialorder %v4840_v3, 0.0  ;;  %v4904_v11 = vmul.f32 0.1, %v4840_v3  ;;  %v6270_v32 = vadd.f32 %v6226_v59, %v5976_v5  ;;  %v4659_v34 = vpop.f32.mrb[5].mxu1 }
 0x2da   : > { %4998 = vst.msk [vmem:[%s8259_s30 + $0x8] sm:$0xff] %vm319_vm1, %v4966_v36  ;;  %vm4871_vm11 = vcmp.gt.f32.partialorder %v4839_v13, 0.0  ;;  %v4903_v63 = vmul.f32 0.1, %v4839_v13  ;;  %v6271_v22 = vadd.f32 %v4659_v34, %v2613_v61 }
 0x2db   : > { %4997 = vst.msk [vmem:[%s8259_s30] sm:$0xff] %vm319_vm1, %v4965_v7  ;;  %v4936_v17 = vsel %vm4872_vm10, %v4840_v3, %v4904_v11  ;;  %v4842_v4 = vadd.f32 %v6270_v32, %v8250_v15  ;;  %v6541_v11 = vld [vmem:[%s6716_s14 + $0x30] sm:$0xff] }
 0x2dc   : > { %v4968_v58 = vadd.f32 %v6536_v30, %v4936_v17  ;;  %v4935_v8 = vsel %vm4871_vm11, %v4839_v13, %v4903_v63  ;;  %v4841_v52 = vadd.f32 %v6271_v22, %v8250_v15  ;;  %v6229_v35 = vpop.f32.mrb[6].mxu1  ;;  %v6540_v13 = vld [vmem:[%s6716_s14 + $0x38] sm:$0xff] }
 0x2dd   : > { %v4967_v57 = vadd.f32 %v6537_v28, %v4935_v8  ;;  %vm4874_vm12 = vcmp.gt.f32.partialorder %v4842_v4, 0.0  ;;  %v4906_v5 = vmul.f32 0.1, %v4842_v4  ;;  %v6272_v61 = vadd.f32 %v6229_v35, %v8195_v25  ;;  %v4669_v50 = vpop.f32.mrb[7].mxu1  ;;  %v6543_v28 = vld [vmem:[%s6716_s14 + $0x40] sm:$0xff] }
 0x2de   : > { %5000 = vst.msk [vmem:[%s8259_s30 + $0x18] sm:$0xff] %vm319_vm1, %v4968_v58  ;;  %vm4873_vm13 = vcmp.gt.f32.partialorder %v4841_v52, 0.0  ;;  %v4905_v24 = vmul.f32 0.1, %v4841_v52  ;;  %v6273_v26 = vadd.f32 %v4669_v50, %v8197_v1  ;;  %v6542_v58 = vld [vmem:[%s6716_s14 + $0x48] sm:$0xff] }
 0x2df   : > { %4999 = vst.msk [vmem:[%s8259_s30 + $0x10] sm:$0xff] %vm319_vm1, %v4967_v57  ;;  %v4938_v54 = vsel %vm4874_vm12, %v4842_v4, %v4906_v5  ;;  %v4844_v18 = vadd.f32 %v6272_v61, %v8250_v15 }
 0x2e0   : > { %v4970_v60 = vadd.f32 %v6538_v23, %v4938_v54  ;;  %v4937_v33 = vsel %vm4873_vm13, %v4841_v52, %v4905_v24  ;;  %v4843_v25 = vadd.f32 %v6273_v26, %v8250_v15  ;;  %v6232_v9 = vpop.f32.mrb[8].mxu1 }
 0x2e1   : > { %v4969_v2 = vadd.f32 %v6539_v10, %v4937_v33  ;;  %vm4876_vm14 = vcmp.gt.f32.partialorder %v4844_v18, 0.0  ;;  %v4908_v12 = vmul.f32 0.1, %v4844_v18  ;;  %v6274_v1 = vadd.f32 %v6232_v9, %v8199_v62  ;;  %v4679_v37 = vpop.f32.mrb[9].mxu1 }
 0x2e2   : > { %5002 = vst.msk [vmem:[%s8259_s30 + $0x28] sm:$0xff] %vm319_vm1, %v4970_v60  ;;  %vm4875_vm15 = vcmp.gt.f32.partialorder %v4843_v25, 0.0  ;;  %v4907_v3 = vmul.f32 0.1, %v4843_v25  ;;  %v6275_v38 = vadd.f32 %v4679_v37, %v8201_v16 }
 0x2e3   : > { %5001 = vst.msk [vmem:[%s8259_s30 + $0x20] sm:$0xff] %vm319_vm1, %v4969_v2  ;;  %v4940_v36 = vsel %vm4876_vm14, %v4844_v18, %v4908_v12  ;;  %v4846_v31 = vadd.f32 %v6274_v1, %v8250_v15  ;;  %v6544_v18 = vld [vmem:[%s6716_s14 + $0x58] sm:$0xff] }
 0x2e4   : > { %v4972_v59 = vadd.f32 %v6540_v13, %v4940_v36  ;;  %v4939_v19 = vsel %vm4875_vm15, %v4843_v25, %v4907_v3  ;;  %v4845_v62 = vadd.f32 %v6275_v38, %v8250_v15  ;;  %v6235_v7 = vpop.f32.mrb[10].mxu1  ;;  %v6545_v25 = vld [vmem:[%s6716_s14 + $0x50] sm:$0xff]  ;;  %v6546_v38 = vld [vmem:[%s6716_s14 + $0x68] sm:$0xff] }
 0x2e5   : > { %v4971_v32 = vadd.f32 %v6541_v11, %v4939_v19  ;;  %vm4878_vm3 = vcmp.gt.f32.partialorder %v4846_v31, 0.0  ;;  %v4910_v34 = vmul.f32 0.1, %v4846_v31  ;;  %v6276_v16 = vadd.f32 %v6235_v7, %v8203_v6  ;;  %v4689_v63 = vpop.f32.mrb[11].mxu1 }
 0x2e6   : > { %5004 = vst.msk [vmem:[%s8259_s30 + $0x38] sm:$0xff] %vm319_vm1, %v4972_v59  ;;  %vm4877_vm4 = vcmp.gt.f32.partialorder %v4845_v62, 0.0  ;;  %v4909_v22 = vmul.f32 0.1, %v4845_v62  ;;  %v6277_v17 = vadd.f32 %v4689_v63, %v8205_v53  ;;  %v6547_v59 = vld [vmem:[%s6716_s14 + $0x60] sm:$0xff]  ;;  %v6548_v63 = vld [vmem:[%s6716_s14 + $0x78] sm:$0xff] }
 0x2e7   : > { %5003 = vst.msk [vmem:[%s8259_s30 + $0x30] sm:$0xff] %vm319_vm1, %v4971_v32  ;;  %v4942_v4 = vsel %vm4878_vm3, %v4846_v31, %v4910_v34  ;;  %v4848_v30 = vadd.f32 %v6276_v16, %v8250_v15 }
 0x2e8   : > { %v4974_v8 = vadd.f32 %v6542_v58, %v4942_v4  ;;  %v4941_v52 = vsel %vm4877_vm4, %v4845_v62, %v4909_v22  ;;  %v4847_v6 = vadd.f32 %v6277_v17, %v8250_v15  ;;  %v6238_v35 = vpop.f32.mrb[12].mxu1 }
 0x2e9   : > { %v4973_v57 = vadd.f32 %v6543_v28, %v4941_v52  ;;  %vm4880_vm5 = vcmp.gt.f32.partialorder %v4848_v30, 0.0  ;;  %v4912_v5 = vmul.f32 0.1, %v4848_v30  ;;  %v6278_v53 = vadd.f32 %v6238_v35, %v8207_v21  ;;  %v4699_v61 = vpop.f32.mrb[13].mxu1 }
 0x2ea   : > { %5006 = vst.msk [vmem:[%s8259_s30 + $0x48] sm:$0xff] %vm319_vm1, %v4974_v8  ;;  %vm4879_vm6 = vcmp.gt.f32.partialorder %v4847_v6, 0.0  ;;  %v4911_v50 = vmul.f32 0.1, %v4847_v6  ;;  %v6279_v24 = vadd.f32 %v4699_v61, %v8209_v29 }
 0x2eb   : > { %5005 = vst.msk [vmem:[%s8259_s30 + $0x40] sm:$0xff] %vm319_vm1, %v4973_v57  ;;  %v4944_v26 = vsel %vm4880_vm5, %v4848_v30, %v4912_v5  ;;  %v4850_v54 = vadd.f32 %v6278_v53, %v8250_v15  ;;  %v6549_v30 = vld [vmem:[%s6716_s14 + $0x70] sm:$0xff]  ;;  %v6550_v5 = vld [vmem:[%s6716_s14 + $0x88] sm:$0xff] }
 0x2ec   : > { %v4976_v23 = vadd.f32 %v6544_v18, %v4944_v26  ;;  %v4943_v60 = vsel %vm4879_vm6, %v4847_v6, %v4911_v50  ;;  %v4849_v21 = vadd.f32 %v6279_v24, %v8250_v15  ;;  %v6241_v33 = vpop.f32.mrb[14].mxu1  ;;  %v6551_v24 = vld [vmem:[%s6716_s14 + $0x80] sm:$0xff] }
 0x2ed   : > { %v4975_v9 = vadd.f32 %v6545_v25, %v4943_v60  ;;  %vm4882_vm7 = vcmp.gt.f32.partialorder %v4850_v54, 0.0  ;;  %v4914_v10 = vmul.f32 0.1, %v4850_v54  ;;  %v6280_v29 = vadd.f32 %v6241_v33, %v8211_v41  ;;  %v4709_v2 = vpop.f32.mrb[15].mxu1  ;;  %v6552_v25 = vld [vmem:[%s6716_s14 + $0x98] sm:$0xff] }
 0x2ee   : > { %5008 = vst.msk [vmem:[%s8259_s30 + $0x58] sm:$0xff] %vm319_vm1, %v4976_v23  ;;  %vm4881_vm8 = vcmp.gt.f32.partialorder %v4849_v21, 0.0  ;;  %v4913_v12 = vmul.f32 0.1, %v4849_v21  ;;  %v6281_v1 = vadd.f32 %v4709_v2, %v8213_v20  ;;  %v6553_v2 = vld [vmem:[%s6716_s14 + $0x90] sm:$0xff] }
 0x2ef   : > { %5007 = vst.msk [vmem:[%s8259_s30 + $0x50] sm:$0xff] %vm319_vm1, %v4975_v9  ;;  %v4946_v37 = vsel %vm4882_vm7, %v4850_v54, %v4914_v10  ;;  %v4852_v3 = vadd.f32 %v6280_v29, %v8250_v15 }
 0x2f0   : > { %v4978_v36 = vadd.f32 %v6546_v38, %v4946_v37  ;;  %v4945_v31 = vsel %vm4881_vm8, %v4849_v21, %v4913_v12  ;;  %v4851_v41 = vadd.f32 %v6281_v1, %v8250_v15  ;;  %v6244_v13 = vpop.f32.mrb[16].mxu1 }
 0x2f1   : > { %v4977_v19 = vadd.f32 %v6547_v59, %v4945_v31  ;;  %vm4884_vm9 = vcmp.gt.f32.partialorder %v4852_v3, 0.0  ;;  %v4916_v62 = vmul.f32 0.1, %v4852_v3  ;;  %v6282_v20 = vadd.f32 %v6244_v13, %v8215_v56  ;;  %v4719_v7 = vpop.f32.mrb[17].mxu1 }
 0x2f2   : > { %5010 = vst.msk [vmem:[%s8259_s30 + $0x68] sm:$0xff] %vm319_vm1, %v4978_v36  ;;  %vm4883_vm0 = vcmp.gt.f32.partialorder %v4851_v41, 0.0  ;;  %v4915_v11 = vmul.f32 0.1, %v4851_v41  ;;  %v6283_v32 = vadd.f32 %v4719_v7, %v8217_v14 }
 0x2f3   : > { %5009 = vst.msk [vmem:[%s8259_s30 + $0x60] sm:$0xff] %vm319_vm1, %v4977_v19  ;;  %v4948_v34 = vsel %vm4884_vm9, %v4852_v3, %v4916_v62  ;;  %v4854_v16 = vadd.f32 %v6282_v20, %v8250_v15  ;;  %v6555_v62 = vld [vmem:[%s6716_s14 + $0xa0] sm:$0xff] }
 0x2f4   : > { %v4980_v22 = vadd.f32 %v6548_v63, %v4948_v34  ;;  %v4947_v17 = vsel %vm4883_vm0, %v4851_v41, %v4915_v11  ;;  %v4853_v56 = vadd.f32 %v6283_v32, %v8250_v15  ;;  %v6247_v4 = vpop.f32.mrb[18].mxu1  ;;  %v6554_v41 = vld [vmem:[%s6716_s14 + $0xa8] sm:$0xff] }
 0x2f5   : > { %v4979_v58 = vadd.f32 %v6549_v30, %v4947_v17  ;;  %vm4886_vm2 = vcmp.gt.f32.partialorder %v4854_v16, 0.0  ;;  %v4918_v8 = vmul.f32 0.1, %v4854_v16  ;;  %v6284_v14 = vadd.f32 %v6247_v4, %v8219_v55  ;;  %v4729_v52 = vpop.f32.mrb[19].mxu1  ;;  %v6557_v30 = vld [vmem:[%s6716_s14 + $0xb0] sm:$0xff] }
 0x2f6   : > { %5012 = vst.msk [vmem:[%s8259_s30 + $0x78] sm:$0xff] %vm319_vm1, %v4980_v22  ;;  %vm4885_vm10 = vcmp.gt.f32.partialorder %v4853_v56, 0.0  ;;  %v4917_v6 = vmul.f32 0.1, %v4853_v56  ;;  %v6285_v35 = vadd.f32 %v4729_v52, %v8221_v0  ;;  %v6556_v22 = vld [vmem:[%s6716_s14 + $0xb8] sm:$0xff] }
 0x2f7   : > { %5011 = vst.msk [vmem:[%s8259_s30 + $0x70] sm:$0xff] %vm319_vm1, %v4979_v58  ;;  %v4950_v28 = vsel %vm4886_vm2, %v4854_v16, %v4918_v8  ;;  %v4856_v57 = vadd.f32 %v6284_v14, %v8250_v15 }
 0x2f8   : > { %v4982_v53 = vadd.f32 %v6550_v5, %v4950_v28  ;;  %v4949_v61 = vsel %vm4885_vm10, %v4853_v56, %v4917_v6  ;;  %v4855_v55 = vadd.f32 %v6285_v35, %v8250_v15  ;;  %v6250_v50 = vpop.f32.mrb[20].mxu1 }
 0x2f9   : > { %v4981_v26 = vadd.f32 %v6551_v24, %v4949_v61  ;;  %vm4888_vm11 = vcmp.gt.f32.partialorder %v4856_v57, 0.0  ;;  %v4920_v54 = vmul.f32 0.1, %v4856_v57  ;;  %v6286_v0 = vadd.f32 %v6250_v50, %v8223_v39  ;;  %v4739_v18 = vpop.f32.mrb[21].mxu1 }
 0x2fa   : > { %5014 = vst.msk [vmem:[%s8259_s30 + $0x88] sm:$0xff] %vm319_vm1, %v4982_v53  ;;  %vm4887_vm12 = vcmp.gt.f32.partialorder %v4855_v55, 0.0  ;;  %v4919_v23 = vmul.f32 0.1, %v4855_v55  ;;  %v6287_v60 = vadd.f32 %v4739_v18, %v8225_v27 }
 0x2fb   : > { %5013 = vst.msk [vmem:[%s8259_s30 + $0x80] sm:$0xff] %vm319_vm1, %v4981_v26  ;;  %v4952_v21 = vsel %vm4888_vm11, %v4856_v57, %v4920_v54  ;;  %v4858_v33 = vadd.f32 %v6286_v0, %v8250_v15  ;;  %v6558_v57 = vld [vmem:[%s6716_s14 + $0xc8] sm:$0xff] }
 0x2fc   : > { %v4984_v9 = vadd.f32 %v6552_v25, %v4952_v21  ;;  %v4951_v10 = vsel %vm4887_vm12, %v4855_v55, %v4919_v23  ;;  %v4857_v39 = vadd.f32 %v6287_v60, %v8250_v15  ;;  %v6253_v29 = vpop.f32.mrb[22].mxu1  ;;  %v6559_v55 = vld [vmem:[%s6716_s14 + $0xc0] sm:$0xff]  ;;  %v6560_v60 = vld [vmem:[%s6716_s14 + $0xd8] sm:$0xff] }
 0x2fd   : > { %v4983_v12 = vadd.f32 %v6553_v2, %v4951_v10  ;;  %vm4890_vm13 = vcmp.gt.f32.partialorder %v4858_v33, 0.0  ;;  %v4922_v1 = vmul.f32 0.1, %v4858_v33  ;;  %v6288_v27 = vadd.f32 %v6253_v29, %v8227_v43  ;;  %v4749_v37 = vpop.f32.mrb[23].mxu1 }
 0x2fe   : > { %5016 = vst.msk [vmem:[%s8259_s30 + $0x98] sm:$0xff] %vm319_vm1, %v4984_v9  ;;  %vm4889_vm14 = vcmp.gt.f32.partialorder %v4857_v39, 0.0  ;;  %v4921_v3 = vmul.f32 0.1, %v4857_v39  ;;  %v6289_v38 = vadd.f32 %v4749_v37, %v8229_v40  ;;  %v6561_v9 = vld [vmem:[%s6716_s14 + $0xd0] sm:$0xff]  ;;  %v6562_v37 = vld [vmem:[%s6716_s14 + $0xe8] sm:$0xff] }
 0x2ff   : > { %5015 = vst.msk [vmem:[%s8259_s30 + $0x90] sm:$0xff] %vm319_vm1, %v4983_v12  ;;  %v4954_v36 = vsel %vm4890_vm13, %v4858_v33, %v4922_v1  ;;  %v4860_v31 = vadd.f32 %v6288_v27, %v8250_v15 }
 0x300   : > { %v4986_v13 = vadd.f32 %v6554_v41, %v4954_v36  ;;  %v4953_v59 = vsel %vm4889_vm14, %v4857_v39, %v4921_v3  ;;  %v4859_v43 = vadd.f32 %v6289_v38, %v8250_v15  ;;  %v6256_v19 = vpop.f32.mrb[24].mxu1  ;;  %v6563_v36 = vld [vmem:[%s6716_s14 + $0xe0] sm:$0xff] }
 0x301   : > { %v4985_v20 = vadd.f32 %v6555_v62, %v4953_v59  ;;  %vm4892_vm15 = vcmp.gt.f32.partialorder %v4860_v31, 0.0  ;;  %v4924_v7 = vmul.f32 0.1, %v4860_v31  ;;  %v6290_v40 = vadd.f32 %v6256_v19, %v8231_v42  ;;  %v4759_v11 = vpop.f32.mrb[25].mxu1  ;;  %v6564_v59 = vld [vmem:[%s6716_s14 + $0xf8] sm:$0xff]  ;;  %v6565_v62 = vld [vmem:[%s6716_s14 + $0xf0] sm:$0xff] }
 0x302   : > { %5018 = vst.msk [vmem:[%s8259_s30 + $0xa8] sm:$0xff] %vm319_vm1, %v4986_v13  ;;  %vm4891_vm3 = vcmp.gt.f32.partialorder %v4859_v43, 0.0  ;;  %v4923_v32 = vmul.f32 0.1, %v4859_v43  ;;  %v6291_v34 = vadd.f32 %v4759_v11, %v8233_v45 }
 0x303   : > { %5017 = vst.msk [vmem:[%s8259_s30 + $0xa0] sm:$0xff] %vm319_vm1, %v4985_v20  ;;  %v4956_v16 = vsel %vm4892_vm15, %v4860_v31, %v4924_v7  ;;  %v4862_v63 = vadd.f32 %v6290_v40, %v8250_v15 }
 0x304   : > { %v4988_v17 = vadd.f32 %v6556_v22, %v4956_v16  ;;  %v4955_v56 = vsel %vm4891_vm3, %v4859_v43, %v4923_v32  ;;  %v4861_v42 = vadd.f32 %v6291_v34, %v8250_v15  ;;  %v6259_v4 = vpop.f32.mrb[26].mxu1 }
 0x305   : > { %v4987_v58 = vadd.f32 %v6557_v30, %v4955_v56  ;;  %vm4894_vm4 = vcmp.gt.f32.partialorder %v4862_v63, 0.0  ;;  %v4926_v8 = vmul.f32 0.1, %v4862_v63  ;;  %v6292_v45 = vadd.f32 %v6259_v4, %v8235_v44  ;;  %v4769_v14 = vpop.f32.mrb[27].mxu1 }
 0x306   : > { %5020 = vst.msk [vmem:[%s8259_s30 + $0xb8] sm:$0xff] %vm319_vm1, %v4988_v17  ;;  %vm4893_vm5 = vcmp.gt.f32.partialorder %v4861_v42, 0.0  ;;  %v4925_v52 = vmul.f32 0.1, %v4861_v42  ;;  %v6293_v6 = vadd.f32 %v4769_v14, %v8237_v47 }
 0x307   : > { %5019 = vst.msk [vmem:[%s8259_s30 + $0xb0] sm:$0xff] %vm319_vm1, %v4987_v58  ;;  %v4958_v35 = vsel %vm4894_vm4, %v4862_v63, %v4926_v8  ;;  %v4864_v28 = vadd.f32 %v6292_v45, %v8250_v15 }
 0x308   : > { %v4990_v5 = vadd.f32 %v6558_v57, %v4958_v35  ;;  %v4957_v53 = vsel %vm4893_vm5, %v4861_v42, %v4925_v52  ;;  %v4863_v44 = vadd.f32 %v6293_v6, %v8250_v15  ;;  %v6262_v61 = vpop.f32.mrb[28].mxu1 }
 0x309   : > { %v4989_v50 = vadd.f32 %v6559_v55, %v4957_v53  ;;  %vm4896_vm6 = vcmp.gt.f32.partialorder %v4864_v28, 0.0  ;;  %v4928_v24 = vmul.f32 0.1, %v4864_v28  ;;  %v6294_v47 = vadd.f32 %v6262_v61, %v8239_v46  ;;  %v4779_v26 = vpop.f32.mrb[29].mxu1 }
 0x30a   : > { %5022 = vst.msk [vmem:[%s8259_s30 + $0xc8] sm:$0xff] %vm319_vm1, %v4990_v5  ;;  %vm4895_vm7 = vcmp.gt.f32.partialorder %v4863_v44, 0.0  ;;  %v4927_v54 = vmul.f32 0.1, %v4863_v44  ;;  %v6295_v0 = vadd.f32 %v4779_v26, %v8241_v49 }
 0x30b   : > { %5021 = vst.msk [vmem:[%s8259_s30 + $0xc0] sm:$0xff] %vm319_vm1, %v4989_v50  ;;  %v4960_v18 = vsel %vm4896_vm6, %v4864_v28, %v4928_v24  ;;  %v4866_v23 = vadd.f32 %v6294_v47, %v8250_v15 }
 0x30c   : > { %v4992_v21 = vadd.f32 %v6560_v60, %v4960_v18  ;;  %v4959_v33 = vsel %vm4895_vm7, %v4863_v44, %v4927_v54  ;;  %v4865_v46 = vadd.f32 %v6295_v0, %v8250_v15  ;;  %v6265_v25 = vpop.f32.mrb[30].mxu1 }
 0x30d   : > { %v4991_v10 = vadd.f32 %v6561_v9, %v4959_v33  ;;  %vm4898_vm8 = vcmp.gt.f32.partialorder %v4866_v23, 0.0  ;;  %v4930_v39 = vmul.f32 0.1, %v4866_v23  ;;  %v6296_v49 = vadd.f32 %v6265_v25, %v8243_v48  ;;  %v4789_v29 = vpop.f32.mrb[31].mxu1 }
 0x30e   : > { %5024 = vst.msk [vmem:[%s8259_s30 + $0xd8] sm:$0xff] %vm319_vm1, %v4992_v21  ;;  %vm4897_vm9 = vcmp.gt.f32.partialorder %v4865_v46, 0.0  ;;  %v4929_v2 = vmul.f32 0.1, %v4865_v46  ;;  %v6297_v12 = vadd.f32 %v4789_v29, %v8245_v51 }
 0x30f   : > { %5023 = vst.msk [vmem:[%s8259_s30 + $0xd0] sm:$0xff] %vm319_vm1, %v4991_v10  ;;  %v4962_v1 = vsel %vm4898_vm8, %v4866_v23, %v4930_v39  ;;  %v4868_v27 = vadd.f32 %v6296_v49, %v8250_v15 }
 0x310   : > { %v4994_v3 = vadd.f32 %v6562_v37, %v4962_v1  ;;  %v4961_v38 = vsel %vm4897_vm9, %v4865_v46, %v4929_v2  ;;  %v4867_v48 = vadd.f32 %v6297_v12, %v8250_v15 }
 0x311   : > { %v4993_v31 = vadd.f32 %v6563_v36, %v4961_v38  ;;  %vm4900_vm0 = vcmp.gt.f32.partialorder %v4868_v27, 0.0  ;;  %v4932_v41 = vmul.f32 0.1, %v4868_v27 }
 0x312   : > { %5026 = vst.msk [vmem:[%s8259_s30 + $0xe8] sm:$0xff] %vm319_vm1, %v4994_v3  ;;  %vm4899_vm2 = vcmp.gt.f32.partialorder %v4867_v48, 0.0  ;;  %v4931_v51 = vmul.f32 0.1, %v4867_v48 }
 0x313   : > { %5025 = vst.msk [vmem:[%s8259_s30 + $0xe0] sm:$0xff] %vm319_vm1, %v4993_v31  ;;  %v4964_v13 = vsel %vm4900_vm0, %v4868_v27, %v4932_v41 }
 0x314   : > { %v4996_v43 = vadd.f32 %v6564_v59, %v4964_v13  ;;  %v4963_v19 = vsel %vm4899_vm2, %v4867_v48, %v4931_v51 }
 0x315   : > { %v4995_v20 = vadd.f32 %v6565_v62, %v4963_v19 }
 0x316   : > { %5028 = vst.msk [vmem:[%s8259_s30 + $0xf8] sm:$0xff] %vm319_vm1, %v4996_v43 }
 0x317   : > { %5027 = vst.msk [vmem:[%s8259_s30 + $0xf0] sm:$0xff] %vm319_vm1, %v4995_v20 }
 0x318 PF: > { %s17_s24 = sadd.s32 1, %s6572_s24  }
 0x319   : > { %p14_p4 = scmp.ge.s32.totalorder %s17_s24, 4  }
 0x31b   :  { %16 = sbr.rel (!%p14_p4) target bundleno = 1 (0x1), region = 86 }

</bundles_post_ra>
